<compile_context>
chip_gen: v7x
topology: tpu7x:2x2x1
jax: 0.10.0
libtpu: 0.0.40
codegen_flags: <defaults>
</compile_context>

<pallas_src>
import functools
import math
from typing import Sequence

import jax
import jax.numpy as jnp
import numpy as np
from jax.experimental import pallas as pl
from jax.experimental.pallas import tpu as pltpu

_GELU_C = math.sqrt(2.0 / math.pi)
_VMEM_LIMIT = 32 * 1024 * 1024  # safe on v5e (16 MiB default scoped) and v6e/v7x


def _gelu(x):
    """tanh-approximate GELU; works on np arrays (reference) and traced jnp values (kernel)."""
    x3 = x * x * x
    if isinstance(x, np.ndarray):
        return 0.5 * x * (1.0 + np.tanh(_GELU_C * (x + 0.044715 * x3)))
    return 0.5 * x * (1.0 + jnp.tanh(_GELU_C * (x + 0.044715 * x3)))


def _round_up(a: int, m: int) -> int:
    return -(-a // m) * m


# ---------------------------------------------------------------------------
# Kernel 1: pointwise-conv feature extraction + GELU + global average pooling
#           (gridded over the spatial axis S, sublane-direction reduce)
# ---------------------------------------------------------------------------
def _feature_pool_kernel(x_ref, w_ref, b_ref, o_ref, acc_ref, *, inv_s, s_real, need_mask):
    """x_ref: (B, tS, C_pad); w_ref: (C_pad, F); b_ref: (1, F); o_ref/acc_ref: (B, F)."""
    s_idx = pl.program_id(0)

    @pl.when(s_idx == 0)
    def _init():
        acc_ref[...] = jnp.zeros_like(acc_ref)

    B, tS, Cp = x_ref.shape
    # one matmul for all batches: (B*tS, C_pad) x (C_pad, F) -> (B*tS, F), F on lanes
    x2 = x_ref[...].reshape(B * tS, Cp)
    h = jnp.dot(x2, w_ref[...], preferred_element_type=jnp.float32)
    h = _gelu(h + b_ref[...])

    if need_mask:
        local = jax.lax.broadcasted_iota(jnp.int32, (tS, 1), 0)
        valid = (s_idx * tS + local) < s_real  # (tS, 1)

    for bb in range(B):  # B is tiny and static -> unrolled row accumulation
        hb = h[bb * tS:(bb + 1) * tS, :]       # (tS, F), static slice at 8-multiple
        if need_mask:
            hb = jnp.where(valid, hb, 0.0)
        acc_ref[bb, :] += jnp.sum(hb, axis=0)  # sublane-direction reduce

    @pl.when(s_idx == pl.num_programs(0) - 1)
    def _finalize():
        o_ref[...] = (acc_ref[...] * inv_s).astype(o_ref.dtype)


def _feature_pool(x_bsc, w_cf, bias_row, s_real, tile_s):
    B, S_pad, Cp = x_bsc.shape
    F = w_cf.shape[1]
    assert S_pad % tile_s == 0
    n_tiles = S_pad // tile_s
    kernel = functools.partial(
        _feature_pool_kernel,
        inv_s=np.float32(1.0 / s_real),
        s_real=s_real,
        need_mask=(S_pad != s_real),
    )
    return pl.pallas_call(
        kernel,
        out_shape=jax.ShapeDtypeStruct((B, F), x_bsc.dtype),
        grid=(n_tiles,),
        in_specs=[
            pl.BlockSpec((B, tile_s, Cp), lambda s: (0, s, 0)),
            pl.BlockSpec((Cp, F), lambda s: (0, 0)),
            pl.BlockSpec((1, F), lambda s: (0, 0)),
        ],
        out_specs=pl.BlockSpec((B, F), lambda s: (0, 0)),
        scratch_shapes=[pltpu.VMEM((B, F), jnp.float32)],
        compiler_params=pltpu.CompilerParams(
            dimension_semantics=("arbitrary",),
            vmem_limit_bytes=_VMEM_LIMIT),
    )(x_bsc, w_cf, bias_row)


# ---------------------------------------------------------------------------
# Kernel 2: whole classification MLP + packed deconfounder head in one launch
# ---------------------------------------------------------------------------
def _mlp_heads_kernel(*refs, n_hidden, has_dec, n_feat_dec, cls_in_start):
    feat_ref = refs[0]
    idx = 1
    hidden = []
    for _ in range(n_hidden):
        hidden.append((refs[idx], refs[idx + 1], refs[idx + 2]))
        idx += 3
    w_cls_ref, b_cls_ref = refs[idx], refs[idx + 1]
    idx += 2
    if has_dec:
        w_dec_ref, b_dec_ref = refs[idx], refs[idx + 1]
        idx += 2
    cls_out_ref = refs[idx]
    idx += 1
    if has_dec:
        dec_out_ref = refs[idx]

    feat = feat_ref[...].astype(jnp.float32)

    # classification MLP: Linear -> folded-BN affine -> GELU per hidden layer
    h = feat[:, cls_in_start:] if cls_in_start > 0 else feat
    for (w_ref, s_ref, t_ref) in hidden:
        h = jnp.dot(h, w_ref[...], preferred_element_type=jnp.float32) * s_ref[...] + t_ref[...]
        h = _gelu(h)
    cls = jnp.dot(h, w_cls_ref[...], preferred_element_type=jnp.float32) + b_cls_ref[...]
    cls_out_ref[...] = cls.astype(cls_out_ref.dtype)  # lane-dense (padded to 128) store

    if has_dec:
        dec_in = feat[:, :n_feat_dec]
        dec = jnp.dot(dec_in, w_dec_ref[...], preferred_element_type=jnp.float32) + b_dec_ref[...]
        dec_out_ref[...] = dec.astype(dec_out_ref.dtype)


def _mlp_and_heads(features, hidden_layers, w_cls_pad, b_cls_pad,
                   w_dec_pad=None, b_dec_pad=None, *, n_feat_dec=0, cls_in_start=0):
    B = features.shape[0]
    has_dec = w_dec_pad is not None
    inputs = [features]
    for (w, s, t) in hidden_layers:
        inputs += [w, s, t]
    inputs += [w_cls_pad, b_cls_pad]
    if has_dec:
        inputs += [w_dec_pad, b_dec_pad]

    out_shapes = [jax.ShapeDtypeStruct((B, w_cls_pad.shape[1]), features.dtype)]
    if has_dec:
        out_shapes.append(jax.ShapeDtypeStruct((B, w_dec_pad.shape[1]), features.dtype))

    kernel = functools.partial(
        _mlp_heads_kernel,
        n_hidden=len(hidden_layers),
        has_dec=has_dec,
        n_feat_dec=n_feat_dec,
        cls_in_start=cls_in_start,
    )
    return pl.pallas_call(
        kernel,
        out_shape=tuple(out_shapes),
        in_specs=[pl.BlockSpec(memory_space=pltpu.MemorySpace.VMEM)] * len(inputs),
        out_specs=tuple(pl.BlockSpec(memory_space=pltpu.MemorySpace.VMEM)
                        for _ in out_shapes),
        compiler_params=pltpu.CompilerParams(vmem_limit_bytes=_VMEM_LIMIT),
    )(*inputs)


# ---------------------------------------------------------------------------
# Module wrapper
# ---------------------------------------------------------------------------
class DeconfoundedNetGenericPallas:
    """JAX/Pallas port of DeconfoundedNetGeneric.forward (inference)."""

    def __init__(self,
                 n_classes: int,
                 in_channels: int = 1,
                 n_dim: int = 3,
                 n_feature_maps: int = 256,
                 classification_structure: Sequence[int] = (512, 512, 512),
                 n_features_deconfounder: int = None,
                 n_cat_deconfounder: Sequence[int] = None,
                 n_cont_deconfounder: int = None,
                 exclude_surrogate_variables: bool = False,
                 deconfounder_structure: Sequence[int] = None,
                 spatial_tile: int = 2048,
                 seed: int = 42):
        self.n_classes = n_classes
        self.in_channels = in_channels
        self.n_dim = n_dim
        self.n_output_features = n_feature_maps
        self.classification_structure = list(classification_structure)
        self.n_features_deconfounder = n_features_deconfounder or 0
        self.n_cat_deconfounder = list(n_cat_deconfounder) if n_cat_deconfounder else []
        self.n_cont_deconfounder = n_cont_deconfounder or 0
        self.exclude_surrogate_variables = exclude_surrogate_variables
        self.deconfounder_structure = list(deconfounder_structure) if deconfounder_structure else []
        self.spatial_tile = int(spatial_tile)
        # TODO(synk): only the default (empty) deconfounder_structure (linear confounder heads)
        #             is implemented.
        assert len(self.deconfounder_structure) == 0

        # pad the channel (contraction) dim to a sublane multiple
        self.c_pad = max(8, _round_up(in_channels, 8))

        key = jax.random.PRNGKey(seed)

        # --- pointwise-conv feature extractor, stored (C_pad, F): contraction dim first so
        #     the kernel's matmul output keeps F on lanes and reduces along sublanes ---
        key, kw, kb = jax.random.split(key, 3)
        wf = jax.random.normal(kw, (in_channels, n_feature_maps), jnp.float32) / np.sqrt(in_channels)
        self.wf = jnp.zeros((self.c_pad, n_feature_maps), jnp.float32).at[:in_channels, :].set(wf)
        self.bf_row = 0.01 * jax.random.normal(kb, (1, n_feature_maps), jnp.float32)

        # --- classification head: Linear -> BN(eval, folded) -> GELU per hidden layer,
        #     final plain Linear (bias folded into the affine shift everywhere) ---
        if exclude_surrogate_variables:
            n_in = self.n_output_features - self.n_features_deconfounder
        else:
            n_in = self.n_output_features
        n_cls_out = n_classes if n_classes > 2 else 1
        self.n_cls_out = n_cls_out
        sizes = [n_in] + self.classification_structure + [n_cls_out]

        self.hidden_layers = []
        for li in range(len(sizes) - 2):
            fan_in, fan_out = sizes[li], sizes[li + 1]
            key, kw, kb, kg, kbe, km, kv = jax.random.split(key, 7)
            w = jax.random.normal(kw, (fan_in, fan_out), jnp.float32) / np.sqrt(fan_in)
            b = 0.01 * jax.random.normal(kb, (fan_out,), jnp.float32)
            gamma = 1.0 + 0.1 * jax.random.normal(kg, (fan_out,), jnp.float32)
            beta = 0.1 * jax.random.normal(kbe, (fan_out,), jnp.float32)
            mean = 0.1 * jax.random.normal(km, (fan_out,), jnp.float32)
            var = 1.0 + 0.1 * jnp.abs(jax.random.normal(kv, (fan_out,), jnp.float32))
            inv = gamma / jnp.sqrt(var + 1e-5)
            scale = inv
            shift_fold = b * inv + (beta - mean * inv)   # bias folded into the BN shift
            self.hidden_layers.append(
                (w, scale.reshape(1, fan_out), shift_fold.reshape(1, fan_out)))

        # final classification linear, padded to a lane-dense (128-wide) output slab
        fan_in, fan_out = sizes[-2], sizes[-1]
        key, kw, kb = jax.random.split(key, 3)
        w = jax.random.normal(kw, (fan_in, fan_out), jnp.float32) / np.sqrt(fan_in)
        b = 0.01 * jax.random.normal(kb, (fan_out,), jnp.float32)
        p_cls = _round_up(fan_out, 128)
        self.w_cls_pad = jnp.zeros((fan_in, p_cls), jnp.float32).at[:, :fan_out].set(w)
        self.b_cls_pad = jnp.zeros((1, p_cls), jnp.float32).at[0, :fan_out].set(b)

        # --- deconfounder heads: all categorical classifiers + the continuous regressor
        #     packed into one linear layer, padded to a lane-dense output slab ---
        self.has_deconfounder = (
            self.n_features_deconfounder > 0
            and (len(self.n_cat_deconfounder) > 0 or self.n_cont_deconfounder > 0))
        self.w_dec_pad = None
        self.b_dec_pad = None
        self.n_dec_out = 0
        if self.has_deconfounder:
            n_dec_out = sum(self.n_cat_deconfounder) + self.n_cont_deconfounder
            self.n_dec_out = n_dec_out
            p_dec = _round_up(n_dec_out, 128)
            key, kw, kb = jax.random.split(key, 3)
            w = (jax.random.normal(kw, (self.n_features_deconfounder, n_dec_out), jnp.float32)
                 / np.sqrt(self.n_features_deconfounder))
            b = 0.01 * jax.random.normal(kb, (n_dec_out,), jnp.float32)
            self.w_dec_pad = (jnp.zeros((self.n_features_deconfounder, p_dec), jnp.float32)
                              .at[:, :n_dec_out].set(w))
            self.b_dec_pad = jnp.zeros((1, p_dec), jnp.float32).at[0, :n_dec_out].set(b)

    # -----------------------------------------------------------------------
    def forward(self, X: jnp.ndarray, return_features: bool = False):
        B, C = X.shape[0], X.shape[1]
        S = int(np.prod(X.shape[2:]))

        # fused forward_features + GlobalPooling: lay X out as (B, S_pad, C_pad) so the
        # matmul output is (rows=S on sublanes, F=256 on lanes) and the mean reduce is
        # sublane-direction; grid over S with a VMEM partial-sum accumulator.
        x = X.reshape(B, C, S).astype(jnp.float32)
        x = jnp.transpose(x, (0, 2, 1))                      # (B, S, C)
        tile_s = min(self.spatial_tile, _round_up(S, 8))
        s_pad = _round_up(S, tile_s)
        x = jnp.pad(x, ((0, 0), (0, s_pad - S), (0, self.c_pad - C)))
        features = _feature_pool(x, self.wf, self.bf_row, S, tile_s)  # (B, F), lane-dense

        if return_features:
            return features

        cls_in_start = (self.n_features_deconfounder
                        if self.exclude_surrogate_variables else 0)

        if self.has_deconfounder:
            cls_pad, dec_pad = _mlp_and_heads(
                features, self.hidden_layers, self.w_cls_pad, self.b_cls_pad,
                self.w_dec_pad, self.b_dec_pad,
                n_feat_dec=self.n_features_deconfounder, cls_in_start=cls_in_start)
        else:
            (cls_pad,) = _mlp_and_heads(
                features, self.hidden_layers, self.w_cls_pad, self.b_cls_pad,
                n_feat_dec=0, cls_in_start=cls_in_start)
            dec_pad = None

        classification = cls_pad[:, :self.n_cls_out]

        confounder_classification = None
        confounder_regression = None
        if self.has_deconfounder:
            off = 0
            if len(self.n_cat_deconfounder) > 0:
                confounder_classification = []
                for n_c in self.n_cat_deconfounder:
                    confounder_classification.append(dec_pad[:, off:off + n_c])
                    off += n_c
            if self.n_cont_deconfounder > 0:
                confounder_regression = dec_pad[:, off:off + self.n_cont_deconfounder]

        return classification, confounder_classification, confounder_regression, features

    __call__ = forward


# ---------------------------------------------------------------------------
# Pure-numpy reference (same parameters, same GELU formulation)
# ---------------------------------------------------------------------------
def _reference_forward(module: DeconfoundedNetGenericPallas, X_np: np.ndarray):
    B, C = X_np.shape[0], X_np.shape[1]
    S = int(np.prod(X_np.shape[2:]))
    x = X_np.reshape(B, C, S).astype(np.float32).transpose(0, 2, 1)   # (B, S, C)
    wf = np.asarray(module.wf)[:C, :]
    bf = np.asarray(module.bf_row)
    feats = np.stack([_gelu(x[b] @ wf + bf).mean(axis=0) for b in range(B)], axis=0)

    start = module.n_features_deconfounder if module.exclude_surrogate_variables else 0
    h = feats[:, start:]
    for (w, s, t) in module.hidden_layers:
        h = _gelu((h @ np.asarray(w)) * np.asarray(s) + np.asarray(t))
    w_cls = np.asarray(module.w_cls_pad)[:, :module.n_cls_out]
    b_cls = np.asarray(module.b_cls_pad)[0, :module.n_cls_out]
    cls = h @ w_cls + b_cls[None, :]

    cat_out, reg_out = None, None
    if module.has_deconfounder:
        dec_in = feats[:, : module.n_features_deconfounder]
        w_dec = np.asarray(module.w_dec_pad)[:, :module.n_dec_out]
        b_dec = np.asarray(module.b_dec_pad)[0, :module.n_dec_out]
        dec = dec_in @ w_dec + b_dec[None, :]
        off = 0
        if len(module.n_cat_deconfounder) > 0:
            cat_out = []
            for n_c in module.n_cat_deconfounder:
                cat_out.append(dec[:, off:off + n_c])
                off += n_c
        if module.n_cont_deconfounder > 0:
            reg_out = dec[:, off:off + module.n_cont_deconfounder]
    return cls, cat_out, reg_out, feats


if __name__ == "__main__":
    B, C, D, H, W = 2, 4, 8, 8, 8
    module = DeconfoundedNetGenericPallas(
        n_classes=3,
        in_channels=C,
        n_dim=3,
        n_feature_maps=256,
        classification_structure=[256, 256],
        n_features_deconfounder=128,
        n_cat_deconfounder=[3, 5],
        n_cont_deconfounder=2,
        exclude_surrogate_variables=False,
        deconfounder_structure=[],
        spatial_tile=2048,
        seed=42,
    )

    X = jax.random.normal(jax.random.PRNGKey(0), (B, C, D, H, W), jnp.float32)

    cls, cat_preds, reg, feats = module(X)
    cls = jax.block_until_ready(cls)
    feats = jax.block_until_ready(feats)
    reg = jax.block_until_ready(reg)
    cat_preds = [jax.block_until_ready(c) for c in cat_preds]

    assert cls.shape == (B, 3), cls.shape
    assert feats.shape == (B, 256), feats.shape
    assert [tuple(c.shape) for c in cat_preds] == [(B, 3), (B, 5)]
    assert reg.shape == (B, 2), reg.shape

    ref_cls, ref_cats, ref_reg, ref_feats = _reference_forward(module, np.asarray(X))
    tol = dict(rtol=1e-2, atol=1e-2)
    np.testing.assert_allclose(np.asarray(feats), ref_feats, **tol)
    np.testing.assert_allclose(np.asarray(cls), ref_cls, **tol)
    for got, want in zip(cat_preds, ref_cats):
        np.testing.assert_allclose(np.asarray(got), want, **tol)
    np.testing.assert_allclose(np.asarray(reg), ref_reg, **tol)

    only_feats = jax.block_until_ready(module(X, return_features=True))
    np.testing.assert_allclose(np.asarray(only_feats), ref_feats, **tol)

    print("KERNEL_OK")
</pallas_src>

<mosaic_0001>
module attributes {stable_mosaic.version = 11 : i64} {
  func.func @_feature_pool_kernel(%arg0: i32, %arg1: memref<2x512x8xf32, #tpu.memory_space<vmem>>, %arg2: memref<8x256xf32, #tpu.memory_space<vmem>>, %arg3: memref<1x256xf32, #tpu.memory_space<vmem>>, %arg4: memref<2x256xf32, #tpu.memory_space<vmem>>, %arg5: memref<2x256xf32, #tpu.memory_space<vmem>>) attributes {dimension_semantics = [#tpu.dimension_semantics<arbitrary>], iteration_bounds = array<i64: 1>, scalar_prefetch = 0 : i64, scratch_operands = 1 : i64, tpu.core_type = #tpu.core_type<tc>, window_params = [{transform_indices = @transform_0, window_bounds = array<i64: 2, 512, 8>}, {pipeline_mode = #tpu.pipeline_mode<synchronous>, transform_indices = @transform_1, window_bounds = array<i64: 8, 256>}, {pipeline_mode = #tpu.pipeline_mode<synchronous>, transform_indices = @transform_2, window_bounds = array<i64: 1, 256>}, {pipeline_mode = #tpu.pipeline_mode<synchronous>, transform_indices = @transform_3, window_bounds = array<i64: 2, 256>}]} {
    %c0_i32 = arith.constant 0 : i32
    %0 = arith.cmpi eq, %arg0, %c0_i32 : i32
    %1 = arith.extui %0 : i1 to i32
    %c0_i32_0 = arith.constant 0 : i32
    %2 = arith.cmpi ne, %1, %c0_i32_0 : i32
    scf.if %2 {
      %cst_22 = arith.constant 0.000000e+00 : f32
      %42 = vector.broadcast %cst_22 : f32 to vector<2x256xf32>
      %c0_23 = arith.constant 0 : index
      %c0_24 = arith.constant 0 : index
      %43 = vector.load %arg5[%c0_23, %c0_24] : memref<2x256xf32, #tpu.memory_space<vmem>>, vector<2x256xf32>
      tpu.vector_store %arg5[%c0_23, %c0_24], %42 {strides = array<i32>} : memref<2x256xf32, #tpu.memory_space<vmem>>, vector<2x256xf32>,
    } else {
    }
    %c0 = arith.constant 0 : index
    %c0_1 = arith.constant 0 : index
    %c0_2 = arith.constant 0 : index
    %3 = vector.load %arg1[%c0, %c0_1, %c0_2] : memref<2x512x8xf32, #tpu.memory_space<vmem>>, vector<2x512x8xf32>
    %4 = vector.shape_cast %3 : vector<2x512x8xf32> to vector<1024x8xf32>
    %c0_3 = arith.constant 0 : index
    %c0_4 = arith.constant 0 : index
    %5 = vector.load %arg2[%c0_3, %c0_4] : memref<8x256xf32, #tpu.memory_space<vmem>>, vector<8x256xf32>
    %cst = arith.constant dense<0.000000e+00> : vector<1024x256xf32>
    %6 = tpu.matmul %4, %5, %cst {dimension_numbers = #tpu.dot_dimension_numbers<[1], [0], [0], [1], [0, 0, 1, 1], [], []>} : vector<1024x8xf32>, vector<8x256xf32>, vector<1024x256xf32> -> vector<1024x256xf32>
    %c0_5 = arith.constant 0 : index
    %c0_6 = arith.constant 0 : index
    %7 = vector.load %arg3[%c0_5, %c0_6] : memref<1x256xf32, #tpu.memory_space<vmem>>, vector<1x256xf32>
    %8 = vector.broadcast %7 : vector<1x256xf32> to vector<1024x256xf32>
    %9 = arith.addf %6, %8 : vector<1024x256xf32>
    %10 = arith.mulf %9, %9 : vector<1024x256xf32>
    %11 = arith.mulf %10, %9 : vector<1024x256xf32>
    %cst_7 = arith.constant 5.000000e-01 : f32
    %12 = vector.broadcast %cst_7 : f32 to vector<1024x256xf32>
    %13 = arith.mulf %12, %9 : vector<1024x256xf32>
    %cst_8 = arith.constant 4.471500e-02 : f32
    %14 = vector.broadcast %cst_8 : f32 to vector<1024x256xf32>
    %15 = arith.mulf %14, %11 : vector<1024x256xf32>
    %16 = arith.addf %9, %15 : vector<1024x256xf32>
    %cst_9 = arith.constant 0.797884583 : f32
    %17 = vector.broadcast %cst_9 : f32 to vector<1024x256xf32>
    %18 = arith.mulf %17, %16 : vector<1024x256xf32>
    %19 = math.tanh %18 : vector<1024x256xf32>
    %cst_10 = arith.constant 1.000000e+00 : f32
    %20 = vector.broadcast %cst_10 : f32 to vector<1024x256xf32>
    %21 = arith.addf %20, %19 : vector<1024x256xf32>
    %22 = arith.mulf %13, %21 : vector<1024x256xf32>
    %23 = vector.extract_strided_slice %22 {offsets = [0, 0], sizes = [512, 256], strides = [1, 1]} : vector<1024x256xf32> to vector<512x256xf32>
    %c0_11 = arith.constant 0 : index
    %c0_12 = arith.constant 0 : index
    %24 = vector.load %arg5[%c0_11, %c0_12] : memref<2x256xf32, #tpu.memory_space<vmem>>, vector<1x256xf32>
    %25 = vector.shape_cast %24 : vector<1x256xf32> to vector<256xf32>
    %cst_13 = arith.constant dense<0.000000e+00> : vector<256xf32>
    %26 = vector.multi_reduction <add>, %23, %cst_13 [0] : vector<512x256xf32> to vector<256xf32>
    %27 = arith.addf %25, %26 : vector<256xf32>
    %c0_14 = arith.constant 0 : index
    %c0_15 = arith.constant 0 : index
    %28 = vector.load %arg5[%c0_14, %c0_15] : memref<2x256xf32, #tpu.memory_space<vmem>>, vector<1x256xf32>
    %29 = vector.shape_cast %28 : vector<1x256xf32> to vector<256xf32>
    %30 = vector.shape_cast %27 : vector<256xf32> to vector<1x256xf32>
    tpu.vector_store %arg5[%c0_14, %c0_15], %30 {strides = array<i32>} : memref<2x256xf32, #tpu.memory_space<vmem>>, vector<1x256xf32>,
    %31 = vector.extract_strided_slice %22 {offsets = [512, 0], sizes = [512, 256], strides = [1, 1]} : vector<1024x256xf32> to vector<512x256xf32>
    %c1 = arith.constant 1 : index
    %c0_16 = arith.constant 0 : index
    %32 = vector.load %arg5[%c1, %c0_16] : memref<2x256xf32, #tpu.memory_space<vmem>>, vector<1x256xf32>
    %33 = vector.shape_cast %32 : vector<1x256xf32> to vector<256xf32>
    %cst_17 = arith.constant dense<0.000000e+00> : vector<256xf32>
    %34 = vector.multi_reduction <add>, %31, %cst_17 [0] : vector<512x256xf32> to vector<256xf32>
    %35 = arith.addf %33, %34 : vector<256xf32>
    %c1_18 = arith.constant 1 : index
    %c0_19 = arith.constant 0 : index
    %36 = vector.load %arg5[%c1_18, %c0_19] : memref<2x256xf32, #tpu.memory_space<vmem>>, vector<1x256xf32>
    %37 = vector.shape_cast %36 : vector<1x256xf32> to vector<256xf32>
    %38 = vector.shape_cast %35 : vector<256xf32> to vector<1x256xf32>
    tpu.vector_store %arg5[%c1_18, %c0_19], %38 {strides = array<i32>} : memref<2x256xf32, #tpu.memory_space<vmem>>, vector<1x256xf32>,
    %c0_i32_20 = arith.constant 0 : i32
    %39 = arith.cmpi eq, %arg0, %c0_i32_20 : i32
    %40 = arith.extui %39 : i1 to i32
    %c0_i32_21 = arith.constant 0 : i32
    %41 = arith.cmpi ne, %40, %c0_i32_21 : i32
    scf.if %41 {
      %c0_22 = arith.constant 0 : index
      %c0_23 = arith.constant 0 : index
      %42 = vector.load %arg5[%c0_22, %c0_23] : memref<2x256xf32, #tpu.memory_space<vmem>>, vector<2x256xf32>
      %cst_24 = arith.constant 0.001953125 : f32
      %43 = vector.broadcast %cst_24 : f32 to vector<2x256xf32>
      %44 = arith.mulf %42, %43 : vector<2x256xf32>
      %c0_25 = arith.constant 0 : index
      %c0_26 = arith.constant 0 : index
      %45 = vector.load %arg4[%c0_25, %c0_26] : memref<2x256xf32, #tpu.memory_space<vmem>>, vector<2x256xf32>
      tpu.vector_store %arg4[%c0_25, %c0_26], %44 {strides = array<i32>} : memref<2x256xf32, #tpu.memory_space<vmem>>, vector<2x256xf32>,
    } else {
    }
    return
  }
  func.func @transform_0(%arg0: i32) -> (i32, i32, i32) {
    %c0_i32 = arith.constant 0 : i32
    %c0_i32_0 = arith.constant 0 : i32
    %c0_i32_1 = arith.constant 0 : i32
    return %c0_i32, %arg0, %c0_i32_0 : i32, i32, i32
  }
  func.func @transform_1(%arg0: i32) -> (i32, i32) {
    %c0_i32 = arith.constant 0 : i32
    %c0_i32_0 = arith.constant 0 : i32
    %c0_i32_1 = arith.constant 0 : i32
    return %c0_i32, %c0_i32_0 : i32, i32
  }
  func.func @transform_2(%arg0: i32) -> (i32, i32) {
    %c0_i32 = arith.constant 0 : i32
    %c0_i32_0 = arith.constant 0 : i32
    %c0_i32_1 = arith.constant 0 : i32
    return %c0_i32, %c0_i32_0 : i32, i32
  }
  func.func @transform_3(%arg0: i32) -> (i32, i32) {
    %c0_i32 = arith.constant 0 : i32
    %c0_i32_0 = arith.constant 0 : i32
    %c0_i32_1 = arith.constant 0 : i32
    return %c0_i32, %c0_i32_0 : i32, i32
  }
}

</mosaic_0001>

<bundles_post_ra>
// kernel: tpu_custom_call.1
= control target key start
LH: loop header
LB: loop body
LE: loop exit
PB: predicated region body
PF: predicated region fallthrough
CT: control target
= control target key end

     0   :  { %v4696_v2 = vmov 0.0   ;;  %vm162_vm0 = vcmask 64512   ;;  %s8260_s0 = inlined_call_operand.vmem [shape: f32[2,512,8], index: 0, kind: input, shape index: {}]   ;;  %s8261_s1 = inlined_call_operand.vmem [shape: f32[8,256], index: 1, kind: input, shape index: {}]   ;;  %s8262_s2 = inlined_call_operand.vmem [shape: f32[1,256], index: 2, kind: input, shape index: {}]   ;;  %s8263_s3 = inlined_call_operand.hbm [shape: f32[2,256], index: 3, kind: output, shape index: {}]  }
   0x1   :  { %v149_v0 = vld [vmem:[%s8261_s1 + $0x8] sm:$0xff]  ;;  %v148_v1 = vld [vmem:[%s8261_s1] sm:$0xff]  ;;  %19 = vst [vmem:[#allocation2] sm:$0xf] %v4696_v2  ;;  %611 = vmatprep.mubr.f32.mxu0 %v4696_v2  ;;  %995 = vmatprep.mubr.f32.mxu1 %v4696_v2  ;;  %v22_v7 = vld [vmem:[%s8260_s0 + $0x10] sm:$0xff] }
   0x2   :  { %547 = vmatprep.subr.mxu0 %v149_v0  ;;  %4155 = vmatprep.subr.mxu1 %v149_v0  ;;  %v20_v3 = vld [vmem:[%s8260_s0] sm:$0xff]  ;;  %v21_v5 = vld [vmem:[%s8260_s0 + $0x8] sm:$0xff]  ;;  %v86_v8 = vld [vmem:[%s8260_s0 + $0x210] sm:$0xff] }
   0x3   :  { %v84_v4 = vld [vmem:[%s8260_s0 + $0x200] sm:$0xff]  ;;  %548 = vmatpush1.msra.mxu0 %v148_v1  ;;  %4156 = vmatpush1.msra.mxu1 %v148_v1  ;;  %v85_v6 = vld [vmem:[%s8260_s0 + $0x208] sm:$0xff]  ;;  %v23_v9 = vld [vmem:[%s8260_s0 + $0x18] sm:$0xff] }
   0x4   :  { %4027 = vmatmul.mubr.msk.f32.vlgmr.msra.gmra.mrb[0].mxu0 %vm162_vm0, %v20_v3  ;;  %4091 = vmatmul.mubr.msk.f32.vlgmr.msra.gmra.mrb[0].mxu1 %vm162_vm0, %v84_v4  ;;  %v87_v10 = vld [vmem:[%s8260_s0 + $0x218] sm:$0xff]  ;;  %v24_v11 = vld [vmem:[%s8260_s0 + $0x20] sm:$0xff]  ;;  %v25_v13 = vld [vmem:[%s8260_s0 + $0x28] sm:$0xff] }
   0x5   :  { %617 = vmatprep.mubr.f32.mxu0 %v4696_v2  ;;  %1001 = vmatprep.mubr.f32.mxu1 %v4696_v2  ;;  %v88_v12 = vld [vmem:[%s8260_s0 + $0x220] sm:$0xff]  ;;  %v89_v14 = vld [vmem:[%s8260_s0 + $0x228] sm:$0xff]  ;;  %v26_v15 = vld [vmem:[%s8260_s0 + $0x30] sm:$0xff] }
   0x6   :  { %v90_v16 = vld [vmem:[%s8260_s0 + $0x230] sm:$0xff] }
   0x8   :  { %4028 = vmatmul.mubr.msk.f32.gmra.mrb[2].mxu0 %vm162_vm0, %v21_v5  ;;  %4092 = vmatmul.mubr.msk.f32.gmra.mrb[2].mxu1 %vm162_vm0, %v85_v6 }
   0x9   :  { %623 = vmatprep.mubr.f32.mxu0 %v4696_v2  ;;  %1007 = vmatprep.mubr.f32.mxu1 %v4696_v2 }
   0xc   :  { %4029 = vmatmul.mubr.msk.f32.gmra.mrb[4].mxu0 %vm162_vm0, %v22_v7  ;;  %4093 = vmatmul.mubr.msk.f32.gmra.mrb[4].mxu1 %vm162_vm0, %v86_v8 }
   0xd   :  { %629 = vmatprep.mubr.f32.mxu0 %v4696_v2  ;;  %1013 = vmatprep.mubr.f32.mxu1 %v4696_v2 }
  0x10   :  { %4030 = vmatmul.mubr.msk.f32.gmra.mrb[6].mxu0 %vm162_vm0, %v23_v9  ;;  %4094 = vmatmul.mubr.msk.f32.gmra.mrb[6].mxu1 %vm162_vm0, %v87_v10 }
  0x11   :  { %635 = vmatprep.mubr.f32.mxu0 %v4696_v2  ;;  %1019 = vmatprep.mubr.f32.mxu1 %v4696_v2 }
  0x14   :  { %4031 = vmatmul.mubr.msk.f32.gmra.mrb[8].mxu0 %vm162_vm0, %v24_v11  ;;  %4095 = vmatmul.mubr.msk.f32.gmra.mrb[8].mxu1 %vm162_vm0, %v88_v12 }
  0x15   :  { %641 = vmatprep.mubr.f32.mxu0 %v4696_v2  ;;  %1025 = vmatprep.mubr.f32.mxu1 %v4696_v2 }
  0x18   :  { %4032 = vmatmul.mubr.msk.f32.gmra.mrb[10].mxu0 %vm162_vm0, %v25_v13  ;;  %4096 = vmatmul.mubr.msk.f32.gmra.mrb[10].mxu1 %vm162_vm0, %v89_v14 }
  0x19   :  { %647 = vmatprep.mubr.f32.mxu0 %v4696_v2  ;;  %1031 = vmatprep.mubr.f32.mxu1 %v4696_v2 }
  0x1a   :  { %8 = vsyncpa [#allocation4], 0  ;;  %v27_v17 = vld [vmem:[%s8260_s0 + $0x38] sm:$0xff]  ;;  %v28_v19 = vld [vmem:[%s8260_s0 + $0x40] sm:$0xff] }
  0x1b   :  { %v91_v18 = vld [vmem:[%s8260_s0 + $0x238] sm:$0xff]  ;;  %v92_v20 = vld [vmem:[%s8260_s0 + $0x240] sm:$0xff]  ;;  %v29_v21 = vld [vmem:[%s8260_s0 + $0x48] sm:$0xff] }
  0x1c   :  { %4033 = vmatmul.mubr.msk.f32.gmra.mrb[12].mxu0 %vm162_vm0, %v26_v15  ;;  %4097 = vmatmul.mubr.msk.f32.gmra.mrb[12].mxu1 %vm162_vm0, %v90_v16  ;;  %v93_v22 = vld [vmem:[%s8260_s0 + $0x248] sm:$0xff]  ;;  %v30_v23 = vld [vmem:[%s8260_s0 + $0x50] sm:$0xff]  ;;  %v31_v25 = vld [vmem:[%s8260_s0 + $0x58] sm:$0xff] }
  0x1d   :  { %653 = vmatprep.mubr.f32.mxu0 %v4696_v2  ;;  %1037 = vmatprep.mubr.f32.mxu1 %v4696_v2  ;;  %v94_v24 = vld [vmem:[%s8260_s0 + $0x250] sm:$0xff]  ;;  %v95_v26 = vld [vmem:[%s8260_s0 + $0x258] sm:$0xff]  ;;  %v32_v27 = vld [vmem:[%s8260_s0 + $0x60] sm:$0xff] }
  0x1e   :  { %v96_v28 = vld [vmem:[%s8260_s0 + $0x260] sm:$0xff]  ;;  %v33_v29 = vld [vmem:[%s8260_s0 + $0x68] sm:$0xff]  ;;  %v34_v31 = vld [vmem:[%s8260_s0 + $0x70] sm:$0xff] }
  0x1f   :  { %v97_v30 = vld [vmem:[%s8260_s0 + $0x268] sm:$0xff]  ;;  %v98_v32 = vld [vmem:[%s8260_s0 + $0x270] sm:$0xff]  ;;  %v35_v33 = vld [vmem:[%s8260_s0 + $0x78] sm:$0xff] }
  0x20   :  { %4034 = vmatmul.mubr.msk.f32.gmra.mrb[14].mxu0 %vm162_vm0, %v27_v17  ;;  %4098 = vmatmul.mubr.msk.f32.gmra.mrb[14].mxu1 %vm162_vm0, %v91_v18  ;;  %v99_v34 = vld [vmem:[%s8260_s0 + $0x278] sm:$0xff]  ;;  %v36_v35 = vld [vmem:[%s8260_s0 + $0x80] sm:$0xff]  ;;  %v37_v37 = vld [vmem:[%s8260_s0 + $0x88] sm:$0xff] }
  0x21   :  { %659 = vmatprep.mubr.f32.mxu0 %v4696_v2  ;;  %1043 = vmatprep.mubr.f32.mxu1 %v4696_v2  ;;  %v100_v36 = vld [vmem:[%s8260_s0 + $0x280] sm:$0xff]  ;;  %v101_v38 = vld [vmem:[%s8260_s0 + $0x288] sm:$0xff]  ;;  %v38_v39 = vld [vmem:[%s8260_s0 + $0x90] sm:$0xff] }
  0x22   :  { %v102_v40 = vld [vmem:[%s8260_s0 + $0x290] sm:$0xff]  ;;  %v39_v41 = vld [vmem:[%s8260_s0 + $0x98] sm:$0xff]  ;;  %v40_v43 = vld [vmem:[%s8260_s0 + $0xa0] sm:$0xff] }
  0x23   :  { %v103_v42 = vld [vmem:[%s8260_s0 + $0x298] sm:$0xff]  ;;  %v104_v44 = vld [vmem:[%s8260_s0 + $0x2a0] sm:$0xff]  ;;  %v41_v45 = vld [vmem:[%s8260_s0 + $0xa8] sm:$0xff] }
  0x24   :  { %4035 = vmatmul.mubr.msk.f32.gmra.mrb[16].mxu0 %vm162_vm0, %v28_v19  ;;  %4099 = vmatmul.mubr.msk.f32.gmra.mrb[16].mxu1 %vm162_vm0, %v92_v20  ;;  %v105_v46 = vld [vmem:[%s8260_s0 + $0x2a8] sm:$0xff]  ;;  %v42_v47 = vld [vmem:[%s8260_s0 + $0xb0] sm:$0xff]  ;;  %v43_v49 = vld [vmem:[%s8260_s0 + $0xb8] sm:$0xff] }
  0x25   :  { %665 = vmatprep.mubr.f32.mxu0 %v4696_v2  ;;  %1049 = vmatprep.mubr.f32.mxu1 %v4696_v2  ;;  %v106_v48 = vld [vmem:[%s8260_s0 + $0x2b0] sm:$0xff]  ;;  %v107_v50 = vld [vmem:[%s8260_s0 + $0x2b8] sm:$0xff]  ;;  %v44_v51 = vld [vmem:[%s8260_s0 + $0xc0] sm:$0xff] }
  0x26   :  { %v108_v52 = vld [vmem:[%s8260_s0 + $0x2c0] sm:$0xff]  ;;  %v45_v53 = vld [vmem:[%s8260_s0 + $0xc8] sm:$0xff]  ;;  %v46_v55 = vld [vmem:[%s8260_s0 + $0xd0] sm:$0xff] }
  0x27   :  { %v109_v54 = vld [vmem:[%s8260_s0 + $0x2c8] sm:$0xff]  ;;  %v110_v56 = vld [vmem:[%s8260_s0 + $0x2d0] sm:$0xff]  ;;  %v47_v57 = vld [vmem:[%s8260_s0 + $0xd8] sm:$0xff] }
  0x28   :  { %4036 = vmatmul.mubr.msk.f32.gmra.mrb[18].mxu0 %vm162_vm0, %v29_v21  ;;  %4100 = vmatmul.mubr.msk.f32.gmra.mrb[18].mxu1 %vm162_vm0, %v93_v22  ;;  %v111_v58 = vld [vmem:[%s8260_s0 + $0x2d8] sm:$0xff]  ;;  %v48_v59 = vld [vmem:[%s8260_s0 + $0xe0] sm:$0xff]  ;;  %v49_v61 = vld [vmem:[%s8260_s0 + $0xe8] sm:$0xff] }
  0x29   :  { %671 = vmatprep.mubr.f32.mxu0 %v4696_v2  ;;  %1055 = vmatprep.mubr.f32.mxu1 %v4696_v2  ;;  %v112_v60 = vld [vmem:[%s8260_s0 + $0x2e0] sm:$0xff]  ;;  %v113_v62 = vld [vmem:[%s8260_s0 + $0x2e8] sm:$0xff]  ;;  %v50_v63 = vld [vmem:[%s8260_s0 + $0xf0] sm:$0xff] }
  0x2a   :  { %v114_v0 = vld [vmem:[%s8260_s0 + $0x2f0] sm:$0xff]  ;;  %v51_v1 = vld [vmem:[%s8260_s0 + $0xf8] sm:$0xff]  ;;  %v52_v4 = vld [vmem:[%s8260_s0 + $0x100] sm:$0xff] }
  0x2b   :  { %v115_v3 = vld [vmem:[%s8260_s0 + $0x2f8] sm:$0xff]  ;;  %v116_v5 = vld [vmem:[%s8260_s0 + $0x300] sm:$0xff]  ;;  %v53_v6 = vld [vmem:[%s8260_s0 + $0x108] sm:$0xff] }
  0x2c   :  { %4037 = vmatmul.mubr.msk.f32.gmra.mrb[20].mxu0 %vm162_vm0, %v30_v23  ;;  %4101 = vmatmul.mubr.msk.f32.gmra.mrb[20].mxu1 %vm162_vm0, %v94_v24  ;;  %v117_v7 = vld [vmem:[%s8260_s0 + $0x308] sm:$0xff]  ;;  %v54_v8 = vld [vmem:[%s8260_s0 + $0x110] sm:$0xff]  ;;  %v55_v10 = vld [vmem:[%s8260_s0 + $0x118] sm:$0xff] }
  0x2d   :  { %677 = vmatprep.mubr.f32.mxu0 %v4696_v2  ;;  %1061 = vmatprep.mubr.f32.mxu1 %v4696_v2  ;;  %v118_v9 = vld [vmem:[%s8260_s0 + $0x310] sm:$0xff]  ;;  %v119_v11 = vld [vmem:[%s8260_s0 + $0x318] sm:$0xff]  ;;  %v56_v12 = vld [vmem:[%s8260_s0 + $0x120] sm:$0xff] }
  0x2e   :  { %v120_v13 = vld [vmem:[%s8260_s0 + $0x320] sm:$0xff]  ;;  %v57_v14 = vld [vmem:[%s8260_s0 + $0x128] sm:$0xff]  ;;  %v58_v16 = vld [vmem:[%s8260_s0 + $0x130] sm:$0xff] }
  0x2f   :  { %v121_v15 = vld [vmem:[%s8260_s0 + $0x328] sm:$0xff]  ;;  %v122_v17 = vld [vmem:[%s8260_s0 + $0x330] sm:$0xff]  ;;  %v59_v18 = vld [vmem:[%s8260_s0 + $0x138] sm:$0xff] }
  0x30   :  { %4038 = vmatmul.mubr.msk.f32.gmra.mrb[22].mxu0 %vm162_vm0, %v31_v25  ;;  %4102 = vmatmul.mubr.msk.f32.gmra.mrb[22].mxu1 %vm162_vm0, %v95_v26  ;;  %v123_v19 = vld [vmem:[%s8260_s0 + $0x338] sm:$0xff]  ;;  %v60_v20 = vld [vmem:[%s8260_s0 + $0x140] sm:$0xff]  ;;  %v61_v22 = vld [vmem:[%s8260_s0 + $0x148] sm:$0xff] }
  0x31   :  { %683 = vmatprep.mubr.f32.mxu0 %v4696_v2  ;;  %1067 = vmatprep.mubr.f32.mxu1 %v4696_v2  ;;  %v124_v21 = vld [vmem:[%s8260_s0 + $0x340] sm:$0xff]  ;;  %v125_v23 = vld [vmem:[%s8260_s0 + $0x348] sm:$0xff]  ;;  %v62_v24 = vld [vmem:[%s8260_s0 + $0x150] sm:$0xff] }
  0x32   :  { %v126_v25 = vld [vmem:[%s8260_s0 + $0x350] sm:$0xff]  ;;  %v63_v26 = vld [vmem:[%s8260_s0 + $0x158] sm:$0xff] }
  0x34   :  { %4039 = vmatmul.mubr.msk.f32.gmra.mrb[24].mxu0 %vm162_vm0, %v32_v27  ;;  %4103 = vmatmul.mubr.msk.f32.gmra.mrb[24].mxu1 %vm162_vm0, %v96_v28  ;;  %v127_v27 = vld [vmem:[%s8260_s0 + $0x358] sm:$0xff]  ;;  %v64_v28 = vld [vmem:[%s8260_s0 + $0x160] sm:$0xff] }
  0x35   :  { %689 = vmatprep.mubr.f32.mxu0 %v4696_v2  ;;  %1073 = vmatprep.mubr.f32.mxu1 %v4696_v2 }
  0x38   :  { %4040 = vmatmul.mubr.msk.f32.gmra.mrb[26].mxu0 %vm162_vm0, %v33_v29  ;;  %4104 = vmatmul.mubr.msk.f32.gmra.mrb[26].mxu1 %vm162_vm0, %v97_v30  ;;  %v128_v29 = vld [vmem:[%s8260_s0 + $0x360] sm:$0xff]  ;;  %v65_v30 = vld [vmem:[%s8260_s0 + $0x168] sm:$0xff] }
  0x39   :  { %695 = vmatprep.mubr.f32.mxu0 %v4696_v2  ;;  %1079 = vmatprep.mubr.f32.mxu1 %v4696_v2 }
  0x3c   :  { %4041 = vmatmul.mubr.msk.f32.gmra.mrb[28].mxu0 %vm162_vm0, %v34_v31  ;;  %4105 = vmatmul.mubr.msk.f32.gmra.mrb[28].mxu1 %vm162_vm0, %v98_v32  ;;  %v129_v31 = vld [vmem:[%s8260_s0 + $0x368] sm:$0xff]  ;;  %v66_v32 = vld [vmem:[%s8260_s0 + $0x170] sm:$0xff] }
  0x3d   :  { %701 = vmatprep.mubr.f32.mxu0 %v4696_v2  ;;  %1085 = vmatprep.mubr.f32.mxu1 %v4696_v2 }
  0x40   :  { %4042 = vmatmul.mubr.msk.f32.gmra.mrb[30].mxu0 %vm162_vm0, %v35_v33  ;;  %4106 = vmatmul.mubr.msk.f32.gmra.mrb[30].mxu1 %vm162_vm0, %v99_v34  ;;  %v130_v33 = vld [vmem:[%s8260_s0 + $0x370] sm:$0xff]  ;;  %v67_v34 = vld [vmem:[%s8260_s0 + $0x178] sm:$0xff] }
  0x41   :  { %707 = vmatprep.mubr.f32.mxu0 %v4696_v2  ;;  %1091 = vmatprep.mubr.f32.mxu1 %v4696_v2 }
  0x44   :  { %4043 = vmatmul.mubr.msk.f32.gmra.mrb[32].mxu0 %vm162_vm0, %v36_v35  ;;  %4107 = vmatmul.mubr.msk.f32.gmra.mrb[32].mxu1 %vm162_vm0, %v100_v36  ;;  %v131_v35 = vld [vmem:[%s8260_s0 + $0x378] sm:$0xff]  ;;  %v68_v36 = vld [vmem:[%s8260_s0 + $0x180] sm:$0xff] }
  0x45   :  { %713 = vmatprep.mubr.f32.mxu0 %v4696_v2  ;;  %1097 = vmatprep.mubr.f32.mxu1 %v4696_v2 }
  0x48   :  { %4044 = vmatmul.mubr.msk.f32.gmra.mrb[34].mxu0 %vm162_vm0, %v37_v37  ;;  %4108 = vmatmul.mubr.msk.f32.gmra.mrb[34].mxu1 %vm162_vm0, %v101_v38  ;;  %v132_v37 = vld [vmem:[%s8260_s0 + $0x380] sm:$0xff]  ;;  %v69_v38 = vld [vmem:[%s8260_s0 + $0x188] sm:$0xff] }
  0x49   :  { %719 = vmatprep.mubr.f32.mxu0 %v4696_v2  ;;  %1103 = vmatprep.mubr.f32.mxu1 %v4696_v2 }
  0x4c   :  { %4045 = vmatmul.mubr.msk.f32.gmra.mrb[36].mxu0 %vm162_vm0, %v38_v39  ;;  %4109 = vmatmul.mubr.msk.f32.gmra.mrb[36].mxu1 %vm162_vm0, %v102_v40  ;;  %v133_v39 = vld [vmem:[%s8260_s0 + $0x388] sm:$0xff]  ;;  %v8264_v40 = vlaneseq }
  0x4d   :  { %725 = vmatprep.mubr.f32.mxu0 %v4696_v2  ;;  %1109 = vmatprep.mubr.f32.mxu1 %v4696_v2 }
  0x50   :  { %4046 = vmatmul.mubr.msk.f32.gmra.mrb[38].mxu0 %vm162_vm0, %v39_v41  ;;  %4110 = vmatmul.mubr.msk.f32.gmra.mrb[38].mxu1 %vm162_vm0, %v103_v42  ;;  %v70_v41 = vld [vmem:[%s8260_s0 + $0x190] sm:$0xff] }
  0x51   :  { %731 = vmatprep.mubr.f32.mxu0 %v4696_v2  ;;  %1115 = vmatprep.mubr.f32.mxu1 %v4696_v2  ;;  %v134_v42 = vld [vmem:[%s8260_s0 + $0x390] sm:$0xff] }
  0x54   :  { %4047 = vmatmul.mubr.msk.f32.gmra.mrb[40].mxu0 %vm162_vm0, %v40_v43  ;;  %4111 = vmatmul.mubr.msk.f32.gmra.mrb[40].mxu1 %vm162_vm0, %v104_v44  ;;  %v5237_v43 = vshrl.u32 %v8264_v40, 7  ;;  %v71_v44 = vld [vmem:[%s8260_s0 + $0x198] sm:$0xff] }
  0x55   :  { %737 = vmatprep.mubr.f32.mxu0 %v4696_v2  ;;  %1121 = vmatprep.mubr.f32.mxu1 %v4696_v2 }
  0x56   :  { %8266 = vst [vmem:[#allocation6_spill] sm:$0xff] %v5237_v43 }
  0x58   :  { %4048 = vmatmul.mubr.msk.f32.gmra.mrb[42].mxu0 %vm162_vm0, %v41_v45  ;;  %4112 = vmatmul.mubr.msk.f32.gmra.mrb[42].mxu1 %vm162_vm0, %v105_v46  ;;  %v135_v45 = vld [vmem:[%s8260_s0 + $0x398] sm:$0xff]  ;;  %v154_v46 = vsub.s32 0, %v5237_v43 }
  0x59   :  { %743 = vmatprep.mubr.f32.mxu0 %v4696_v2  ;;  %1127 = vmatprep.mubr.f32.mxu1 %v4696_v2 }
  0x5c   :  { %4049 = vmatmul.mubr.msk.f32.gmra.mrb[44].mxu0 %vm162_vm0, %v42_v47  ;;  %4113 = vmatmul.mubr.msk.f32.gmra.mrb[44].mxu1 %vm162_vm0, %v106_v48  ;;  %v72_v47 = vld [vmem:[%s8260_s0 + $0x1a0] sm:$0xff] }
  0x5d   :  { %749 = vmatprep.mubr.f32.mxu0 %v4696_v2  ;;  %1133 = vmatprep.mubr.f32.mxu1 %v4696_v2  ;;  %v136_v48 = vld [vmem:[%s8260_s0 + $0x3a0] sm:$0xff] }
  0x60   :  { %4050 = vmatmul.mubr.msk.f32.gmra.mrb[46].mxu0 %vm162_vm0, %v43_v49  ;;  %4114 = vmatmul.mubr.msk.f32.gmra.mrb[46].mxu1 %vm162_vm0, %v107_v50  ;;  %v150_v49 = vld [vmem:[%s8262_s2] sm:$0x3]  ;;  %v158_v50 = vsub.s32 1, %v5237_v43 }
  0x61   :  { %755 = vmatprep.mubr.f32.mxu0 %v4696_v2  ;;  %1139 = vmatprep.mubr.f32.mxu1 %v4696_v2 }
  0x64   :  { %4051 = vmatmul.mubr.msk.f32.gmra.mrb[48].mxu0 %vm162_vm0, %v44_v51  ;;  %4115 = vmatmul.mubr.msk.f32.gmra.mrb[48].mxu1 %vm162_vm0, %v108_v52  ;;  %v5264_v51 = vrot.slane %v150_v49, %v154_v46  ;;  %v5268_v52 = vrot.slane %v150_v49, %v158_v50 }
  0x65   :  { %761 = vmatprep.mubr.f32.mxu0 %v4696_v2  ;;  %1145 = vmatprep.mubr.f32.mxu1 %v4696_v2 }
  0x68   :  { %4052 = vmatmul.mubr.msk.f32.gmra.mrb[50].mxu0 %vm162_vm0, %v45_v53  ;;  %4116 = vmatmul.mubr.msk.f32.gmra.mrb[50].mxu1 %vm162_vm0, %v109_v54  ;;  %v73_v53 = vld [vmem:[%s8260_s0 + $0x1a8] sm:$0xff] }
  0x69   :  { %767 = vmatprep.mubr.f32.mxu0 %v4696_v2  ;;  %1151 = vmatprep.mubr.f32.mxu1 %v4696_v2  ;;  %v137_v54 = vld [vmem:[%s8260_s0 + $0x3a8] sm:$0xff] }
  0x6c   :  { %4053 = vmatmul.mubr.msk.f32.gmra.mrb[52].mxu0 %vm162_vm0, %v46_v55  ;;  %4117 = vmatmul.mubr.msk.f32.gmra.mrb[52].mxu1 %vm162_vm0, %v110_v56 }
  0x6d   :  { %773 = vmatprep.mubr.f32.mxu0 %v4696_v2  ;;  %1157 = vmatprep.mubr.f32.mxu1 %v4696_v2 }
  0x70   :  { %4054 = vmatmul.mubr.msk.f32.gmra.mrb[54].mxu0 %vm162_vm0, %v47_v57  ;;  %4118 = vmatmul.mubr.msk.f32.gmra.mrb[54].mxu1 %vm162_vm0, %v111_v58 }
  0x71   :  { %779 = vmatprep.mubr.f32.mxu0 %v4696_v2  ;;  %1163 = vmatprep.mubr.f32.mxu1 %v4696_v2 }
  0x74   :  { %4055 = vmatmul.mubr.msk.f32.gmra.mrb[56].mxu0 %vm162_vm0, %v48_v59  ;;  %4119 = vmatmul.mubr.msk.f32.gmra.mrb[56].mxu1 %vm162_vm0, %v112_v60 }
  0x75   :  { %785 = vmatprep.mubr.f32.mxu0 %v4696_v2  ;;  %1169 = vmatprep.mubr.f32.mxu1 %v4696_v2 }
  0x78   :  { %4056 = vmatmul.mubr.msk.f32.gmra.mrb[58].mxu0 %vm162_vm0, %v49_v61  ;;  %4120 = vmatmul.mubr.msk.f32.gmra.mrb[58].mxu1 %vm162_vm0, %v113_v62 }
  0x79   :  { %791 = vmatprep.mubr.f32.mxu0 %v4696_v2  ;;  %1175 = vmatprep.mubr.f32.mxu1 %v4696_v2 }
  0x7c   :  { %4057 = vmatmul.mubr.msk.f32.gmra.mrb[60].mxu0 %vm162_vm0, %v50_v63  ;;  %4121 = vmatmul.mubr.msk.f32.gmra.mrb[60].mxu1 %vm162_vm0, %v114_v0  ;;  %v74_v63 = vld [vmem:[%s8260_s0 + $0x1b0] sm:$0xff] }
  0x7d   :  { %797 = vmatprep.mubr.f32.mxu0 %v4696_v2  ;;  %1181 = vmatprep.mubr.f32.mxu1 %v4696_v2 }
  0x80   :  { %4058 = vmatmul.mubr.msk.f32.gmra.mrb[62].mxu0 %vm162_vm0, %v51_v1  ;;  %4122 = vmatmul.mubr.msk.f32.gmra.mrb[62].mxu1 %vm162_vm0, %v115_v3  ;;  %v138_v3 = vld [vmem:[%s8260_s0 + $0x3b0] sm:$0xff] }
  0x81   :  { %803 = vmatprep.mubr.f32.mxu0 %v4696_v2  ;;  %1187 = vmatprep.mubr.f32.mxu1 %v4696_v2 }
  0x84   :  { %4059 = vmatmul.mubr.msk.f32.gmra.mrb[64].mxu0 %vm162_vm0, %v52_v4  ;;  %4123 = vmatmul.mubr.msk.f32.gmra.mrb[64].mxu1 %vm162_vm0, %v116_v5 }
  0x85   :  { %809 = vmatprep.mubr.f32.mxu0 %v4696_v2  ;;  %1193 = vmatprep.mubr.f32.mxu1 %v4696_v2 }
  0x88   :  { %4060 = vmatmul.mubr.msk.f32.gmra.mrb[66].mxu0 %vm162_vm0, %v53_v6  ;;  %4124 = vmatmul.mubr.msk.f32.gmra.mrb[66].mxu1 %vm162_vm0, %v117_v7 }
  0x89   :  { %815 = vmatprep.mubr.f32.mxu0 %v4696_v2  ;;  %1199 = vmatprep.mubr.f32.mxu1 %v4696_v2 }
  0x8c   :  { %4061 = vmatmul.mubr.msk.f32.gmra.mrb[68].mxu0 %vm162_vm0, %v54_v8  ;;  %4125 = vmatmul.mubr.msk.f32.gmra.mrb[68].mxu1 %vm162_vm0, %v118_v9 }
  0x8d   :  { %821 = vmatprep.mubr.f32.mxu0 %v4696_v2  ;;  %1205 = vmatprep.mubr.f32.mxu1 %v4696_v2 }
  0x90   :  { %4062 = vmatmul.mubr.msk.f32.gmra.mrb[70].mxu0 %vm162_vm0, %v55_v10  ;;  %4126 = vmatmul.mubr.msk.f32.gmra.mrb[70].mxu1 %vm162_vm0, %v119_v11 }
  0x91   :  { %827 = vmatprep.mubr.f32.mxu0 %v4696_v2  ;;  %1211 = vmatprep.mubr.f32.mxu1 %v4696_v2 }
  0x94   :  { %4063 = vmatmul.mubr.msk.f32.gmra.mrb[72].mxu0 %vm162_vm0, %v56_v12  ;;  %4127 = vmatmul.mubr.msk.f32.gmra.mrb[72].mxu1 %vm162_vm0, %v120_v13 }
  0x95   :  { %833 = vmatprep.mubr.f32.mxu0 %v4696_v2  ;;  %1217 = vmatprep.mubr.f32.mxu1 %v4696_v2 }
  0x98   :  { %4064 = vmatmul.mubr.msk.f32.gmra.mrb[74].mxu0 %vm162_vm0, %v57_v14  ;;  %4128 = vmatmul.mubr.msk.f32.gmra.mrb[74].mxu1 %vm162_vm0, %v121_v15 }
  0x99   :  { %839 = vmatprep.mubr.f32.mxu0 %v4696_v2  ;;  %1223 = vmatprep.mubr.f32.mxu1 %v4696_v2 }
  0x9c   :  { %4065 = vmatmul.mubr.msk.f32.gmra.mrb[76].mxu0 %vm162_vm0, %v58_v16  ;;  %4129 = vmatmul.mubr.msk.f32.gmra.mrb[76].mxu1 %vm162_vm0, %v122_v17 }
  0x9d   :  { %845 = vmatprep.mubr.f32.mxu0 %v4696_v2  ;;  %1229 = vmatprep.mubr.f32.mxu1 %v4696_v2 }
  0xa0   :  { %4066 = vmatmul.mubr.msk.f32.gmra.mrb[78].mxu0 %vm162_vm0, %v59_v18  ;;  %4130 = vmatmul.mubr.msk.f32.gmra.mrb[78].mxu1 %vm162_vm0, %v123_v19  ;;  %v75_v18 = vld [vmem:[%s8260_s0 + $0x1b8] sm:$0xff] }
  0xa1   :  { %851 = vmatprep.mubr.f32.mxu0 %v4696_v2  ;;  %1235 = vmatprep.mubr.f32.mxu1 %v4696_v2 }
  0xa4   :  { %4067 = vmatmul.mubr.msk.f32.gmra.mrb[80].mxu0 %vm162_vm0, %v60_v20  ;;  %4131 = vmatmul.mubr.msk.f32.gmra.mrb[80].mxu1 %vm162_vm0, %v124_v21 }
  0xa5   :  { %857 = vmatprep.mubr.f32.mxu0 %v4696_v2  ;;  %1241 = vmatprep.mubr.f32.mxu1 %v4696_v2 }
  0xa8   :  { %4068 = vmatmul.mubr.msk.f32.gmra.mrb[82].mxu0 %vm162_vm0, %v61_v22  ;;  %4132 = vmatmul.mubr.msk.f32.gmra.mrb[82].mxu1 %vm162_vm0, %v125_v23  ;;  %v139_v23 = vld [vmem:[%s8260_s0 + $0x3b8] sm:$0xff] }
  0xa9   :  { %863 = vmatprep.mubr.f32.mxu0 %v4696_v2  ;;  %1247 = vmatprep.mubr.f32.mxu1 %v4696_v2 }
  0xac   :  { %4069 = vmatmul.mubr.msk.f32.gmra.mrb[84].mxu0 %vm162_vm0, %v62_v24  ;;  %4133 = vmatmul.mubr.msk.f32.gmra.mrb[84].mxu1 %vm162_vm0, %v126_v25 }
  0xad   :  { %869 = vmatprep.mubr.f32.mxu0 %v4696_v2  ;;  %1253 = vmatprep.mubr.f32.mxu1 %v4696_v2 }
  0xb0   :  { %4070 = vmatmul.mubr.msk.f32.gmra.mrb[86].mxu0 %vm162_vm0, %v63_v26  ;;  %4134 = vmatmul.mubr.msk.f32.gmra.mrb[86].mxu1 %vm162_vm0, %v127_v27 }
  0xb1   :  { %875 = vmatprep.mubr.f32.mxu0 %v4696_v2  ;;  %1259 = vmatprep.mubr.f32.mxu1 %v4696_v2 }
  0xb4   :  { %4071 = vmatmul.mubr.msk.f32.gmra.mrb[88].mxu0 %vm162_vm0, %v64_v28  ;;  %4135 = vmatmul.mubr.msk.f32.gmra.mrb[88].mxu1 %vm162_vm0, %v128_v29 }
  0xb5   :  { %881 = vmatprep.mubr.f32.mxu0 %v4696_v2  ;;  %1265 = vmatprep.mubr.f32.mxu1 %v4696_v2 }
  0xb8   :  { %4072 = vmatmul.mubr.msk.f32.gmra.mrb[90].mxu0 %vm162_vm0, %v65_v30  ;;  %4136 = vmatmul.mubr.msk.f32.gmra.mrb[90].mxu1 %vm162_vm0, %v129_v31 }
  0xb9   :  { %887 = vmatprep.mubr.f32.mxu0 %v4696_v2  ;;  %1271 = vmatprep.mubr.f32.mxu1 %v4696_v2 }
  0xbc   :  { %4073 = vmatmul.mubr.msk.f32.gmra.mrb[92].mxu0 %vm162_vm0, %v66_v32  ;;  %4137 = vmatmul.mubr.msk.f32.gmra.mrb[92].mxu1 %vm162_vm0, %v130_v33 }
  0xbd   :  { %893 = vmatprep.mubr.f32.mxu0 %v4696_v2  ;;  %1277 = vmatprep.mubr.f32.mxu1 %v4696_v2 }
  0xc0   :  { %4074 = vmatmul.mubr.msk.f32.gmra.mrb[94].mxu0 %vm162_vm0, %v67_v34  ;;  %4138 = vmatmul.mubr.msk.f32.gmra.mrb[94].mxu1 %vm162_vm0, %v131_v35 }
  0xc1   :  { %899 = vmatprep.mubr.f32.mxu0 %v4696_v2  ;;  %1283 = vmatprep.mubr.f32.mxu1 %v4696_v2 }
  0xc4   :  { %4075 = vmatmul.mubr.msk.f32.gmra.mrb[96].mxu0 %vm162_vm0, %v68_v36  ;;  %4139 = vmatmul.mubr.msk.f32.gmra.mrb[96].mxu1 %vm162_vm0, %v132_v37 }
  0xc5   :  { %905 = vmatprep.mubr.f32.mxu0 %v4696_v2  ;;  %1289 = vmatprep.mubr.f32.mxu1 %v4696_v2 }
  0xc8   :  { %4076 = vmatmul.mubr.msk.f32.gmra.mrb[98].mxu0 %vm162_vm0, %v69_v38  ;;  %4140 = vmatmul.mubr.msk.f32.gmra.mrb[98].mxu1 %vm162_vm0, %v133_v39 }
  0xc9   :  { %911 = vmatprep.mubr.f32.mxu0 %v4696_v2  ;;  %1295 = vmatprep.mubr.f32.mxu1 %v4696_v2 }
  0xcc   :  { %4077 = vmatmul.mubr.msk.f32.gmra.mrb[100].mxu0 %vm162_vm0, %v70_v41  ;;  %4141 = vmatmul.mubr.msk.f32.gmra.mrb[100].mxu1 %vm162_vm0, %v134_v42  ;;  %v76_v41 = vld [vmem:[%s8260_s0 + $0x1c0] sm:$0xff] }
  0xcd   :  { %917 = vmatprep.mubr.f32.mxu0 %v4696_v2  ;;  %1301 = vmatprep.mubr.f32.mxu1 %v4696_v2  ;;  %v140_v42 = vld [vmem:[%s8260_s0 + $0x3c0] sm:$0xff] }
  0xd0   :  { %4078 = vmatmul.mubr.msk.f32.gmra.mrb[102].mxu0 %vm162_vm0, %v71_v44  ;;  %4142 = vmatmul.mubr.msk.f32.gmra.mrb[102].mxu1 %vm162_vm0, %v135_v45 }
  0xd1   :  { %923 = vmatprep.mubr.f32.mxu0 %v4696_v2  ;;  %1307 = vmatprep.mubr.f32.mxu1 %v4696_v2 }
  0xd4   :  { %4079 = vmatmul.mubr.msk.f32.gmra.mrb[104].mxu0 %vm162_vm0, %v72_v47  ;;  %4143 = vmatmul.mubr.msk.f32.gmra.mrb[104].mxu1 %vm162_vm0, %v136_v48 }
  0xd5   :  { %929 = vmatprep.mubr.f32.mxu0 %v4696_v2  ;;  %1313 = vmatprep.mubr.f32.mxu1 %v4696_v2 }
  0xd7   :  { %v613_v55 = vpop.f32.mrb[0].mxu0  ;;  %v997_v56 = vpop.f32.mrb[0].mxu1 }
  0xd8   :  { %v614_v57 = vadd.f32 %v613_v55, %v5264_v51  ;;  %v998_v58 = vadd.f32 %v997_v56, %v5264_v51  ;;  %v615_v59 = vpop.f32.mrb[1].mxu0  ;;  %4080 = vmatmul.mubr.msk.f32.gmra.mrb[106].mxu0 %vm162_vm0, %v73_v53  ;;  %v999_v60 = vpop.f32.mrb[1].mxu1  ;;  %4144 = vmatmul.mubr.msk.f32.gmra.mrb[106].mxu1 %vm162_vm0, %v137_v54 }
  0xd9   :  { %v616_v61 = vadd.f32 %v615_v59, %v5268_v52  ;;  %v1000_v62 = vadd.f32 %v999_v60, %v5268_v52  ;;  %935 = vmatprep.mubr.f32.mxu0 %v4696_v2  ;;  %1319 = vmatprep.mubr.f32.mxu1 %v4696_v2 }
  0xda   :  { %v1380_v0 = vmul.f32 %v614_v57, %v614_v57  ;;  %v1508_v1 = vmul.f32 %v998_v58, %v998_v58  ;;  %v5297_v14 = vmul.f32 0.5, %v614_v57  ;;  %v5306_v20 = vmul.f32 0.5, %v998_v58 }
  0xdb   :  { %v1381_v4 = vmul.f32 %v616_v61, %v616_v61  ;;  %v1509_v5 = vmul.f32 %v1000_v62, %v1000_v62  ;;  %v619_v6 = vpop.f32.mrb[2].mxu0  ;;  %v1003_v7 = vpop.f32.mrb[2].mxu1  ;;  %v5326_v35 = vmul.f32 0.5, %v616_v61  ;;  %v5341_v54 = vmul.f32 0.5, %v1000_v62 }
  0xdc   :  { %v1636_v8 = vmul.f32 %v1380_v0, %v614_v57  ;;  %v1764_v9 = vmul.f32 %v1508_v1, %v998_v58  ;;  %v5291_v10 = vadd.f32 %v619_v6, %v5264_v51  ;;  %v5294_v11 = vadd.f32 %v1003_v7, %v5264_v51  ;;  %v621_v12 = vpop.f32.mrb[3].mxu0  ;;  %4081 = vmatmul.mubr.msk.f32.gmra.mrb[108].mxu0 %vm162_vm0, %v74_v63  ;;  %v1005_v13 = vpop.f32.mrb[3].mxu1 }
  0xdd   :  { %v1637_v15 = vmul.f32 %v1381_v4, %v616_v61  ;;  %v1765_v16 = vmul.f32 %v1509_v5, %v1000_v62  ;;  %v5300_v17 = vadd.f32 %v621_v12, %v5268_v52  ;;  %4145 = vmatmul.mubr.msk.f32.gmra.mrb[108].mxu1 %vm162_vm0, %v138_v3  ;;  %941 = vmatprep.mubr.f32.mxu0 %v4696_v2  ;;  %v141_v5 = vld [vmem:[%s8260_s0 + $0x3c8] sm:$0xff] }
  0xde   :  { %v2148_v19 = vmul.f32 0.044715, %v1636_v8  ;;  %v2276_v21 = vmul.f32 0.044715, %v1764_v9  ;;  %v1382_v22 = vmul.f32 %v5291_v10, %v5291_v10  ;;  %1325 = vmatprep.mubr.f32.mxu1 %v4696_v2  ;;  %v1510_v26 = vmul.f32 %v5294_v11, %v5294_v11 }
  0xdf   :  { %v2149_v24 = vmul.f32 0.044715, %v1637_v15  ;;  %v2277_v25 = vmul.f32 0.044715, %v1765_v16  ;;  %v5318_v27 = vadd.f32 %v1005_v13, %v5268_v52  ;;  %v625_v28 = vpop.f32.mrb[4].mxu0  ;;  %v1383_v32 = vmul.f32 %v5300_v17, %v5300_v17  ;;  %v1009_v33 = vpop.f32.mrb[4].mxu1 }
  0xe0   :  { %v2404_v29 = vadd.f32 %v2148_v19, %v614_v57  ;;  %v2532_v30 = vadd.f32 %v2276_v21, %v998_v58  ;;  %v1638_v31 = vmul.f32 %v1382_v22, %v5291_v10  ;;  %v5323_v34 = vpop.f32.mrb[5].mxu0  ;;  %4082 = vmatmul.mubr.msk.f32.gmra.mrb[110].mxu0 %vm162_vm0, %v75_v18  ;;  %v1766_v38 = vmul.f32 %v1510_v26, %v5294_v11  ;;  %v1011_v39 = vpop.f32.mrb[5].mxu1  ;;  %v142_v26 = vld [vmem:[%s8260_s0 + $0x3d0] sm:$0xff] }
  0xe1   :  { %v2405_v36 = vadd.f32 %v2149_v24, %v616_v61  ;;  %v2533_v37 = vadd.f32 %v2277_v25, %v1000_v62  ;;  %4146 = vmatmul.mubr.msk.f32.gmra.mrb[110].mxu1 %vm162_vm0, %v139_v23  ;;  %947 = vmatprep.mubr.f32.mxu0 %v4696_v2  ;;  %v1639_v47 = vmul.f32 %v1383_v32, %v5300_v17  ;;  %v77_v62 = vld [vmem:[%s8260_s0 + $0x1c8] sm:$0xff]  ;;  %v5374_v13 = vmul.f32 0.5, %v5291_v10  ;;  %v78_v23 = vld [vmem:[%s8260_s0 + $0x1d0] sm:$0xff] }
  0xe2   :  { %v2660_v44 = vmul.f32 0.7978846, %v2404_v29  ;;  %v2788_v45 = vmul.f32 0.7978846, %v2532_v30  ;;  %v2150_v46 = vmul.f32 0.044715, %v1638_v31  ;;  %1331 = vmatprep.mubr.f32.mxu1 %v4696_v2  ;;  %v1511_v53 = vmul.f32 %v5318_v27, %v5318_v27 }
  0xe3   :  { %v2661_v48 = vmul.f32 0.7978846, %v2405_v36  ;;  %v2789_v49 = vmul.f32 0.7978846, %v2533_v37  ;;  %v2278_v50 = vmul.f32 0.044715, %v1766_v38  ;;  %v5348_v61 = vadd.f32 %v625_v28, %v5264_v51 }
  0xe4   :  { %4160 = vtanh.f32 %v2660_v44  ;;  %v2406_v55 = vadd.f32 %v2150_v46, %v5291_v10  ;;  %v2151_v56 = vmul.f32 0.044715, %v1639_v47  ;;  %v631_v57 = vpop.f32.mrb[6].mxu0  ;;  %v1015_v58 = vpop.f32.mrb[6].mxu1  ;;  %4083 = vmatmul.mubr.msk.f32.gmra.mrb[112].mxu0 %vm162_vm0, %v76_v41  ;;  %v1767_v60 = vmul.f32 %v1511_v53, %v5318_v27 }
  0xe5   :  { %4162 = vtanh.f32 %v2788_v45  ;;  %v2534_v59 = vadd.f32 %v2278_v50, %v5294_v11  ;;  %v5350_v63 = vpop.f32.mrb[7].mxu0  ;;  %v5352_v0 = vpop.f32.mrb[7].mxu1  ;;  %4147 = vmatmul.mubr.msk.f32.gmra.mrb[112].mxu1 %vm162_vm0, %v140_v42  ;;  %953 = vmatprep.mubr.f32.mxu0 %v4696_v2  ;;  %v5361_v4 = vadd.f32 %v1009_v33, %v5264_v51  ;;  %v1384_v8 = vmul.f32 %v5348_v61, %v5348_v61  ;;  %v79_v45 = vld [vmem:[%s8260_s0 + $0x1d8] sm:$0xff] }
  0xe6   :  { %4164 = vtanh.f32 %v2661_v48  ;;  %v2662_v1 = vmul.f32 0.7978846, %v2406_v55  ;;  %v2407_v3 = vadd.f32 %v2151_v56, %v5300_v17  ;;  %1337 = vmatprep.mubr.f32.mxu1 %v4696_v2  ;;  %v2279_v7 = vmul.f32 0.044715, %v1767_v60  ;;  %v143_v50 = vld [vmem:[%s8260_s0 + $0x3d8] sm:$0xff] }
  0xe7   :  { %4166 = vtanh.f32 %v2789_v49  ;;  %v2790_v6 = vmul.f32 0.7978846, %v2534_v59  ;;  %v5369_v9 = vpop.f32.mrb[8].mxu0  ;;  %v5371_v12 = vpop.f32.mrb[8].mxu1  ;;  %v1512_v16 = vmul.f32 %v5361_v4, %v5361_v4  ;;  %v5384_v21 = vmul.f32 0.5, %v5294_v11 }
  0xe8   :  { %4168 = vtanh.f32 %v2662_v1  ;;  %v2663_v15 = vmul.f32 0.7978846, %v2407_v3  ;;  %v5378_v18 = vpop.f32.mrb[9].mxu0  ;;  %4084 = vmatmul.mubr.msk.f32.gmra.mrb[114].mxu0 %vm162_vm0, %v77_v62  ;;  %v5381_v19 = vpop.f32.mrb[9].mxu1  ;;  %v2535_v22 = vadd.f32 %v2279_v7, %v5318_v27  ;;  %v1640_v10 = vmul.f32 %v1384_v8, %v5348_v61 }
  0xe9   :  { %4170 = vtanh.f32 %v2790_v6  ;;  %4148 = vmatmul.mubr.msk.f32.gmra.mrb[114].mxu1 %vm162_vm0, %v141_v5  ;;  %959 = vmatprep.mubr.f32.mxu0 %v4696_v2  ;;  %v1768_v24 = vmul.f32 %v1512_v16, %v5361_v4  ;;  %v5396_v11 = vadd.f32 %v5323_v34, %v5268_v52  ;;  %v5399_v25 = vadd.f32 %v1011_v39, %v5268_v52 }
  0xea   :  { %4172 = vtanh.f32 %v2663_v15  ;;  %1343 = vmatprep.mubr.f32.mxu1 %v4696_v2  ;;  %v2791_v28 = vmul.f32 0.7978846, %v2535_v22  ;;  %v2152_v29 = vmul.f32 0.044715, %v1640_v10  ;;  %v5406_v30 = vadd.f32 %v631_v57, %v5264_v51 }
  0xeb   :  { %v5408_v31 = vpop.f32.mrb[10].mxu0  ;;  %v5410_v32 = vpop.f32.mrb[10].mxu1  ;;  %v2280_v33 = vmul.f32 0.044715, %v1768_v24  ;;  %v1385_v34 = vmul.f32 %v5396_v11, %v5396_v11  ;;  %v1513_v36 = vmul.f32 %v5399_v25, %v5399_v25  ;;  %v5417_v37 = vadd.f32 %v1015_v58, %v5264_v51 }
  0xec   :  { %v5419_v38 = vpop.f32.mrb[11].mxu0  ;;  %4085 = vmatmul.mubr.msk.f32.gmra.mrb[116].mxu0 %vm162_vm0, %v78_v23  ;;  %v5422_v39 = vpop.f32.mrb[11].mxu1  ;;  %v5425_v41 = vmul.f32 0.5, %v5300_v17  ;;  %4174 = vtanh.f32 %v2791_v28  ;;  %v2408_v42 = vadd.f32 %v2152_v29, %v5348_v61  ;;  %v1386_v44 = vmul.f32 %v5406_v30, %v5406_v30 }
  0xed   :  { %4149 = vmatmul.mubr.msk.f32.gmra.mrb[116].mxu1 %vm162_vm0, %v142_v26  ;;  %965 = vmatprep.mubr.f32.mxu0 %v4696_v2  ;;  %v5436_v47 = vmul.f32 0.5, %v5318_v27  ;;  %v2536_v17 = vadd.f32 %v2280_v33, %v5361_v4  ;;  %v1641_v48 = vmul.f32 %v1385_v34, %v5396_v11  ;;  %v1769_v49 = vmul.f32 %v1513_v36, %v5399_v25 }
  0xee   :  { %v4161_v46 = vpop.eup %4160  ;;  %1349 = vmatprep.mubr.f32.mxu1 %v4696_v2  ;;  %v5446_v56 = vmul.f32 0.5, %v5348_v61  ;;  %v2664_v57 = vmul.f32 0.7978846, %v2408_v42  ;;  %v1642_v27 = vmul.f32 %v1386_v44, %v5406_v30  ;;  %v1514_v5 = vmul.f32 %v5417_v37, %v5417_v37  ;;  %v80_v61 = vld [vmem:[%s8260_s0 + $0x1e0] sm:$0xff] }
  0xef   :  { %v4163_v53 = vpop.eup %4162  ;;  %v3172_v55 = vadd.f32 1.0, %v4161_v46  ;;  %v5449_v58 = vpop.f32.mrb[12].mxu0  ;;  %v2792_v1 = vmul.f32 0.7978846, %v2536_v17  ;;  %v2153_v3 = vmul.f32 0.044715, %v1641_v48 }
  0xf0   :  { %v5451_v59 = vpop.f32.mrb[12].mxu1  ;;  %v4165_v60 = vpop.eup %4164  ;;  %v3300_v62 = vadd.f32 1.0, %v4163_v53  ;;  %4086 = vmatmul.mubr.msk.f32.gmra.mrb[118].mxu0 %vm162_vm0, %v79_v45  ;;  %4176 = vtanh.f32 %v2664_v57  ;;  %v5460_v8 = vmul.f32 0.5, %v5361_v4  ;;  %v2281_v15 = vmul.f32 0.044715, %v1769_v49  ;;  %v144_v4 = vld [vmem:[%s8260_s0 + $0x3e0] sm:$0xff] }
  0xf1   :  { %v4167_v6 = vpop.eup %4166  ;;  %v3173_v7 = vadd.f32 1.0, %v4165_v60  ;;  %v5462_v16 = vpop.f32.mrb[13].mxu0  ;;  %4150 = vmatmul.mubr.msk.f32.gmra.mrb[118].mxu1 %vm162_vm0, %v143_v50  ;;  %971 = vmatprep.mubr.f32.mxu0 %v4696_v2  ;;  %v3428_v23 = vmul.f32 %v3172_v55, %v5297_v14  ;;  %4178 = vtanh.f32 %v2792_v1  ;;  %v2409_v26 = vadd.f32 %v2153_v3, %v5396_v11 }
  0xf2   :  { %v5464_v22 = vpop.f32.mrb[13].mxu1  ;;  %v4169_v10 = vpop.eup %4168  ;;  %v3556_v24 = vmul.f32 %v3300_v62, %v5306_v20  ;;  %1355 = vmatprep.mubr.f32.mxu1 %v4696_v2  ;;  %v3301_v29 = vadd.f32 1.0, %v4167_v6  ;;  %v2537_v34 = vadd.f32 %v2281_v15, %v5399_v25  ;;  %v2154_v36 = vmul.f32 0.044715, %v1642_v27 }
  0xf3   :  { %v4171_v28 = vpop.eup %4170  ;;  %v3174_v33 = vadd.f32 1.0, %v4169_v10  ;;  %v5476_v42 = vpop.f32.mrb[14].mxu0  ;;  %v3429_v44 = vmul.f32 %v3173_v7, %v5326_v35  ;;  %v2665_v46 = vmul.f32 0.7978846, %v2409_v26  ;;  %v1770_v17 = vmul.f32 %v1514_v5, %v5417_v37  ;;  %v81_v35 = vld [vmem:[%s8260_s0 + $0x1e8] sm:$0xff] }
  0xf4   :  { %v5478_v14 = vpop.f32.mrb[14].mxu1  ;;  %v4173_v20 = vpop.eup %4172  ;;  %v3302_v45 = vadd.f32 1.0, %v4171_v28  ;;  %4087 = vmatmul.mubr.msk.f32.gmra.mrb[120].mxu0 %vm162_vm0, %v80_v61  ;;  %v2793_v55 = vmul.f32 0.7978846, %v2537_v34  ;;  %v2410_v57 = vadd.f32 %v2154_v36, %v5406_v30  ;;  %v5497_v62 = vadd.f32 %v5350_v63, %v5268_v52  ;;  %v82_v28 = vld [vmem:[%s8260_s0 + $0x1f0] sm:$0xff] }
  0xf5   :  { %v5482_v48 = vpop.f32.mrb[15].mxu0  ;;  %v5485_v49 = vpop.f32.mrb[15].mxu1  ;;  %v3430_v50 = vmul.f32 %v3174_v33, %v5374_v13  ;;  %v3175_v53 = vadd.f32 1.0, %v4173_v20  ;;  %4151 = vmatmul.mubr.msk.f32.gmra.mrb[120].mxu1 %vm162_vm0, %v144_v4  ;;  %977 = vmatprep.mubr.f32.mxu0 %v4696_v2  ;;  %4180 = vtanh.f32 %v2665_v46  ;;  %v2282_v60 = vmul.f32 0.044715, %v1770_v17  ;;  %v145_v13 = vld [vmem:[%s8260_s0 + $0x3e8] sm:$0xff] }
  0xf6   :  { %v3558_v27 = vmul.f32 %v3302_v45, %v5384_v21  ;;  %1361 = vmatprep.mubr.f32.mxu1 %v4696_v2  ;;  %v4175_v1 = vpop.eup %4174  ;;  %4182 = vtanh.f32 %v2793_v55  ;;  %v2666_v61 = vmul.f32 0.7978846, %v2410_v57  ;;  %v1387_v10 = vmul.f32 %v5497_v62, %v5497_v62 }
  0xf7   :  { %v3685_v3 = vadd.f32 %v3430_v50, %v3428_v23  ;;  %v3431_v5 = vmul.f32 %v3175_v53, %v5425_v41  ;;  %v5504_v6 = vpop.f32.mrb[16].mxu0  ;;  %v5506_v21 = vpop.f32.mrb[16].mxu1  ;;  %v3303_v63 = vadd.f32 1.0, %v4175_v1  ;;  %v2538_v15 = vadd.f32 %v2282_v60, %v5417_v37  ;;  %v83_v60 = vld [vmem:[%s8260_s0 + $0x1f8] sm:$0xff] }
  0xf8   :  { %v5508_v7 = vadd.f32 %v3558_v27, %v3556_v24  ;;  %v5513_v26 = vpop.f32.mrb[17].mxu0  ;;  %4088 = vmatmul.mubr.msk.f32.gmra.mrb[122].mxu0 %vm162_vm0, %v81_v35  ;;  %v5516_v23 = vpop.f32.mrb[17].mxu1  ;;  %v3557_v41 = vmul.f32 %v3301_v29, %v5341_v54  ;;  %4184 = vtanh.f32 %v2666_v61  ;;  %v5523_v24 = vadd.f32 %v5352_v0, %v5268_v52  ;;  %v146_v0 = vld [vmem:[%s8260_s0 + $0x3f0] sm:$0xff]  ;;  %v147_v61 = vld [vmem:[%s8260_s0 + $0x3f8] sm:$0xff]  ;;  %s4698_s0 = smov [#allocation3]  }
  0xf9   :  { %v5519_v4 = vadd.f32 %v3431_v5, %v3429_v44  ;;  %4152 = vmatmul.mubr.msk.f32.gmra.mrb[122].mxu1 %vm162_vm0, %v145_v13  ;;  %983 = vmatprep.mubr.f32.mxu0 %v4696_v2  ;;  %v3559_v33 = vmul.f32 %v3303_v63, %v5436_v47  ;;  %v2794_v34 = vmul.f32 0.7978846, %v2538_v15  ;;  %v1643_v54 = vmul.f32 %v1387_v10, %v5497_v62  ;;  %s4019_s1 = sshll.u32 %s4698_s0, 4  ;;  %s4020_s1 = int_to_ptr.vmem [resolvable:$true] %s4019_s1 }
  0xfa   :  { %v5534_v29 = vadd.f32 %v5369_v9, %v5264_v51  ;;  %1367 = vmatprep.mubr.f32.mxu1 %v4696_v2  ;;  %v4177_v36 = vpop.eup %4176  ;;  %v1897_v20 = vmul.f32 0.5, %v5396_v11  ;;  %v1515_v44 = vmul.f32 %v5523_v24, %v5523_v24  ;;  %v5545_v47 = vadd.f32 %v5371_v12, %v5264_v51  ;;  %s4672_s20 = scalar_lea.vmem %s4020_s1, 64  ;;  %p4677_p1 = scmp.lt.s32.totalorder %s4020_s1, %s4020_s1 }
  0xfb   :  { %v5549_v9 = vadd.f32 %v5378_v18, %v5268_v52  ;;  %v5551_v45 = vpop.f32.mrb[18].mxu0  ;;  %v5553_v46 = vpop.f32.mrb[18].mxu1  ;;  %v3918_v50 = vadd.f32 %v3559_v33, %v3557_v41  ;;  %v3176_v53 = vadd.f32 1.0, %v4177_v36  ;;  %4186 = vtanh.f32 %v2794_v34  ;;  %p4673_p0 = scmp.ne.s32.totalorder %s4020_s1, %s4672_s20  ;;  %p4678_p2 = scmp.lt.s32.totalorder %s4672_s20, %s4672_s20 }
  0xfc   :  { %v4179_v17 = vpop.eup %4178  ;;  %v2155_v11 = vmul.f32 0.044715, %v1643_v54  ;;  %v5555_v55 = vpop.f32.mrb[19].mxu0  ;;  %4089 = vmatmul.mubr.msk.f32.gmra.mrb[124].mxu0 %vm162_vm0, %v82_v28  ;;  %v2025_v35 = vmul.f32 0.5, %v5399_v25  ;;  %v1771_v18 = vmul.f32 %v1515_v44, %v5523_v24  ;;  %v1388_v27 = vmul.f32 %v5534_v29, %v5534_v29 }
  0xfd   :  { %v5558_v57 = vpop.f32.mrb[19].mxu1  ;;  %v3304_v12 = vadd.f32 1.0, %v4179_v17  ;;  %4153 = vmatmul.mubr.msk.f32.gmra.mrb[124].mxu1 %vm162_vm0, %v146_v0  ;;  %989 = vmatprep.mubr.f32.mxu0 %v4696_v2  ;;  %v3432_v13 = vmul.f32 %v3176_v53, %v5446_v56  ;;  %v1898_v1 = vmul.f32 0.5, %v5406_v30  ;;  %v1516_v25 = vmul.f32 %v5545_v47, %v5545_v47  ;;  %p4679_p3 = por %p4678_p2, %p4677_p1 }
  0xfe   :  { %v2411_v5 = vadd.f32 %v2155_v11, %v5497_v62  ;;  %1373 = vmatprep.mubr.f32.mxu1 %v4696_v2  ;;  %v2283_v15 = vmul.f32 0.044715, %v1771_v18  ;;  %v1644_v10 = vmul.f32 %v1388_v27, %v5534_v29  ;;  %v1389_v56 = vmul.f32 %v5549_v9, %v5549_v9 }
  0xff   :  { %v3560_v63 = vmul.f32 %v3304_v12, %v5460_v8  ;;  %v5582_v30 = vpop.f32.mrb[20].mxu0  ;;  %v5584_v41 = vpop.f32.mrb[20].mxu1  ;;  %v3686_v33 = vadd.f32 %v3685_v3, %v3432_v13  ;;  %v2026_v2 = vmul.f32 0.5, %v5417_v37  ;;  %v1772_v54 = vmul.f32 %v1516_v25, %v5545_v47  ;;  %p4680_p4 = pnand %p4679_p3, %p4673_p0 }
 0x100   :  { %v4181_v28 = vpop.eup %4180  ;;  %v2667_v34 = vmul.f32 0.7978846, %v2411_v5  ;;  %v5588_v0 = vpop.f32.mrb[21].mxu0  ;;  %4090 = vmatmul.mubr.msk.f32.gmra.mrb[126].mxu0 %vm162_vm0, %v83_v60  ;;  %v2539_v53 = vadd.f32 %v2283_v15, %v5523_v24  ;;  %v2156_v11 = vmul.f32 0.044715, %v1644_v10  ;;  %v1645_v12 = vmul.f32 %v1389_v56, %v5549_v9 }
 0x101   :  { %v5591_v8 = vpop.f32.mrb[21].mxu1  ;;  %v4183_v36 = vpop.eup %4182  ;;  %v3850_v44 = vadd.f32 %v5508_v7, %v3560_v63  ;;  %v3177_v17 = vadd.f32 1.0, %v4181_v28  ;;  %4154 = vmatmul.mubr.msk.f32.gmra.mrb[126].mxu1 %vm162_vm0, %v147_v61  ;;  %v2284_v37 = vmul.f32 0.044715, %v1772_v54  ;;  %v1024_v5 = vadd.f32 %v5381_v19, %v5268_v52 }
 0x102   :  { %v3305_v3 = vadd.f32 1.0, %v4183_v36  ;;  %4188 = vtanh.f32 %v2667_v34  ;;  %v4185_v18 = vpop.eup %4184  ;;  %v2795_v13 = vmul.f32 0.7978846, %v2539_v53  ;;  %v2412_v60 = vadd.f32 %v2156_v11, %v5534_v29 }
 0x103   :  { %v3433_v27 = vmul.f32 %v3177_v17, %v1897_v20  ;;  %v5600_v7 = vpop.f32.mrb[22].mxu0  ;;  %v5602_v25 = vpop.f32.mrb[22].mxu1  ;;  %v3178_v15 = vadd.f32 1.0, %v4185_v18  ;;  %v2540_v61 = vadd.f32 %v2284_v37, %v5545_v47  ;;  %v2157_v10 = vmul.f32 0.044715, %v1645_v12 }
 0x104   :  { %v3561_v63 = vmul.f32 %v3305_v3, %v2025_v35  ;;  %v5605_v28 = vpop.f32.mrb[23].mxu0  ;;  %v5607_v56 = vpop.f32.mrb[23].mxu1  ;;  %4190 = vtanh.f32 %v2795_v13  ;;  %v2668_v34 = vmul.f32 0.7978846, %v2412_v60  ;;  %v1517_v54 = vmul.f32 %v1024_v5, %v1024_v5 }
 0x105   :  { %v5610_v20 = vadd.f32 %v5519_v4, %v3433_v27  ;;  %v4187_v19 = vpop.eup %4186  ;;  %v3434_v17 = vmul.f32 %v3178_v15, %v1898_v1  ;;  %v2796_v53 = vmul.f32 0.7978846, %v2540_v61  ;;  %v2413_v35 = vadd.f32 %v2157_v10, %v5549_v9 }
 0x106   :  { %v5612_v36 = vadd.f32 %v3918_v50, %v3561_v63  ;;  %v3306_v11 = vadd.f32 1.0, %v4187_v19  ;;  %v1899_v3 = vmul.f32 0.5, %v5497_v62  ;;  %4192 = vtanh.f32 %v2668_v34 }
 0x107   :  { %v1773_v37 = vmul.f32 %v1517_v54, %v1024_v5  ;;  %v5616_v12 = vpop.f32.mrb[24].mxu0  ;;  %v5618_v18 = vpop.f32.mrb[24].mxu1  ;;  %v5620_v4 = vadd.f32 %v3686_v33, %v3434_v17  ;;  %4194 = vtanh.f32 %v2796_v53  ;;  %v2669_v27 = vmul.f32 0.7978846, %v2413_v35 }
 0x108   :  { %v5624_v50 = vadd.f32 %v5408_v31, %v5264_v51  ;;  %v5626_v1 = vpop.f32.mrb[25].mxu0  ;;  %v5628_v13 = vpop.f32.mrb[25].mxu1  ;;  %v3562_v60 = vmul.f32 %v3306_v11, %v2026_v2  ;;  %v5632_v63 = vadd.f32 %v5410_v32, %v5264_v51  ;;  %v5636_v33 = vadd.f32 %v5419_v38, %v5268_v52 }
 0x109   :  { %v2285_v62 = vmul.f32 0.044715, %v1773_v37  ;;  %v2027_v15 = vmul.f32 0.5, %v5523_v24  ;;  %4196 = vtanh.f32 %v2669_v27  ;;  %v5643_v61 = vadd.f32 %v5422_v39, %v5268_v52 }
 0x10a   :  { %v1390_v31 = vmul.f32 %v5624_v50, %v5624_v50  ;;  %v5645_v2 = vadd.f32 %v3850_v44, %v3562_v60  ;;  %v1900_v10 = vmul.f32 0.5, %v5534_v29  ;;  %v1518_v34 = vmul.f32 %v5632_v63, %v5632_v63 }
 0x10b   :  { %v2541_v32 = vadd.f32 %v2285_v62, %v1024_v5  ;;  %v5650_v38 = vpop.f32.mrb[26].mxu0  ;;  %v5652_v54 = vpop.f32.mrb[26].mxu1  ;;  %v2028_v19 = vmul.f32 0.5, %v5545_v47  ;;  %v1391_v39 = vmul.f32 %v5636_v33, %v5636_v33  ;;  %v1519_v44 = vmul.f32 %v5643_v61, %v5643_v61 }
 0x10c   :  { %8267 = vst [vmem:[#allocation7_spill] sm:$0xff] %v5650_v38  ;;  %8268 = vst [vmem:[#allocation8_spill] sm:$0xff] %v5652_v54  ;;  %v4189_v24 = vpop.eup %4188  ;;  %v1646_v17 = vmul.f32 %v1390_v31, %v5624_v50  ;;  %v5660_v29 = vpop.f32.mrb[27].mxu0  ;;  %v1901_v11 = vmul.f32 0.5, %v5549_v9  ;;  %v1774_v27 = vmul.f32 %v1518_v34, %v5632_v63  ;;  %v5670_v31 = vadd.f32 %v5449_v58, %v5264_v51 }
 0x10d   :  { %8269 = vst [vmem:[#allocation9_spill] sm:$0xff] %v5660_v29  ;;  %v5662_v53 = vpop.f32.mrb[27].mxu1  ;;  %v3179_v35 = vadd.f32 1.0, %v4189_v24  ;;  %v2797_v37 = vmul.f32 0.7978846, %v2541_v32  ;;  %v1647_v47 = vmul.f32 %v1391_v39, %v5636_v33  ;;  %v1775_v62 = vmul.f32 %v1519_v44, %v5643_v61 }
 0x10e   :  { %8270 = vst [vmem:[#allocation10_spill] sm:$0xff] %v5662_v53  ;;  %v2158_v60 = vmul.f32 0.044715, %v1646_v17  ;;  %v4191_v40 = vpop.eup %4190  ;;  %v5672_v29 = vmul.f32 0.5, %v1024_v5  ;;  %v2286_v24 = vmul.f32 0.044715, %v1774_v27  ;;  %v1392_v5 = vmul.f32 %v5670_v31, %v5670_v31 }
 0x10f   :  { %v3435_v43 = vmul.f32 %v3179_v35, %v1899_v3  ;;  %4198 = vtanh.f32 %v2797_v37  ;;  %v5674_v53 = vpop.f32.mrb[28].mxu0  ;;  %v5676_v9 = vpop.f32.mrb[28].mxu1  ;;  %v3307_v32 = vadd.f32 1.0, %v4191_v40  ;;  %v2159_v17 = vmul.f32 0.044715, %v1647_v47 }
 0x110   :  { %8271 = vst [vmem:[#allocation11_spill] sm:$0xff] %v5674_v53  ;;  %8272 = vst [vmem:[#allocation12_spill] sm:$0xff] %v5676_v9  ;;  %v2414_v34 = vadd.f32 %v2158_v60, %v5624_v50  ;;  %v2287_v39 = vmul.f32 0.044715, %v1775_v62  ;;  %v5679_v44 = vpop.f32.mrb[29].mxu0  ;;  %v4193_v54 = vpop.eup %4192  ;;  %v2542_v3 = vadd.f32 %v2286_v24, %v5632_v63  ;;  %v5687_v35 = vadd.f32 %v5451_v59, %v5264_v51 }
 0x111   :  { %8273 = vst [vmem:[#allocation13_spill] sm:$0xff] %v5679_v44  ;;  %v3756_v58 = vadd.f32 %v5610_v20, %v3435_v43  ;;  %v5689_v37 = vpop.f32.mrb[29].mxu1  ;;  %v4195_v40 = vpop.eup %4194  ;;  %v3563_v27 = vmul.f32 %v3307_v32, %v2027_v15  ;;  %v3180_v60 = vadd.f32 1.0, %v4193_v54  ;;  %v2415_v62 = vadd.f32 %v2159_v17, %v5636_v33 }
 0x112   :  { %8274 = vst [vmem:[#allocation14_spill] sm:$0xff] %v5689_v37  ;;  %v2670_v47 = vmul.f32 0.7978846, %v2414_v34  ;;  %v3308_v44 = vadd.f32 1.0, %v4195_v40  ;;  %v2798_v9 = vmul.f32 0.7978846, %v2542_v3  ;;  %v2543_v43 = vadd.f32 %v2287_v39, %v5643_v61 }
 0x113   :  { %v1648_v20 = vmul.f32 %v1392_v5, %v5670_v31  ;;  %v5694_v24 = vpop.f32.mrb[30].mxu0  ;;  %v5696_v53 = vpop.f32.mrb[30].mxu1  ;;  %v3920_v38 = vadd.f32 %v5612_v36, %v3563_v27  ;;  %v3436_v37 = vmul.f32 %v3180_v60, %v1900_v10  ;;  %v2671_v15 = vmul.f32 0.7978846, %v2415_v62 }
 0x114   :  { %v4197_v59 = vpop.eup %4196  ;;  %4200 = vtanh.f32 %v2670_v47  ;;  %v5699_v54 = vpop.f32.mrb[31].mxu0  ;;  %v3564_v34 = vmul.f32 %v3308_v44, %v2028_v19  ;;  %v2799_v39 = vmul.f32 0.7978846, %v2543_v43  ;;  %v1520_v40 = vmul.f32 %v5687_v35, %v5687_v35 }
 0x115   :  { %8275 = vst [vmem:[#allocation15_spill] sm:$0xff] %v5699_v54  ;;  %v5701_v32 = vpop.f32.mrb[31].mxu1  ;;  %v3181_v17 = vadd.f32 1.0, %v4197_v59  ;;  %4202 = vtanh.f32 %v2798_v9  ;;  %v5704_v3 = vadd.f32 %v5620_v4, %v3436_v37  ;;  %v2160_v5 = vmul.f32 0.044715, %v1648_v20 }
 0x116   :  { %8276 = vst [vmem:[#allocation16_spill] sm:$0xff] %v5701_v32  ;;  %4204 = vtanh.f32 %v2671_v15  ;;  %v5709_v36 = vadd.f32 %v5645_v2, %v3564_v34  ;;  %v1902_v27 = vmul.f32 0.5, %v5624_v50  ;;  %v1776_v4 = vmul.f32 %v1520_v40, %v5687_v35 }
 0x117   :  { %v3437_v10 = vmul.f32 %v3181_v17, %v1901_v11  ;;  %4206 = vtanh.f32 %v2799_v39  ;;  %v5712_v60 = vpop.f32.mrb[32].mxu0  ;;  %v5714_v19 = vpop.f32.mrb[32].mxu1  ;;  %v2416_v9 = vadd.f32 %v2160_v5, %v5670_v31  ;;  %v5720_v44 = vadd.f32 %v5462_v16, %v5268_v52 }
 0x118   :  { %8277 = vst [vmem:[#allocation17_spill] sm:$0xff] %v5712_v60  ;;  %8278 = vst [vmem:[#allocation18_spill] sm:$0xff] %v5714_v19  ;;  %v5724_v2 = vadd.f32 %v5464_v22, %v5268_v52  ;;  %v5726_v11 = vpop.f32.mrb[33].mxu0  ;;  %v5728_v50 = vpop.f32.mrb[33].mxu1  ;;  %v2030_v62 = vmul.f32 0.5, %v5632_v63  ;;  %v5735_v43 = vadd.f32 %v5476_v42, %v5264_v51  ;;  %v5739_v16 = vadd.f32 %v5478_v14, %v5264_v51 }
 0x119   :  { %8279 = vst [vmem:[#allocation19_spill] sm:$0xff] %v5726_v11  ;;  %8280 = vst [vmem:[#allocation20_spill] sm:$0xff] %v5728_v50  ;;  %v4199_v37 = vpop.eup %4198  ;;  %v5730_v47 = vadd.f32 %v3756_v58, %v3437_v10  ;;  %v2672_v22 = vmul.f32 0.7978846, %v2416_v9  ;;  %v2288_v59 = vmul.f32 0.044715, %v1776_v4  ;;  %v1393_v15 = vmul.f32 %v5720_v44, %v5720_v44 }
 0x11a   :  { %v3309_v20 = vadd.f32 1.0, %v4199_v37  ;;  %v1903_v34 = vmul.f32 0.5, %v5636_v33  ;;  %v1521_v58 = vmul.f32 %v5724_v2, %v5724_v2  ;;  %v1394_v63 = vmul.f32 %v5735_v43, %v5735_v43 }
 0x11b   :  { %v5750_v42 = vadd.f32 %v5482_v48, %v5268_v52  ;;  %v5752_v14 = vpop.f32.mrb[34].mxu0  ;;  %v5754_v17 = vpop.f32.mrb[34].mxu1  ;;  %4208 = vtanh.f32 %v2672_v22  ;;  %v2544_v5 = vadd.f32 %v2288_v59, %v5687_v35  ;;  %v1649_v33 = vmul.f32 %v1393_v15, %v5720_v44 }
 0x11c   :  { %8281 = vst [vmem:[#allocation21_spill] sm:$0xff] %v5752_v14  ;;  %8282 = vst [vmem:[#allocation22_spill] sm:$0xff] %v5754_v17  ;;  %v3565_v39 = vmul.f32 %v3309_v20, %v5672_v29  ;;  %v5759_v40 = vpop.f32.mrb[35].mxu0  ;;  %v5761_v10 = vpop.f32.mrb[35].mxu1  ;;  %v2031_v9 = vmul.f32 0.5, %v5643_v61  ;;  %v1777_v48 = vmul.f32 %v1521_v58, %v5724_v2  ;;  %v1650_v4 = vmul.f32 %v1394_v63, %v5735_v43 }
 0x11d   :  { %8283 = vst [vmem:[#allocation23_spill] sm:$0xff] %v5759_v40  ;;  %8284 = vst [vmem:[#allocation24_spill] sm:$0xff] %v5761_v10  ;;  %v1522_v37 = vmul.f32 %v5739_v16, %v5739_v16  ;;  %v1904_v20 = vmul.f32 0.5, %v5670_v31  ;;  %v2800_v22 = vmul.f32 0.7978846, %v2544_v5 }
 0x11e   :  { %v4201_v17 = vpop.eup %4200  ;;  %v3921_v29 = vadd.f32 %v3920_v38, %v3565_v39  ;;  %v2161_v59 = vmul.f32 0.044715, %v1649_v33  ;;  %v2289_v40 = vmul.f32 0.044715, %v1777_v48  ;;  %v2162_v50 = vmul.f32 0.044715, %v1650_v4 }
 0x11f   :  { %v4203_v15 = vpop.eup %4202  ;;  %v3182_v14 = vadd.f32 1.0, %v4201_v17  ;;  %v1778_v10 = vmul.f32 %v1522_v37, %v5739_v16  ;;  %v5770_v61 = vpop.f32.mrb[36].mxu0  ;;  %4210 = vtanh.f32 %v2800_v22  ;;  %v1395_v38 = vmul.f32 %v5750_v42, %v5750_v42 }
 0x120   :  { %8285 = vst [vmem:[#allocation25_spill] sm:$0xff] %v5770_v61  ;;  %v4205_v58 = vpop.eup %4204  ;;  %v3310_v11 = vadd.f32 1.0, %v4203_v15  ;;  %v2417_v63 = vadd.f32 %v2161_v59, %v5720_v44  ;;  %v5775_v39 = vpop.f32.mrb[36].mxu1  ;;  %v2545_v48 = vadd.f32 %v2289_v40, %v5724_v2  ;;  %v2418_v4 = vadd.f32 %v2162_v50, %v5735_v43 }
 0x121   :  { %8286 = vst [vmem:[#allocation26_spill] sm:$0xff] %v5775_v39  ;;  %v5777_v31 = vpop.f32.mrb[37].mxu0  ;;  %v4207_v5 = vpop.eup %4206  ;;  %v3438_v17 = vmul.f32 %v3182_v14, %v1902_v27  ;;  %v3183_v33 = vadd.f32 1.0, %v4205_v58  ;;  %v2290_v59 = vmul.f32 0.044715, %v1778_v10 }
 0x122   :  { %8287 = vst [vmem:[#allocation27_spill] sm:$0xff] %v5777_v31  ;;  %v5781_v37 = vpop.f32.mrb[37].mxu1  ;;  %v3566_v15 = vmul.f32 %v3310_v11, %v2030_v62  ;;  %v3311_v22 = vadd.f32 1.0, %v4207_v5  ;;  %v2673_v61 = vmul.f32 0.7978846, %v2417_v63  ;;  %v1906_v5 = vmul.f32 0.5, %v5735_v43 }
 0x123   :  { %v3689_v19 = vadd.f32 %v5704_v3, %v3438_v17  ;;  %v3439_v60 = vmul.f32 %v3183_v33, %v1903_v34  ;;  %v2801_v32 = vmul.f32 0.7978846, %v2545_v48  ;;  %v2674_v39 = vmul.f32 0.7978846, %v2418_v4  ;;  %v5784_v54 = vpop.f32.mrb[38].mxu0  ;;  %v5786_v31 = vpop.f32.mrb[38].mxu1 }
 0x124   :  { %v3853_v27 = vadd.f32 %v5709_v36, %v3566_v15  ;;  %v3567_v14 = vmul.f32 %v3311_v22, %v2031_v9  ;;  %4212 = vtanh.f32 %v2673_v61  ;;  %v2546_v50 = vadd.f32 %v2290_v59, %v5739_v16  ;;  %v5790_v40 = vpop.f32.mrb[39].mxu0  ;;  %v5792_v11 = vpop.f32.mrb[39].mxu1 }
 0x125   :  { %v5795_v62 = vadd.f32 %v5730_v47, %v3439_v60  ;;  %v2032_v3 = vmul.f32 0.5, %v5687_v35  ;;  %4214 = vtanh.f32 %v2801_v32  ;;  %v1651_v34 = vmul.f32 %v1395_v38, %v5750_v42  ;;  %v4209_v10 = vpop.eup %4208 }
 0x126   :  { %v5799_v58 = vadd.f32 %v3921_v29, %v3567_v14  ;;  %4216 = vtanh.f32 %v2674_v39  ;;  %v2802_v36 = vmul.f32 0.7978846, %v2546_v50  ;;  %v5803_v9 = vadd.f32 %v5485_v49, %v5268_v52 }
 0x127   :  { %v3184_v61 = vadd.f32 1.0, %v4209_v10  ;;  %v2163_v63 = vmul.f32 0.044715, %v1651_v34  ;;  %v5807_v60 = vadd.f32 %v5504_v6, %v5264_v51  ;;  %v5811_v35 = vadd.f32 %v5506_v21, %v5264_v51  ;;  %v5834_v59 = vpop.f32.mrb[40].mxu0  ;;  %v5836_v14 = vpop.f32.mrb[40].mxu1 }
 0x128   :  { %v1905_v32 = vmul.f32 0.5, %v5720_v44  ;;  %4218 = vtanh.f32 %v2802_v36  ;;  %v1523_v47 = vmul.f32 %v5803_v9, %v5803_v9  ;;  %v5818_v49 = vadd.f32 %v5513_v26, %v5268_v52 }
 0x129   :  { %v3440_v29 = vmul.f32 %v3184_v61, %v1904_v20  ;;  %v2033_v38 = vmul.f32 0.5, %v5724_v2  ;;  %v2419_v6 = vadd.f32 %v2163_v63, %v5750_v42  ;;  %v1396_v39 = vmul.f32 %v5807_v60, %v5807_v60  ;;  %v4211_v21 = vpop.eup %4210 }
 0x12a   :  { %v1779_v44 = vmul.f32 %v1523_v47, %v5803_v9  ;;  %v1524_v17 = vmul.f32 %v5811_v35, %v5811_v35  ;;  %v1397_v26 = vmul.f32 %v5818_v49, %v5818_v49  ;;  %v3312_v20 = vadd.f32 1.0, %v4211_v21  ;;  %v5847_v47 = vpop.f32.mrb[41].mxu0 }
 0x12b   :  { %v3690_v33 = vadd.f32 %v3689_v19, %v3440_v29  ;;  %v2675_v48 = vmul.f32 0.7978846, %v2419_v6  ;;  %v1652_v2 = vmul.f32 %v1396_v39, %v5807_v60  ;;  %v2034_v4 = vmul.f32 0.5, %v5739_v16  ;;  %8288 = vst [vmem:[#allocation28_spill] sm:$0xff] %v5847_v47  ;;  %v5849_v29 = vpop.f32.mrb[41].mxu1 }
 0x12c   :  { %v2291_v15 = vmul.f32 0.044715, %v1779_v44  ;;  %v1780_v22 = vmul.f32 %v1524_v17, %v5811_v35  ;;  %v1653_v43 = vmul.f32 %v1397_v26, %v5818_v49  ;;  %v3568_v50 = vmul.f32 %v3312_v20, %v2032_v3  ;;  %8289 = vst [vmem:[#allocation29_spill] sm:$0xff] %v5849_v29 }
 0x12d   :  { %4220 = vtanh.f32 %v2675_v48  ;;  %v2164_v34 = vmul.f32 0.044715, %v1652_v2  ;;  %v5840_v19 = vadd.f32 %v5516_v23, %v5268_v52  ;;  %v5845_v63 = vadd.f32 %v5551_v45, %v5264_v51 }
 0x12e   :  { %v4213_v10 = vpop.eup %4212  ;;  %v2547_v36 = vadd.f32 %v2291_v15, %v5803_v9  ;;  %v2292_v16 = vmul.f32 0.044715, %v1780_v22  ;;  %v2165_v61 = vmul.f32 0.044715, %v1653_v43  ;;  %v3854_v6 = vadd.f32 %v3853_v27, %v3568_v50 }
 0x12f   :  { %v4215_v3 = vpop.eup %4214  ;;  %v3185_v39 = vadd.f32 1.0, %v4213_v10  ;;  %v2420_v21 = vadd.f32 %v2164_v34, %v5807_v60  ;;  %v1525_v23 = vmul.f32 %v5840_v19, %v5840_v19 }
 0x130   :  { %v4217_v44 = vpop.eup %4216  ;;  %v3313_v17 = vadd.f32 1.0, %v4215_v3  ;;  %v2803_v26 = vmul.f32 0.7978846, %v2547_v36  ;;  %v2548_v20 = vadd.f32 %v2292_v16, %v5811_v35  ;;  %v2421_v45 = vadd.f32 %v2165_v61, %v5818_v49  ;;  %v5858_v36 = vpop.f32.mrb[42].mxu0 }
 0x131   :  { %v3441_v48 = vmul.f32 %v3185_v39, %v1905_v32  ;;  %v3186_v2 = vadd.f32 1.0, %v4217_v44  ;;  %v2676_v15 = vmul.f32 0.7978846, %v2420_v21  ;;  %v1781_v22 = vmul.f32 %v1525_v23, %v5840_v19 }
 0x132   :  { %v4219_v43 = vpop.eup %4218  ;;  %v3569_v27 = vmul.f32 %v3313_v17, %v2033_v38  ;;  %4222 = vtanh.f32 %v2803_v26  ;;  %v2804_v50 = vmul.f32 0.7978846, %v2548_v20  ;;  %v2677_v34 = vmul.f32 0.7978846, %v2421_v45 }
 0x133   :  { %v3759_v10 = vadd.f32 %v5795_v62, %v3441_v48  ;;  %v3442_v29 = vmul.f32 %v3186_v2, %v1906_v5  ;;  %v3314_v47 = vadd.f32 1.0, %v4219_v43  ;;  %4224 = vtanh.f32 %v2676_v15  ;;  %v5900_v15 = vpop.f32.mrb[43].mxu0 }
 0x134   :  { %v3923_v16 = vadd.f32 %v5799_v58, %v3569_v27  ;;  %v1907_v32 = vmul.f32 0.5, %v5750_v42  ;;  %4226 = vtanh.f32 %v2804_v50  ;;  %v2293_v61 = vmul.f32 0.044715, %v1781_v22  ;;  %v5874_v42 = vpop.f32.mrb[42].mxu1 }
 0x135   :  { %v3691_v3 = vadd.f32 %v3690_v33, %v3442_v29  ;;  %v3570_v39 = vmul.f32 %v3314_v47, %v2034_v4  ;;  %4228 = vtanh.f32 %v2677_v34  ;;  %v1398_v38 = vmul.f32 %v5845_v63, %v5845_v63  ;;  %v5902_v22 = vpop.f32.mrb[43].mxu1 }
 0x136   :  { %v2035_v21 = vmul.f32 0.5, %v5803_v9  ;;  %v2549_v62 = vadd.f32 %v2293_v61, %v5840_v19  ;;  %v5868_v5 = vadd.f32 %v5553_v46, %v5264_v51  ;;  %v5872_v58 = vadd.f32 %v5555_v55, %v5268_v52  ;;  %8290 = vst [vmem:[#allocation30_spill] sm:$0xff] %v5902_v22 }
 0x137   :  { %v4221_v33 = vpop.eup %4220  ;;  %v3855_v4 = vadd.f32 %v3854_v6, %v3570_v39  ;;  %v1654_v47 = vmul.f32 %v1398_v38, %v5845_v63  ;;  %v5879_v29 = vadd.f32 %v5558_v57, %v5268_v52  ;;  %v5883_v9 = vadd.f32 %v5582_v30, %v5264_v51 }
 0x138   :  { %v3187_v46 = vadd.f32 1.0, %v4221_v33  ;;  %v1908_v23 = vmul.f32 0.5, %v5807_v60  ;;  %v2805_v44 = vmul.f32 0.7978846, %v2549_v62  ;;  %v1526_v55 = vmul.f32 %v5868_v5, %v5868_v5 }
 0x139   :  { %v2036_v17 = vmul.f32 0.5, %v5811_v35  ;;  %v2166_v6 = vmul.f32 0.044715, %v1654_v47  ;;  %v1399_v26 = vmul.f32 %v5872_v58, %v5872_v58  ;;  %v1527_v57 = vmul.f32 %v5879_v29, %v5879_v29 }
 0x13a   :  { %v3443_v20 = vmul.f32 %v3187_v46, %v1907_v32  ;;  %v1909_v30 = vmul.f32 0.5, %v5818_v49  ;;  %4230 = vtanh.f32 %v2805_v44  ;;  %v1782_v45 = vmul.f32 %v1526_v55, %v5868_v5 }
 0x13b   :  { %v2422_v60 = vadd.f32 %v2166_v6, %v5845_v63  ;;  %v1655_v48 = vmul.f32 %v1399_v26, %v5872_v58  ;;  %v1783_v2 = vmul.f32 %v1527_v57, %v5879_v29  ;;  %v1400_v35 = vmul.f32 %v5883_v9, %v5883_v9  ;;  %v5914_v26 = vpop.f32.mrb[44].mxu0  ;;  %v5916_v57 = vpop.f32.mrb[44].mxu1 }
 0x13c   :  { %v4223_v43 = vpop.eup %4222  ;;  %v3760_v27 = vadd.f32 %v3759_v10, %v3443_v20  ;;  %v2037_v49 = vmul.f32 0.5, %v5840_v19  ;;  %v2294_v50 = vmul.f32 0.044715, %v1782_v45  ;;  %v5907_v34 = vadd.f32 %v5584_v41, %v5264_v51 }
 0x13d   :  { %v4225_v32 = vpop.eup %4224  ;;  %v3315_v61 = vadd.f32 1.0, %v4223_v43  ;;  %v2678_v39 = vmul.f32 0.7978846, %v2422_v60  ;;  %v2167_v38 = vmul.f32 0.044715, %v1655_v48  ;;  %v1656_v62 = vmul.f32 %v1400_v35, %v5883_v9 }
 0x13e   :  { %v4227_v33 = vpop.eup %4226  ;;  %v3188_v47 = vadd.f32 1.0, %v4225_v32  ;;  %v2550_v46 = vadd.f32 %v2294_v50, %v5868_v5  ;;  %v2295_v44 = vmul.f32 0.044715, %v1783_v2  ;;  %v1528_v10 = vmul.f32 %v5907_v34, %v5907_v34 }
 0x13f   :  { %v4229_v19 = vpop.eup %4228  ;;  %v3571_v55 = vmul.f32 %v3315_v61, %v2035_v21  ;;  %v3316_v6 = vadd.f32 1.0, %v4227_v33  ;;  %4232 = vtanh.f32 %v2678_v39  ;;  %v2423_v41 = vadd.f32 %v2167_v38, %v5872_v58  ;;  %v5919_v61 = vpop.f32.mrb[45].mxu0 }
 0x140   :  { %v3444_v20 = vmul.f32 %v3188_v47, %v1908_v23  ;;  %v3189_v45 = vadd.f32 1.0, %v4229_v19  ;;  %v2806_v60 = vmul.f32 0.7978846, %v2550_v46  ;;  %v2551_v48 = vadd.f32 %v2295_v44, %v5879_v29 }
 0x141   :  { %v3924_v35 = vadd.f32 %v3923_v16, %v3571_v55  ;;  %v3572_v2 = vmul.f32 %v3316_v6, %v2036_v17  ;;  %v2679_v43 = vmul.f32 0.7978846, %v2423_v41  ;;  %v2168_v50 = vmul.f32 0.044715, %v1656_v62 }
 0x142   :  { %v3692_v32 = vadd.f32 %v3691_v3, %v3444_v20  ;;  %v3445_v22 = vmul.f32 %v3189_v45, %v1909_v30  ;;  %4234 = vtanh.f32 %v2806_v60  ;;  %v2807_v21 = vmul.f32 0.7978846, %v2551_v48 }
 0x143   :  { %v5921_v39 = vadd.f32 %v3855_v4, %v3572_v2  ;;  %4236 = vtanh.f32 %v2679_v43  ;;  %v2424_v38 = vadd.f32 %v2168_v50, %v5883_v9  ;;  %v1784_v23 = vmul.f32 %v1528_v10, %v5907_v34  ;;  %v5950_v10 = vpop.f32.mrb[45].mxu1 }
 0x144   :  { %v4231_v33 = vpop.eup %4230  ;;  %v5925_v47 = vadd.f32 %v3760_v27, %v3445_v22  ;;  %v1910_v16 = vmul.f32 0.5, %v5845_v63  ;;  %4238 = vtanh.f32 %v2807_v21  ;;  %v5930_v3 = vadd.f32 %v5588_v0, %v5268_v52 }
 0x145   :  { %v3317_v17 = vadd.f32 1.0, %v4231_v33  ;;  %v2680_v30 = vmul.f32 0.7978846, %v2424_v38  ;;  %v2296_v62 = vmul.f32 0.044715, %v1784_v23  ;;  %v5934_v4 = vadd.f32 %v5591_v8, %v5268_v52 }
 0x146   :  { %v2038_v46 = vmul.f32 0.5, %v5868_v5  ;;  %v1401_v22 = vmul.f32 %v5930_v3, %v5930_v3  ;;  %v5941_v63 = vadd.f32 %v5600_v7, %v5264_v51  ;;  %v5945_v0 = vadd.f32 %v5602_v25, %v5264_v51 }
 0x147   :  { %v3573_v27 = vmul.f32 %v3317_v17, %v2037_v49  ;;  %4240 = vtanh.f32 %v2680_v30  ;;  %v2552_v44 = vadd.f32 %v2296_v62, %v5907_v34  ;;  %v1529_v8 = vmul.f32 %v5934_v4, %v5934_v4 }
 0x148   :  { %v1911_v5 = vmul.f32 0.5, %v5872_v58  ;;  %v2039_v19 = vmul.f32 0.5, %v5879_v29  ;;  %v1657_v7 = vmul.f32 %v1401_v22, %v5930_v3  ;;  %v1402_v55 = vmul.f32 %v5941_v63, %v5941_v63  ;;  %v5975_v22 = vpop.f32.mrb[46].mxu0 }
 0x149   :  { %v4233_v25 = vpop.eup %4232  ;;  %v3925_v6 = vadd.f32 %v3924_v35, %v3573_v27  ;;  %v2808_v49 = vmul.f32 0.7978846, %v2552_v44  ;;  %v1785_v41 = vmul.f32 %v1529_v8, %v5934_v4  ;;  %v1530_v20 = vmul.f32 %v5945_v0, %v5945_v0 }
 0x14a   :  { %v3190_v45 = vadd.f32 1.0, %v4233_v25  ;;  %v1912_v60 = vmul.f32 0.5, %v5883_v9  ;;  %v2169_v48 = vmul.f32 0.044715, %v1657_v7  ;;  %v1658_v58 = vmul.f32 %v1402_v55, %v5941_v63 }
 0x14b   :  { %4242 = vtanh.f32 %v2808_v49  ;;  %v2297_v29 = vmul.f32 0.044715, %v1785_v41  ;;  %v1786_v2 = vmul.f32 %v1530_v20, %v5945_v0  ;;  %v5965_v43 = vadd.f32 %v5605_v28, %v5268_v52  ;;  %v5977_v28 = vpop.f32.mrb[46].mxu1 }
 0x14c   :  { %v4235_v35 = vpop.eup %4234  ;;  %v3446_v50 = vmul.f32 %v3190_v45, %v1910_v16  ;;  %v2425_v21 = vadd.f32 %v2169_v48, %v5930_v3  ;;  %v2170_v38 = vmul.f32 0.044715, %v1658_v58  ;;  %v5970_v23 = vadd.f32 %v5607_v56, %v5268_v52  ;;  %v5980_v56 = vpop.f32.mrb[47].mxu0 }
 0x14d   :  { %v4237_v9 = vpop.eup %4236  ;;  %v3318_v33 = vadd.f32 1.0, %v4235_v35  ;;  %v2553_v17 = vadd.f32 %v2297_v29, %v5934_v4  ;;  %v2298_v30 = vmul.f32 0.044715, %v1786_v2  ;;  %v1403_v62 = vmul.f32 %v5965_v43, %v5965_v43  ;;  %v5982_v55 = vpop.f32.mrb[47].mxu1 }
 0x14e   :  { %v4239_v16 = vpop.eup %4238  ;;  %v3693_v27 = vadd.f32 %v3692_v32, %v3446_v50  ;;  %v3191_v44 = vadd.f32 1.0, %v4237_v9  ;;  %v2681_v8 = vmul.f32 0.7978846, %v2425_v21  ;;  %v2426_v7 = vadd.f32 %v2170_v38, %v5941_v63 }
 0x14f   :  { %v3574_v25 = vmul.f32 %v3318_v33, %v2038_v46  ;;  %v3319_v49 = vadd.f32 1.0, %v4239_v16  ;;  %v2809_v41 = vmul.f32 0.7978846, %v2553_v17  ;;  %v2554_v20 = vadd.f32 %v2298_v30, %v5945_v0 }
 0x150   :  { %v3447_v45 = vmul.f32 %v3191_v44, %v1911_v5  ;;  %4244 = vtanh.f32 %v2681_v8  ;;  %v2682_v48 = vmul.f32 0.7978846, %v2426_v7  ;;  %v1659_v58 = vmul.f32 %v1403_v62, %v5965_v43 }
 0x151   :  { %v4241_v29 = vpop.eup %4240  ;;  %v3857_v32 = vadd.f32 %v5921_v39, %v3574_v25  ;;  %v3575_v2 = vmul.f32 %v3319_v49, %v2039_v19  ;;  %4246 = vtanh.f32 %v2809_v41  ;;  %v2810_v35 = vmul.f32 0.7978846, %v2554_v20  ;;  %v6022_v49 = vpop.f32.mrb[48].mxu1 }
 0x152   :  { %v3762_v50 = vadd.f32 %v5925_v47, %v3447_v45  ;;  %v3192_v21 = vadd.f32 1.0, %v4241_v29  ;;  %v2040_v46 = vmul.f32 0.5, %v5907_v34  ;;  %4248 = vtanh.f32 %v2682_v48 }
 0x153   :  { %v3926_v38 = vadd.f32 %v3925_v6, %v3575_v2  ;;  %4250 = vtanh.f32 %v2810_v35  ;;  %v2171_v9 = vmul.f32 0.044715, %v1659_v58  ;;  %v1531_v5 = vmul.f32 %v5970_v23, %v5970_v23  ;;  %v6032_v35 = vpop.f32.mrb[49].mxu1 }
 0x154   :  { %v3448_v33 = vmul.f32 %v3192_v21, %v1912_v60  ;;  %v1913_v17 = vmul.f32 0.5, %v5930_v3  ;;  %v5994_v39 = vadd.f32 %v5616_v12, %v5264_v51  ;;  %v5998_v47 = vadd.f32 %v5618_v18, %v5264_v51  ;;  %8291 = vst [vmem:[#allocation31_spill] sm:$0xff] %v6032_v35 }
 0x155   :  { %v4243_v19 = vpop.eup %4242  ;;  %v2427_v34 = vadd.f32 %v2171_v9, %v5965_v43  ;;  %v1787_v6 = vmul.f32 %v1531_v5, %v5970_v23  ;;  %v6004_v30 = vadd.f32 %v5626_v1, %v5268_v52  ;;  %v6008_v3 = vadd.f32 %v5628_v13, %v5268_v52  ;;  %v6016_v1 = vpop.f32.mrb[48].mxu0 }
 0x156   :  { %v3694_v60 = vadd.f32 %v3693_v27, %v3448_v33  ;;  %v3320_v12 = vadd.f32 1.0, %v4243_v19  ;;  %v2041_v62 = vmul.f32 0.5, %v5934_v4  ;;  %v1404_v18 = vmul.f32 %v5994_v39, %v5994_v39  ;;  %v6030_v2 = vpop.f32.mrb[49].mxu0 }
 0x157   :  { %v1914_v16 = vmul.f32 0.5, %v5941_v63  ;;  %v2683_v44 = vmul.f32 0.7978846, %v2427_v34  ;;  %v2299_v8 = vmul.f32 0.044715, %v1787_v6  ;;  %v1532_v7 = vmul.f32 %v5998_v47, %v5998_v47 }
 0x158   :  { %v3576_v25 = vmul.f32 %v3320_v12, %v2040_v46  ;;  %v2042_v13 = vmul.f32 0.5, %v5945_v0  ;;  %v1660_v27 = vmul.f32 %v1404_v18, %v5994_v39  ;;  %v1405_v4 = vmul.f32 %v6004_v30, %v6004_v30 }
 0x159   :  { %4252 = vtanh.f32 %v2683_v44  ;;  %v2555_v63 = vadd.f32 %v2299_v8, %v5970_v23  ;;  %v1788_v41 = vmul.f32 %v1532_v7, %v5998_v47  ;;  %v1533_v20 = vmul.f32 %v6008_v3, %v6008_v3 }
 0x15a   :  { %v4245_v45 = vpop.eup %4244  ;;  %v3858_v48 = vadd.f32 %v3857_v32, %v3576_v25  ;;  %v1915_v58 = vmul.f32 0.5, %v5965_v43  ;;  %v2172_v0 = vmul.f32 0.044715, %v1660_v27  ;;  %v1661_v29 = vmul.f32 %v1405_v4, %v6004_v30  ;;  %v8292_v43 = vld [vmem:[#allocation7_spill] sm:$0xff] }
 0x15b   :  { %v4247_v21 = vpop.eup %4246  ;;  %v3193_v46 = vadd.f32 1.0, %v4245_v45  ;;  %v2811_v9 = vmul.f32 0.7978846, %v2555_v63  ;;  %v2300_v5 = vmul.f32 0.044715, %v1788_v41  ;;  %v1789_v33 = vmul.f32 %v1533_v20, %v6008_v3 }
 0x15c   :  { %v4249_v19 = vpop.eup %4248  ;;  %v3321_v34 = vadd.f32 1.0, %v4247_v21  ;;  %v2428_v6 = vadd.f32 %v2172_v0, %v5994_v39  ;;  %v2173_v32 = vmul.f32 0.044715, %v1661_v29  ;;  %v6038_v12 = vadd.f32 %v8292_v43, %v5264_v51 }
 0x15d   :  { %v4251_v18 = vpop.eup %4250  ;;  %v3449_v44 = vmul.f32 %v3193_v46, %v1913_v17  ;;  %v3194_v8 = vadd.f32 1.0, %v4249_v19  ;;  %4254 = vtanh.f32 %v2811_v9  ;;  %v2556_v7 = vadd.f32 %v2300_v5, %v5998_v47  ;;  %v6047_v46 = vpop.f32.mrb[50].mxu0  ;;  %v8296_v19 = vld [vmem:[#allocation9_spill] sm:$0xff] }
 0x15e   :  { %v3577_v25 = vmul.f32 %v3321_v34, %v2041_v62  ;;  %v3322_v27 = vadd.f32 1.0, %v4251_v18  ;;  %v2684_v4 = vmul.f32 0.7978846, %v2428_v6  ;;  %v2429_v63 = vadd.f32 %v2173_v32, %v6004_v30  ;;  %8293 = vst [vmem:[#allocation7_spill] sm:$0xff] %v6047_v46  ;;  %v6049_v9 = vpop.f32.mrb[50].mxu1  ;;  %v8297_v6 = vld [vmem:[#allocation10_spill] sm:$0xff] }
 0x15f   :  { %v3763_v41 = vadd.f32 %v3762_v50, %v3449_v44  ;;  %v3450_v20 = vmul.f32 %v3194_v8, %v1914_v16  ;;  %v2812_v45 = vmul.f32 0.7978846, %v2556_v7  ;;  %v2301_v0 = vmul.f32 0.044715, %v1789_v33  ;;  %8294 = vst [vmem:[#allocation32_spill] sm:$0xff] %v6049_v9  ;;  %v8298_v44 = vld [vmem:[#allocation11_spill] sm:$0xff] }
 0x160   :  { %v3927_v29 = vadd.f32 %v3926_v38, %v3577_v25  ;;  %v3578_v21 = vmul.f32 %v3322_v27, %v2042_v13  ;;  %4256 = vtanh.f32 %v2684_v4  ;;  %v2685_v43 = vmul.f32 0.7978846, %v2429_v63  ;;  %v8295_v38 = vld [vmem:[#allocation8_spill] sm:$0xff] }
 0x161   :  { %v6042_v35 = vadd.f32 %v3694_v60, %v3450_v20  ;;  %4258 = vtanh.f32 %v2812_v45  ;;  %v2557_v17 = vadd.f32 %v2301_v0, %v6008_v3  ;;  %v1406_v62 = vmul.f32 %v6038_v12, %v6038_v12  ;;  %v6081_v45 = vpop.f32.mrb[51].mxu0 }
 0x162   :  { %v6051_v50 = vadd.f32 %v3858_v48, %v3578_v21  ;;  %v2043_v16 = vmul.f32 0.5, %v5970_v23  ;;  %4260 = vtanh.f32 %v2685_v43  ;;  %v6056_v13 = vadd.f32 %v8295_v38, %v5264_v51  ;;  %8299 = vst [vmem:[#allocation8_spill] sm:$0xff] %v6081_v45 }
 0x163   :  { %v4253_v60 = vpop.eup %4252  ;;  %v2813_v5 = vmul.f32 0.7978846, %v2557_v17  ;;  %v1662_v33 = vmul.f32 %v1406_v62, %v6038_v12  ;;  %v6061_v34 = vadd.f32 %v8296_v19, %v5268_v52  ;;  %v6065_v32 = vadd.f32 %v8297_v6, %v5268_v52 }
 0x164   :  { %v3195_v48 = vadd.f32 1.0, %v4253_v60  ;;  %v1916_v23 = vmul.f32 0.5, %v5994_v39  ;;  %v1534_v18 = vmul.f32 %v6056_v13, %v6056_v13  ;;  %v6072_v8 = vadd.f32 %v8298_v44, %v5264_v51  ;;  %v6089_v60 = vpop.f32.mrb[51].mxu1 }
 0x165   :  { %v2044_v7 = vmul.f32 0.5, %v5998_v47  ;;  %4262 = vtanh.f32 %v2813_v5  ;;  %v2174_v25 = vmul.f32 0.044715, %v1662_v33  ;;  %v1407_v27 = vmul.f32 %v6061_v34, %v6061_v34  ;;  %8300 = vst [vmem:[#allocation9_spill] sm:$0xff] %v6089_v60 }
 0x166   :  { %v3451_v4 = vmul.f32 %v3195_v48, %v1915_v58  ;;  %v1917_v63 = vmul.f32 0.5, %v6004_v30  ;;  %v1790_v20 = vmul.f32 %v1534_v18, %v6056_v13  ;;  %v1535_v39 = vmul.f32 %v6065_v32, %v6065_v32 }
 0x167   :  { %v4255_v0 = vpop.eup %4254  ;;  %v2045_v21 = vmul.f32 0.5, %v6008_v3  ;;  %v2430_v47 = vadd.f32 %v2174_v25, %v6038_v12  ;;  %v1663_v43 = vmul.f32 %v1407_v27, %v6061_v34  ;;  %v1408_v17 = vmul.f32 %v6072_v8, %v6072_v8  ;;  %v8301_v3 = vld [vmem:[#allocation12_spill] sm:$0xff] }
 0x168   :  { %v3764_v58 = vadd.f32 %v3763_v41, %v3451_v4  ;;  %v3323_v62 = vadd.f32 1.0, %v4255_v0  ;;  %v2302_v30 = vmul.f32 0.044715, %v1790_v20  ;;  %v1791_v38 = vmul.f32 %v1535_v39, %v6065_v32  ;;  %v8302_v41 = vld [vmem:[#allocation13_spill] sm:$0xff] }
 0x169   :  { %v2686_v5 = vmul.f32 0.7978846, %v2430_v47  ;;  %v2175_v33 = vmul.f32 0.044715, %v1663_v43  ;;  %v1664_v19 = vmul.f32 %v1408_v17, %v6072_v8  ;;  %v6094_v6 = vadd.f32 %v8301_v3, %v5264_v51 }
 0x16a   :  { %v4257_v48 = vpop.eup %4256  ;;  %v3579_v18 = vmul.f32 %v3323_v62, %v2043_v16  ;;  %v2558_v44 = vadd.f32 %v2302_v30, %v6056_v13  ;;  %v2303_v25 = vmul.f32 0.044715, %v1791_v38  ;;  %v6099_v27 = vadd.f32 %v8302_v41, %v5268_v52  ;;  %v6103_v16 = vpop.f32.mrb[52].mxu0 }
 0x16b   :  { %v4259_v4 = vpop.eup %4258  ;;  %v3196_v20 = vadd.f32 1.0, %v4257_v48  ;;  %4264 = vtanh.f32 %v2686_v5  ;;  %v2431_v39 = vadd.f32 %v2175_v33, %v6061_v34  ;;  %v2176_v0 = vmul.f32 0.044715, %v1664_v19  ;;  %8303 = vst [vmem:[#allocation10_spill] sm:$0xff] %v6103_v16  ;;  %v6105_v62 = vpop.f32.mrb[52].mxu1 }
 0x16c   :  { %v4261_v47 = vpop.eup %4260  ;;  %v3928_v43 = vadd.f32 %v3927_v29, %v3579_v18  ;;  %v3324_v17 = vadd.f32 1.0, %v4259_v4  ;;  %v2814_v3 = vmul.f32 0.7978846, %v2558_v44  ;;  %v2559_v60 = vadd.f32 %v2303_v25, %v6065_v32  ;;  %8304 = vst [vmem:[#allocation11_spill] sm:$0xff] %v6105_v62  ;;  %v6111_v25 = vpop.f32.mrb[53].mxu0 }
 0x16d   :  { %v3452_v30 = vmul.f32 %v3196_v20, %v1916_v23  ;;  %v3197_v38 = vadd.f32 1.0, %v4261_v47  ;;  %v2687_v41 = vmul.f32 0.7978846, %v2431_v39  ;;  %v2432_v45 = vadd.f32 %v2176_v0, %v6072_v8  ;;  %8305 = vst [vmem:[#allocation12_spill] sm:$0xff] %v6111_v25 }
 0x16e   :  { %v3580_v48 = vmul.f32 %v3324_v17, %v2044_v7  ;;  %4266 = vtanh.f32 %v2814_v3  ;;  %v2815_v5 = vmul.f32 0.7978846, %v2559_v60  ;;  %v1536_v33 = vmul.f32 %v6094_v6, %v6094_v6 }
 0x16f   :  { %v4263_v29 = vpop.eup %4262  ;;  %v3696_v19 = vadd.f32 %v6042_v35, %v3452_v30  ;;  %v3453_v18 = vmul.f32 %v3197_v38, %v1917_v63  ;;  %4268 = vtanh.f32 %v2687_v41  ;;  %v2688_v44 = vmul.f32 0.7978846, %v2432_v45  ;;  %v8306_v45 = vld [vmem:[#allocation14_spill] sm:$0xff]  ;;  %v6140_v41 = vpop.f32.mrb[53].mxu1 }
 0x170   :  { %v3860_v23 = vadd.f32 %v6051_v50, %v3580_v48  ;;  %v3325_v4 = vadd.f32 1.0, %v4263_v29  ;;  %4270 = vtanh.f32 %v2815_v5  ;;  %v1792_v20 = vmul.f32 %v1536_v33, %v6094_v6  ;;  %8308 = vst [vmem:[#allocation13_spill] sm:$0xff] %v6140_v41 }
 0x171   :  { %v3765_v7 = vadd.f32 %v3764_v58, %v3453_v18  ;;  %v1918_v60 = vmul.f32 0.5, %v6038_v12  ;;  %4272 = vtanh.f32 %v2688_v44  ;;  %v1409_v39 = vmul.f32 %v6099_v27, %v6099_v27  ;;  %v8307_v58 = vld [vmem:[#allocation15_spill] sm:$0xff] }
 0x172   :  { %v3581_v0 = vmul.f32 %v3325_v4, %v2045_v21  ;;  %v2046_v35 = vmul.f32 0.5, %v6056_v13  ;;  %v2304_v63 = vmul.f32 0.044715, %v1792_v20  ;;  %v6121_v47 = vadd.f32 %v8306_v45, %v5268_v52 }
 0x173   :  { %v1665_v50 = vmul.f32 %v1409_v39, %v6099_v27  ;;  %v6126_v17 = vadd.f32 %v5694_v24, %v5264_v51  ;;  %v6130_v12 = vadd.f32 %v5696_v53, %v5264_v51  ;;  %v6134_v21 = vadd.f32 %v8307_v58, %v5268_v52 }
 0x174   :  { %v3929_v13 = vadd.f32 %v3928_v43, %v3581_v0  ;;  %v1919_v3 = vmul.f32 0.5, %v6061_v34  ;;  %v2560_v30 = vadd.f32 %v2304_v63, %v6094_v6  ;;  %v1537_v38 = vmul.f32 %v6121_v47, %v6121_v47 }
 0x175   :  { %v4265_v24 = vpop.eup %4264  ;;  %v2047_v48 = vmul.f32 0.5, %v6065_v32  ;;  %v2177_v5 = vmul.f32 0.044715, %v1665_v50  ;;  %v1410_v53 = vmul.f32 %v6126_v17, %v6126_v17  ;;  %v1538_v33 = vmul.f32 %v6130_v12, %v6130_v12  ;;  %v6155_v50 = vpop.f32.mrb[54].mxu0 }
 0x176   :  { %v3198_v43 = vadd.f32 1.0, %v4265_v24  ;;  %v1920_v34 = vmul.f32 0.5, %v6072_v8  ;;  %v2816_v29 = vmul.f32 0.7978846, %v2560_v30  ;;  %v1793_v18 = vmul.f32 %v1537_v38, %v6121_v47  ;;  %8309 = vst [vmem:[#allocation14_spill] sm:$0xff] %v6155_v50  ;;  %v6157_v8 = vpop.f32.mrb[54].mxu1 }
 0x177   :  { %v2433_v44 = vadd.f32 %v2177_v5, %v6099_v27  ;;  %v1666_v4 = vmul.f32 %v1410_v53, %v6126_v17  ;;  %v1794_v20 = vmul.f32 %v1538_v33, %v6130_v12  ;;  %v1411_v32 = vmul.f32 %v6134_v21, %v6134_v21  ;;  %8310 = vst [vmem:[#allocation15_spill] sm:$0xff] %v6157_v8 }
 0x178   :  { %v4267_v39 = vpop.eup %4266  ;;  %v3454_v0 = vmul.f32 %v3198_v43, %v1918_v60  ;;  %v2048_v63 = vmul.f32 0.5, %v6094_v6  ;;  %4274 = vtanh.f32 %v2816_v29  ;;  %v2305_v45 = vmul.f32 0.044715, %v1793_v18  ;;  %v6161_v43 = vpop.f32.mrb[55].mxu0 }
 0x179   :  { %v4269_v58 = vpop.eup %4268  ;;  %v3326_v30 = vadd.f32 1.0, %v4267_v39  ;;  %v2689_v38 = vmul.f32 0.7978846, %v2433_v44  ;;  %v2178_v24 = vmul.f32 0.044715, %v1666_v4  ;;  %v1667_v5 = vmul.f32 %v1411_v32, %v6134_v21  ;;  %8311 = vst [vmem:[#allocation33_spill] sm:$0xff] %v6161_v43 }
 0x17a   :  { %v4271_v53 = vpop.eup %4270  ;;  %v3697_v33 = vadd.f32 %v3696_v19, %v3454_v0  ;;  %v3199_v41 = vadd.f32 1.0, %v4269_v58  ;;  %v2561_v25 = vadd.f32 %v2305_v45, %v6121_v47  ;;  %v2306_v60 = vmul.f32 0.044715, %v1794_v20  ;;  %v6165_v32 = vpop.f32.mrb[55].mxu1 }
 0x17b   :  { %v4273_v6 = vpop.eup %4272  ;;  %v3582_v29 = vmul.f32 %v3326_v30, %v2046_v35  ;;  %v3327_v18 = vadd.f32 1.0, %v4271_v53  ;;  %4276 = vtanh.f32 %v2689_v38  ;;  %v2434_v8 = vadd.f32 %v2178_v24, %v6126_v17  ;;  %8312 = vst [vmem:[#allocation34_spill] sm:$0xff] %v6165_v32 }
 0x17c   :  { %v3455_v50 = vmul.f32 %v3199_v41, %v1919_v3  ;;  %v3200_v39 = vadd.f32 1.0, %v4273_v6  ;;  %v2817_v44 = vmul.f32 0.7978846, %v2561_v25  ;;  %v2562_v4 = vadd.f32 %v2306_v60, %v6130_v12  ;;  %v8313_v3 = vld [vmem:[#allocation16_spill] sm:$0xff] }
 0x17d   :  { %v3861_v19 = vadd.f32 %v3860_v23, %v3582_v29  ;;  %v3583_v0 = vmul.f32 %v3327_v18, %v2047_v48  ;;  %v2690_v58 = vmul.f32 0.7978846, %v2434_v8  ;;  %v2179_v45 = vmul.f32 0.044715, %v1667_v5  ;;  %v8314_v23 = vld [vmem:[#allocation17_spill] sm:$0xff]  ;;  %v6202_v18 = vpop.f32.mrb[56].mxu1 }
 0x17e   :  { %v3766_v20 = vadd.f32 %v3765_v7, %v3455_v50  ;;  %v3456_v62 = vmul.f32 %v3200_v39, %v1920_v34  ;;  %4278 = vtanh.f32 %v2817_v44  ;;  %v2818_v43 = vmul.f32 0.7978846, %v2562_v4  ;;  %v8315_v7 = vld [vmem:[#allocation18_spill] sm:$0xff]  ;;  %8318 = vst [vmem:[#allocation17_spill] sm:$0xff] %v6202_v18  ;;  %v8319_v44 = vld [vmem:[#allocation20_spill] sm:$0xff] }
 0x17f   :  { %v6167_v35 = vadd.f32 %v3929_v13, %v3583_v0  ;;  %4280 = vtanh.f32 %v2690_v58  ;;  %v2435_v30 = vadd.f32 %v2179_v45, %v6134_v21  ;;  %v6172_v25 = vadd.f32 %v8313_v3, %v5268_v52  ;;  %v6184_v13 = vpop.f32.mrb[56].mxu0  ;;  %v8320_v3 = vld [vmem:[#allocation21_spill] sm:$0xff] }
 0x180   :  { %v6174_v41 = vadd.f32 %v3697_v33, %v3456_v62  ;;  %4282 = vtanh.f32 %v2818_v43  ;;  %v6178_v48 = vadd.f32 %v8314_v23, %v5264_v51  ;;  %v6182_v34 = vadd.f32 %v8315_v7, %v5264_v51  ;;  %8316 = vst [vmem:[#allocation16_spill] sm:$0xff] %v6184_v13  ;;  %v8317_v62 = vld [vmem:[#allocation19_spill] sm:$0xff] }
 0x181   :  { %v1921_v50 = vmul.f32 0.5, %v6099_v27  ;;  %v2691_v8 = vmul.f32 0.7978846, %v2435_v30  ;;  %v1539_v38 = vmul.f32 %v6172_v25, %v6172_v25  ;;  %v6191_v24 = vadd.f32 %v8317_v62, %v5268_v52 }
 0x182   :  { %v4275_v5 = vpop.eup %4274  ;;  %v2049_v53 = vmul.f32 0.5, %v6121_v47  ;;  %v1922_v33 = vmul.f32 0.5, %v6126_v17  ;;  %v1412_v60 = vmul.f32 %v6178_v48, %v6178_v48  ;;  %v1540_v43 = vmul.f32 %v6182_v34, %v6182_v34 }
 0x183   :  { %v3328_v27 = vadd.f32 1.0, %v4275_v5  ;;  %4284 = vtanh.f32 %v2691_v8  ;;  %v1795_v6 = vmul.f32 %v1539_v38, %v6172_v25  ;;  %v1413_v29 = vmul.f32 %v6191_v24, %v6191_v24 }
 0x184   :  { %v2050_v39 = vmul.f32 0.5, %v6130_v12  ;;  %v1668_v47 = vmul.f32 %v1412_v60, %v6178_v48  ;;  %v1796_v17 = vmul.f32 %v1540_v43, %v6182_v34  ;;  %v6209_v4 = vadd.f32 %v8319_v44, %v5268_v52 }
 0x185   :  { %v4277_v0 = vpop.eup %4276  ;;  %v3584_v58 = vmul.f32 %v3328_v27, %v2048_v63  ;;  %v2307_v45 = vmul.f32 0.044715, %v1795_v6  ;;  %v1669_v30 = vmul.f32 %v1413_v29, %v6191_v24  ;;  %v6214_v23 = vadd.f32 %v8320_v3, %v5264_v51  ;;  %v6220_v63 = vpop.f32.mrb[57].mxu0 }
 0x186   :  { %v3201_v7 = vadd.f32 1.0, %v4277_v0  ;;  %v2180_v8 = vmul.f32 0.044715, %v1668_v47  ;;  %v2308_v12 = vmul.f32 0.044715, %v1796_v17  ;;  %v1541_v38 = vmul.f32 %v6209_v4, %v6209_v4  ;;  %8321 = vst [vmem:[#allocation18_spill] sm:$0xff] %v6220_v63 }
 0x187   :  { %v3862_v62 = vadd.f32 %v3861_v19, %v3584_v58  ;;  %v1923_v5 = vmul.f32 0.5, %v6134_v21  ;;  %v2563_v60 = vadd.f32 %v2307_v45, %v6172_v25  ;;  %v2181_v43 = vmul.f32 0.044715, %v1669_v30  ;;  %v6225_v17 = vpop.f32.mrb[57].mxu1 }
 0x188   :  { %v4279_v27 = vpop.eup %4278  ;;  %v3457_v6 = vmul.f32 %v3201_v7, %v1921_v50  ;;  %v2436_v29 = vadd.f32 %v2180_v8, %v6178_v48  ;;  %v2564_v44 = vadd.f32 %v2308_v12, %v6182_v34  ;;  %v1797_v47 = vmul.f32 %v1541_v38, %v6209_v4  ;;  %8322 = vst [vmem:[#allocation19_spill] sm:$0xff] %v6225_v17  ;;  %v6230_v38 = vpop.f32.mrb[58].mxu0 }
 0x189   :  { %v4281_v0 = vpop.eup %4280  ;;  %v3329_v3 = vadd.f32 1.0, %v4279_v27  ;;  %v2819_v19 = vmul.f32 0.7978846, %v2563_v60  ;;  %v2437_v21 = vadd.f32 %v2181_v43, %v6191_v24  ;;  %v1414_v58 = vmul.f32 %v6214_v23, %v6214_v23  ;;  %8323 = vst [vmem:[#allocation20_spill] sm:$0xff] %v6230_v38  ;;  %v6233_v43 = vpop.f32.mrb[58].mxu1 }
 0x18a   :  { %v4283_v45 = vpop.eup %4282  ;;  %v3767_v30 = vadd.f32 %v3766_v20, %v3457_v6  ;;  %v3202_v63 = vadd.f32 1.0, %v4281_v0  ;;  %v2692_v50 = vmul.f32 0.7978846, %v2436_v29  ;;  %v2820_v7 = vmul.f32 0.7978846, %v2564_v44  ;;  %8324 = vst [vmem:[#allocation21_spill] sm:$0xff] %v6233_v43 }
 0x18b   :  { %v3585_v8 = vmul.f32 %v3329_v3, %v2049_v53  ;;  %v3330_v18 = vadd.f32 1.0, %v4283_v45  ;;  %4286 = vtanh.f32 %v2819_v19  ;;  %v2693_v12 = vmul.f32 0.7978846, %v2437_v21  ;;  %v8326_v3 = vld [vmem:[#allocation23_spill] sm:$0xff] }
 0x18c   :  { %v3458_v17 = vmul.f32 %v3202_v63, %v1922_v33  ;;  %4288 = vtanh.f32 %v2692_v50  ;;  %v2309_v27 = vmul.f32 0.044715, %v1797_v47  ;;  %v1670_v60 = vmul.f32 %v1414_v58, %v6214_v23  ;;  %v8325_v47 = vld [vmem:[#allocation22_spill] sm:$0xff] }
 0x18d   :  { %v4285_v13 = vpop.eup %4284  ;;  %v3931_v32 = vadd.f32 %v6167_v35, %v3585_v8  ;;  %v3586_v20 = vmul.f32 %v3330_v18, %v2050_v39  ;;  %v2051_v6 = vmul.f32 0.5, %v6172_v25  ;;  %4290 = vtanh.f32 %v2820_v7  ;;  %v8327_v25 = vld [vmem:[#allocation24_spill] sm:$0xff] }
 0x18e   :  { %v3699_v53 = vadd.f32 %v6174_v41, %v3458_v17  ;;  %v3203_v29 = vadd.f32 1.0, %v4285_v13  ;;  %4292 = vtanh.f32 %v2693_v12  ;;  %v2565_v44 = vadd.f32 %v2309_v27, %v6209_v4  ;;  %v8328_v41 = vld [vmem:[#allocation25_spill] sm:$0xff] }
 0x18f   :  { %v3863_v33 = vadd.f32 %v3862_v62, %v3586_v20  ;;  %v2182_v63 = vmul.f32 0.044715, %v1670_v60  ;;  %v6241_v0 = vadd.f32 %v8325_v47, %v5264_v51  ;;  %v6245_v19 = vadd.f32 %v8326_v3, %v5268_v52 }
 0x190   :  { %v3459_v35 = vmul.f32 %v3203_v29, %v1923_v5  ;;  %v2821_v18 = vmul.f32 0.7978846, %v2565_v44  ;;  %v6249_v39 = vadd.f32 %v8327_v25, %v5268_v52  ;;  %v6253_v13 = vadd.f32 %v8328_v41, %v5264_v51  ;;  %v6261_v5 = vpop.f32.mrb[59].mxu0  ;;  %v6277_v44 = vpop.f32.mrb[59].mxu1  ;;  %v8332_v41 = vld [vmem:[#allocation27_spill] sm:$0xff] }
 0x191   :  { %v1924_v62 = vmul.f32 0.5, %v6178_v48  ;;  %v2438_v17 = vadd.f32 %v2182_v63, %v6214_v23  ;;  %v1542_v21 = vmul.f32 %v6241_v0, %v6241_v0  ;;  %v1415_v58 = vmul.f32 %v6245_v19, %v6245_v19  ;;  %8329 = vst [vmem:[#allocation22_spill] sm:$0xff] %v6261_v5  ;;  %8331 = vst [vmem:[#allocation23_spill] sm:$0xff] %v6277_v44  ;;  %v6290_v43 = vpop.f32.mrb[60].mxu0  ;;  %v6293_v16 = vpop.f32.mrb[60].mxu1 }
 0x192   :  { %v3768_v45 = vadd.f32 %v3767_v30, %v3459_v35  ;;  %v2052_v50 = vmul.f32 0.5, %v6182_v34  ;;  %4294 = vtanh.f32 %v2821_v18  ;;  %v1543_v7 = vmul.f32 %v6249_v39, %v6249_v39  ;;  %v8330_v34 = vld [vmem:[#allocation26_spill] sm:$0xff] }
 0x193   :  { %v1925_v8 = vmul.f32 0.5, %v6191_v24  ;;  %v2694_v48 = vmul.f32 0.7978846, %v2438_v17  ;;  %v1798_v12 = vmul.f32 %v1542_v21, %v6241_v0  ;;  %v1671_v27 = vmul.f32 %v1415_v58, %v6245_v19 }
 0x194   :  { %v2053_v60 = vmul.f32 0.5, %v6209_v4  ;;  %v1799_v20 = vmul.f32 %v1543_v7, %v6249_v39  ;;  %v1416_v30 = vmul.f32 %v6253_v13, %v6253_v13  ;;  %v6275_v29 = vadd.f32 %v8330_v34, %v5264_v51 }
 0x195   :  { %v4287_v63 = vpop.eup %4286  ;;  %v1926_v24 = vmul.f32 0.5, %v6214_v23  ;;  %4296 = vtanh.f32 %v2694_v48  ;;  %v2310_v47 = vmul.f32 0.044715, %v1798_v12  ;;  %v2183_v3 = vmul.f32 0.044715, %v1671_v27 }
 0x196   :  { %v4289_v35 = vpop.eup %4288  ;;  %v3331_v18 = vadd.f32 1.0, %v4287_v63  ;;  %v2311_v4 = vmul.f32 0.044715, %v1799_v20  ;;  %v1672_v25 = vmul.f32 %v1416_v30, %v6253_v13  ;;  %v6283_v17 = vadd.f32 %v8332_v41, %v5268_v52 }
 0x197   :  { %v4291_v21 = vpop.eup %4290  ;;  %v3204_v58 = vadd.f32 1.0, %v4289_v35  ;;  %v2566_v7 = vadd.f32 %v2310_v47, %v6241_v0  ;;  %v2439_v34 = vadd.f32 %v2183_v3, %v6245_v19  ;;  %v1544_v23 = vmul.f32 %v6275_v29, %v6275_v29 }
 0x198   :  { %v4293_v48 = vpop.eup %4292  ;;  %v3587_v12 = vmul.f32 %v3331_v18, %v2051_v6  ;;  %v3332_v27 = vadd.f32 1.0, %v4291_v21  ;;  %v2567_v20 = vadd.f32 %v2311_v4, %v6249_v39  ;;  %v2184_v63 = vmul.f32 0.044715, %v1672_v25  ;;  %v6296_v18 = vpop.f32.mrb[61].mxu0 }
 0x199   :  { %v3460_v30 = vmul.f32 %v3204_v58, %v1924_v62  ;;  %v3205_v44 = vadd.f32 1.0, %v4293_v48  ;;  %v2822_v5 = vmul.f32 0.7978846, %v2566_v7  ;;  %v2695_v41 = vmul.f32 0.7978846, %v2439_v34 }
 0x19a   :  { %v3932_v35 = vadd.f32 %v3931_v32, %v3587_v12  ;;  %v3588_v38 = vmul.f32 %v3332_v27, %v2052_v50  ;;  %v2823_v47 = vmul.f32 0.7978846, %v2567_v20  ;;  %v2440_v3 = vadd.f32 %v2184_v63, %v6253_v13  ;;  %v6302_v50 = vpop.f32.mrb[61].mxu1 }
 0x19b   :  { %v3700_v9 = vadd.f32 %v3699_v53, %v3460_v30  ;;  %v3461_v46 = vmul.f32 %v3205_v44, %v1925_v8  ;;  %4298 = vtanh.f32 %v2822_v5  ;;  %v1800_v6 = vmul.f32 %v1544_v23, %v6275_v29 }
 0x19c   :  { %v4295_v62 = vpop.eup %4294  ;;  %v6298_v4 = vadd.f32 %v3863_v33, %v3588_v38  ;;  %4300 = vtanh.f32 %v2695_v41  ;;  %v2696_v25 = vmul.f32 0.7978846, %v2440_v3  ;;  %v1417_v32 = vmul.f32 %v6283_v17, %v6283_v17  ;;  %v6338_v3 = vpop.f32.mrb[62].mxu0 }
 0x19d   :  { %v6304_v21 = vadd.f32 %v3768_v45, %v3461_v46  ;;  %v3333_v58 = vadd.f32 1.0, %v4295_v62  ;;  %4302 = vtanh.f32 %v2823_v47  ;;  %v2312_v53 = vmul.f32 0.044715, %v1800_v6  ;;  %v6340_v6 = vpop.f32.mrb[62].mxu1 }
 0x19e   :  { %v2054_v5 = vmul.f32 0.5, %v6241_v0  ;;  %4304 = vtanh.f32 %v2696_v25  ;;  %v1673_v8 = vmul.f32 %v1417_v32, %v6283_v17  ;;  %v6310_v38 = vadd.f32 %v5781_v37, %v5268_v52 }
 0x19f   :  { %v4297_v33 = vpop.eup %4296  ;;  %v3589_v44 = vmul.f32 %v3333_v58, %v2053_v60  ;;  %v2568_v7 = vadd.f32 %v2312_v53, %v6275_v29  ;;  %v6315_v46 = vadd.f32 %v5784_v54, %v5264_v51  ;;  %v6319_v45 = vadd.f32 %v5786_v31, %v5264_v51 }
 0x1a0   :  { %v3206_v0 = vadd.f32 1.0, %v4297_v33  ;;  %v1927_v34 = vmul.f32 0.5, %v6245_v19  ;;  %v2185_v23 = vmul.f32 0.044715, %v1673_v8  ;;  %v1545_v37 = vmul.f32 %v6310_v38, %v6310_v38  ;;  %v6350_v33 = vpop.f32.mrb[63].mxu0 }
 0x1a1   :  { %v3933_v48 = vadd.f32 %v3932_v35, %v3589_v44  ;;  %v2055_v60 = vmul.f32 0.5, %v6249_v39  ;;  %v2824_v12 = vmul.f32 0.7978846, %v2568_v7  ;;  %v1418_v27 = vmul.f32 %v6315_v46, %v6315_v46 }
 0x1a2   :  { %v3462_v54 = vmul.f32 %v3206_v0, %v1926_v24  ;;  %v2441_v20 = vadd.f32 %v2185_v23, %v6283_v17  ;;  %v1801_v31 = vmul.f32 %v1545_v37, %v6310_v38  ;;  %v1546_v63 = vmul.f32 %v6319_v45, %v6319_v45 }
 0x1a3   :  { %v1928_v19 = vmul.f32 0.5, %v6253_v13  ;;  %4306 = vtanh.f32 %v2824_v12  ;;  %v1674_v30 = vmul.f32 %v1418_v27, %v6315_v46  ;;  %v6335_v39 = vadd.f32 %v5790_v40, %v5268_v52 }
 0x1a4   :  { %v3701_v41 = vadd.f32 %v3700_v9, %v3462_v54  ;;  %v2697_v35 = vmul.f32 0.7978846, %v2441_v20  ;;  %v2313_v47 = vmul.f32 0.044715, %v1801_v31  ;;  %v1802_v24 = vmul.f32 %v1546_v63, %v6319_v45  ;;  %v6357_v20 = vpop.f32.mrb[63].mxu1 }
 0x1a5   :  { %v4299_v62 = vpop.eup %4298  ;;  %v2056_v25 = vmul.f32 0.5, %v6275_v29  ;;  %v2186_v13 = vmul.f32 0.044715, %v1674_v30  ;;  %v1419_v32 = vmul.f32 %v6335_v39, %v6335_v39  ;;  %v6347_v40 = vadd.f32 %v5792_v11, %v5268_v52 }
 0x1a6   :  { %v4301_v9 = vpop.eup %4300  ;;  %v3334_v58 = vadd.f32 1.0, %v4299_v62  ;;  %4308 = vtanh.f32 %v2697_v35  ;;  %v2569_v53 = vadd.f32 %v2313_v47, %v6310_v38  ;;  %v2314_v8 = vmul.f32 0.044715, %v1802_v24 }
 0x1a7   :  { %v4303_v44 = vpop.eup %4302  ;;  %v3207_v7 = vadd.f32 1.0, %v4301_v9  ;;  %v2442_v29 = vadd.f32 %v2186_v13, %v6315_v46  ;;  %v1675_v0 = vmul.f32 %v1419_v32, %v6335_v39  ;;  %v1547_v23 = vmul.f32 %v6347_v40, %v6347_v40 }
 0x1a8   :  { %v4305_v37 = vpop.eup %4304  ;;  %v3590_v11 = vmul.f32 %v3334_v58, %v2054_v5  ;;  %v3335_v12 = vadd.f32 1.0, %v4303_v44  ;;  %v2825_v27 = vmul.f32 0.7978846, %v2569_v53  ;;  %v2570_v54 = vadd.f32 %v2314_v8, %v6319_v45  ;;  %v6364_v53 = vpop.f32.mrb[64].mxu0 }
 0x1a9   :  { %v3463_v31 = vmul.f32 %v3207_v7, %v1927_v34  ;;  %v3208_v63 = vadd.f32 1.0, %v4305_v37  ;;  %v2698_v30 = vmul.f32 0.7978846, %v2442_v29  ;;  %v2187_v35 = vmul.f32 0.044715, %v1675_v0  ;;  %v8334_v29 = vld [vmem:[#allocation29_spill] sm:$0xff] }
 0x1aa   :  { %v3865_v47 = vadd.f32 %v6298_v4, %v3590_v11  ;;  %v3591_v24 = vmul.f32 %v3335_v12, %v2055_v60  ;;  %4310 = vtanh.f32 %v2825_v27  ;;  %v2826_v62 = vmul.f32 0.7978846, %v2570_v54 }
 0x1ab   :  { %v3770_v13 = vadd.f32 %v6304_v21, %v3463_v31  ;;  %v3464_v32 = vmul.f32 %v3208_v63, %v1928_v19  ;;  %4312 = vtanh.f32 %v2698_v30  ;;  %v2443_v5 = vadd.f32 %v2187_v35, %v6335_v39 }
 0x1ac   :  { %v3934_v9 = vadd.f32 %v3933_v48, %v3591_v24  ;;  %v1929_v58 = vmul.f32 0.5, %v6283_v17  ;;  %4314 = vtanh.f32 %v2826_v62  ;;  %v1803_v34 = vmul.f32 %v1547_v23, %v6347_v40  ;;  %v8333_v17 = vld [vmem:[#allocation28_spill] sm:$0xff]  ;;  %v6387_v23 = vpop.f32.mrb[64].mxu1 }
 0x1ad   :  { %v4307_v8 = vpop.eup %4306  ;;  %v3702_v44 = vadd.f32 %v3701_v41, %v3464_v32  ;;  %v2699_v4 = vmul.f32 0.7978846, %v2443_v5  ;;  %v6368_v60 = vadd.f32 %v5834_v59, %v5264_v51  ;;  %v6372_v21 = vadd.f32 %v5836_v14, %v5264_v51 }
 0x1ae   :  { %v3336_v19 = vadd.f32 1.0, %v4307_v8  ;;  %v2315_v48 = vmul.f32 0.044715, %v1803_v34  ;;  %v6376_v7 = vadd.f32 %v8333_v17, %v5268_v52  ;;  %v6380_v0 = vadd.f32 %v8334_v29, %v5268_v52  ;;  %v6400_v8 = vpop.f32.mrb[65].mxu0 }
 0x1af   :  { %v2057_v41 = vmul.f32 0.5, %v6310_v38  ;;  %4316 = vtanh.f32 %v2699_v4  ;;  %v1420_v59 = vmul.f32 %v6368_v60, %v6368_v60  ;;  %v1548_v14 = vmul.f32 %v6372_v21, %v6372_v21 }
 0x1b0   :  { %v4309_v37 = vpop.eup %4308  ;;  %v3592_v11 = vmul.f32 %v3336_v19, %v2056_v25  ;;  %v1930_v12 = vmul.f32 0.5, %v6315_v46  ;;  %v2571_v27 = vadd.f32 %v2315_v48, %v6347_v40  ;;  %v1421_v54 = vmul.f32 %v6376_v7, %v6376_v7 }
 0x1b1   :  { %v3209_v31 = vadd.f32 1.0, %v4309_v37  ;;  %v2058_v38 = vmul.f32 0.5, %v6319_v45  ;;  %v1676_v63 = vmul.f32 %v1420_v59, %v6368_v60  ;;  %v1804_v30 = vmul.f32 %v1548_v14, %v6372_v21  ;;  %v6409_v59 = vpop.f32.mrb[65].mxu1 }
 0x1b2   :  { %v3866_v35 = vadd.f32 %v3865_v47, %v3592_v11  ;;  %v2827_v24 = vmul.f32 0.7978846, %v2571_v27  ;;  %v1677_v62 = vmul.f32 %v1421_v54, %v6376_v7  ;;  %v1549_v25 = vmul.f32 %v6380_v0, %v6380_v0 }
 0x1b3   :  { %v3465_v46 = vmul.f32 %v3209_v31, %v1929_v58  ;;  %v1931_v32 = vmul.f32 0.5, %v6335_v39  ;;  %v2188_v5 = vmul.f32 0.044715, %v1676_v63  ;;  %v2316_v34 = vmul.f32 0.044715, %v1804_v30 }
 0x1b4   :  { %v4311_v4 = vpop.eup %4310  ;;  %4318 = vtanh.f32 %v2827_v24  ;;  %v2189_v45 = vmul.f32 0.044715, %v1677_v62  ;;  %v1805_v19 = vmul.f32 %v1549_v25, %v6380_v0  ;;  %v6405_v47 = vadd.f32 %v5858_v36, %v5264_v51 }
 0x1b5   :  { %v4313_v48 = vpop.eup %4312  ;;  %v3771_v17 = vadd.f32 %v3770_v13, %v3465_v46  ;;  %v3337_v29 = vadd.f32 1.0, %v4311_v4  ;;  %v2444_v58 = vadd.f32 %v2188_v5, %v6368_v60  ;;  %v2572_v39 = vadd.f32 %v2316_v34, %v6372_v21 }
 0x1b6   :  { %v4315_v14 = vpop.eup %4314  ;;  %v3210_v37 = vadd.f32 1.0, %v4313_v48  ;;  %v2445_v11 = vadd.f32 %v2189_v45, %v6376_v7  ;;  %v2317_v27 = vmul.f32 0.044715, %v1805_v19  ;;  %v1422_v54 = vmul.f32 %v6405_v47, %v6405_v47  ;;  %v6417_v45 = vpop.f32.mrb[66].mxu0 }
 0x1b7   :  { %v3593_v31 = vmul.f32 %v3337_v29, %v2057_v41  ;;  %v3338_v36 = vadd.f32 1.0, %v4315_v14  ;;  %v2700_v63 = vmul.f32 0.7978846, %v2444_v58  ;;  %v2828_v30 = vmul.f32 0.7978846, %v2572_v39  ;;  %v6419_v19 = vpop.f32.mrb[66].mxu1 }
 0x1b8   :  { %v3466_v13 = vmul.f32 %v3210_v37, %v1930_v12  ;;  %v2701_v24 = vmul.f32 0.7978846, %v2445_v11  ;;  %v2573_v62 = vadd.f32 %v2317_v27, %v6380_v0  ;;  %v1678_v25 = vmul.f32 %v1422_v54, %v6405_v47 }
 0x1b9   :  { %v4317_v46 = vpop.eup %4316  ;;  %v3935_v5 = vadd.f32 %v3934_v9, %v3593_v31  ;;  %v3594_v34 = vmul.f32 %v3338_v36, %v2058_v38  ;;  %v2059_v4 = vmul.f32 0.5, %v6347_v40  ;;  %4320 = vtanh.f32 %v2700_v63  ;;  %v6429_v38 = vpop.f32.mrb[67].mxu0 }
 0x1ba   :  { %v6421_v41 = vadd.f32 %v3702_v44, %v3466_v13  ;;  %v3211_v48 = vadd.f32 1.0, %v4317_v46  ;;  %4322 = vtanh.f32 %v2828_v30  ;;  %v2829_v12 = vmul.f32 0.7978846, %v2573_v62  ;;  %v8335_v44 = vld [vmem:[#allocation30_spill] sm:$0xff]  ;;  %v6454_v13 = vpop.f32.mrb[67].mxu1 }
 0x1bb   :  { %v6423_v29 = vadd.f32 %v3866_v35, %v3594_v34  ;;  %4324 = vtanh.f32 %v2701_v24  ;;  %v2190_v58 = vmul.f32 0.044715, %v1678_v25  ;;  %v6427_v9 = vadd.f32 %v5874_v42, %v5264_v51 }
 0x1bc   :  { %v3467_v40 = vmul.f32 %v3211_v48, %v1931_v32  ;;  %4326 = vtanh.f32 %v2829_v12  ;;  %v6433_v39 = vadd.f32 %v5900_v15, %v5268_v52  ;;  %v6437_v14 = vadd.f32 %v8335_v44, %v5268_v52 }
 0x1bd   :  { %v1932_v35 = vmul.f32 0.5, %v6368_v60  ;;  %v2446_v37 = vadd.f32 %v2190_v58, %v6405_v47  ;;  %v1550_v42 = vmul.f32 %v6427_v9, %v6427_v9  ;;  %v6445_v11 = vadd.f32 %v5914_v26, %v5264_v51 }
 0x1be   :  { %v4319_v32 = vpop.eup %4318  ;;  %v3772_v27 = vadd.f32 %v3771_v17, %v3467_v40  ;;  %v2060_v15 = vmul.f32 0.5, %v6372_v21  ;;  %v1423_v54 = vmul.f32 %v6433_v39, %v6433_v39  ;;  %v1551_v31 = vmul.f32 %v6437_v14, %v6437_v14 }
 0x1bf   :  { %v3339_v60 = vadd.f32 1.0, %v4319_v32  ;;  %v1933_v36 = vmul.f32 0.5, %v6376_v7  ;;  %v2702_v63 = vmul.f32 0.7978846, %v2446_v37  ;;  %v1806_v30 = vmul.f32 %v1550_v42, %v6427_v9 }
 0x1c0   :  { %v2061_v26 = vmul.f32 0.5, %v6380_v0  ;;  %v1679_v17 = vmul.f32 %v1423_v54, %v6433_v39  ;;  %v1807_v21 = vmul.f32 %v1551_v31, %v6437_v14  ;;  %v1424_v24 = vmul.f32 %v6445_v11, %v6445_v11 }
 0x1c1   :  { %v3595_v62 = vmul.f32 %v3339_v60, %v2059_v4  ;;  %4328 = vtanh.f32 %v2702_v63  ;;  %v2318_v25 = vmul.f32 0.044715, %v1806_v30  ;;  %v6463_v7 = vadd.f32 %v5916_v57, %v5264_v51 }
 0x1c2   :  { %v2191_v46 = vmul.f32 0.044715, %v1679_v17  ;;  %v2319_v34 = vmul.f32 0.044715, %v1807_v21  ;;  %v1680_v48 = vmul.f32 %v1424_v24, %v6445_v11  ;;  %v6468_v0 = vadd.f32 %v5919_v61, %v5268_v52 }
 0x1c3   :  { %v4321_v12 = vpop.eup %4320  ;;  %v3936_v58 = vadd.f32 %v3935_v5, %v3595_v62  ;;  %v1934_v40 = vmul.f32 0.5, %v6405_v47  ;;  %v2574_v4 = vadd.f32 %v2318_v25, %v6427_v9  ;;  %v1552_v44 = vmul.f32 %v6463_v7, %v6463_v7  ;;  %v6479_v62 = vpop.f32.mrb[68].mxu0 }
 0x1c4   :  { %v4323_v37 = vpop.eup %4322  ;;  %v3212_v57 = vadd.f32 1.0, %v4321_v12  ;;  %v2447_v42 = vadd.f32 %v2191_v46, %v6433_v39  ;;  %v2575_v32 = vadd.f32 %v2319_v34, %v6437_v14  ;;  %v2192_v54 = vmul.f32 0.044715, %v1680_v48  ;;  %v6482_v48 = vpop.f32.mrb[68].mxu1 }
 0x1c5   :  { %v4325_v31 = vpop.eup %4324  ;;  %v3340_v60 = vadd.f32 1.0, %v4323_v37  ;;  %v2830_v61 = vmul.f32 0.7978846, %v2574_v4  ;;  %v1808_v63 = vmul.f32 %v1552_v44, %v6463_v7  ;;  %v1425_v47 = vmul.f32 %v6468_v0, %v6468_v0  ;;  %v6484_v12 = vpop.f32.mrb[69].mxu0 }
 0x1c6   :  { %v4327_v5 = vpop.eup %4326  ;;  %v3468_v30 = vmul.f32 %v3212_v57, %v1932_v35  ;;  %v3213_v17 = vadd.f32 1.0, %v4325_v31  ;;  %v2703_v21 = vmul.f32 0.7978846, %v2447_v42  ;;  %v2831_v24 = vmul.f32 0.7978846, %v2575_v32  ;;  %v6487_v35 = vpop.f32.mrb[69].mxu1 }
 0x1c7   :  { %v3596_v25 = vmul.f32 %v3340_v60, %v2060_v15  ;;  %v3341_v46 = vadd.f32 1.0, %v4327_v5  ;;  %4330 = vtanh.f32 %v2830_v61  ;;  %v2448_v34 = vadd.f32 %v2192_v54, %v6445_v11 }
 0x1c8   :  { %v3704_v4 = vadd.f32 %v6421_v41, %v3468_v30  ;;  %v3469_v44 = vmul.f32 %v3213_v17, %v1933_v36  ;;  %4332 = vtanh.f32 %v2703_v21  ;;  %v2320_v37 = vmul.f32 0.044715, %v1808_v63  ;;  %v6505_v63 = vpop.f32.mrb[70].mxu0 }
 0x1c9   :  { %v3868_v57 = vadd.f32 %v6423_v29, %v3596_v25  ;;  %v3597_v42 = vmul.f32 %v3341_v46, %v2061_v26  ;;  %4334 = vtanh.f32 %v2831_v24  ;;  %v2704_v15 = vmul.f32 0.7978846, %v2448_v34  ;;  %8336 = vst [vmem:[#allocation24_spill] sm:$0xff] %v6505_v63 }
 0x1ca   :  { %v3773_v32 = vadd.f32 %v3772_v27, %v3469_v44  ;;  %v2062_v31 = vmul.f32 0.5, %v6427_v9  ;;  %v2576_v54 = vadd.f32 %v2320_v37, %v6463_v7  ;;  %v1681_v60 = vmul.f32 %v1425_v47, %v6468_v0  ;;  %v6528_v44 = vpop.f32.mrb[70].mxu1 }
 0x1cb   :  { %v4329_v61 = vpop.eup %4328  ;;  %v3937_v5 = vadd.f32 %v3936_v58, %v3597_v42  ;;  %4336 = vtanh.f32 %v2704_v15  ;;  %v6495_v41 = vadd.f32 %v5950_v10, %v5268_v52  ;;  %v6499_v29 = vadd.f32 %v5975_v22, %v5264_v51  ;;  %8337 = vst [vmem:[#allocation25_spill] sm:$0xff] %v6528_v44 }
 0x1cc   :  { %v3214_v36 = vadd.f32 1.0, %v4329_v61  ;;  %v2832_v26 = vmul.f32 0.7978846, %v2576_v54  ;;  %v2193_v27 = vmul.f32 0.044715, %v1681_v60  ;;  %v6503_v9 = vadd.f32 %v5977_v28, %v5264_v51 }
 0x1cd   :  { %v1935_v58 = vmul.f32 0.5, %v6433_v39  ;;  %v2063_v47 = vmul.f32 0.5, %v6437_v14  ;;  %v1553_v10 = vmul.f32 %v6495_v41, %v6495_v41  ;;  %v1426_v22 = vmul.f32 %v6499_v29, %v6499_v29 }
 0x1ce   :  { %v3470_v30 = vmul.f32 %v3214_v36, %v1934_v40  ;;  %4338 = vtanh.f32 %v2832_v26  ;;  %v2449_v17 = vadd.f32 %v2193_v27, %v6468_v0  ;;  %v1554_v28 = vmul.f32 %v6503_v9, %v6503_v9 }
 0x1cf   :  { %v1936_v21 = vmul.f32 0.5, %v6445_v11  ;;  %v1809_v24 = vmul.f32 %v1553_v10, %v6495_v41  ;;  %v1682_v39 = vmul.f32 %v1426_v22, %v6499_v29  ;;  %v6521_v14 = vadd.f32 %v5980_v56, %v5268_v52 }
 0x1d0   :  { %v3705_v25 = vadd.f32 %v3704_v4, %v3470_v30  ;;  %v2705_v46 = vmul.f32 0.7978846, %v2449_v17  ;;  %v1810_v40 = vmul.f32 %v1554_v28, %v6503_v9  ;;  %v6526_v34 = vadd.f32 %v5982_v55, %v5268_v52  ;;  %v6540_v28 = vpop.f32.mrb[71].mxu0 }
 0x1d1   :  { %v4331_v37 = vpop.eup %4330  ;;  %v2064_v11 = vmul.f32 0.5, %v6463_v7  ;;  %v2321_v42 = vmul.f32 0.044715, %v1809_v24  ;;  %v2194_v15 = vmul.f32 0.044715, %v1682_v39  ;;  %v1427_v54 = vmul.f32 %v6521_v14, %v6521_v14  ;;  %v6542_v24 = vpop.f32.mrb[71].mxu1 }
 0x1d2   :  { %v4333_v56 = vpop.eup %4332  ;;  %v3342_v60 = vadd.f32 1.0, %v4331_v37  ;;  %4340 = vtanh.f32 %v2705_v46  ;;  %v2322_v4 = vmul.f32 0.044715, %v1810_v40  ;;  %v1555_v61 = vmul.f32 %v6526_v34, %v6526_v34  ;;  %8338 = vst [vmem:[#allocation26_spill] sm:$0xff] %v6542_v24 }
 0x1d3   :  { %v4335_v36 = vpop.eup %4334  ;;  %v3215_v55 = vadd.f32 1.0, %v4333_v56  ;;  %v2577_v26 = vadd.f32 %v2321_v42, %v6495_v41  ;;  %v2450_v27 = vadd.f32 %v2194_v15, %v6499_v29  ;;  %v1683_v7 = vmul.f32 %v1427_v54, %v6521_v14 }
 0x1d4   :  { %v3598_v10 = vmul.f32 %v3342_v60, %v2062_v31  ;;  %v3343_v22 = vadd.f32 1.0, %v4335_v36  ;;  %v2578_v30 = vadd.f32 %v2322_v4, %v6503_v9  ;;  %v1811_v17 = vmul.f32 %v1555_v61, %v6526_v34 }
 0x1d5   :  { %v4337_v39 = vpop.eup %4336  ;;  %v3471_v46 = vmul.f32 %v3215_v55, %v1935_v58  ;;  %v2833_v40 = vmul.f32 0.7978846, %v2577_v26  ;;  %v2706_v37 = vmul.f32 0.7978846, %v2450_v27  ;;  %v2195_v56 = vmul.f32 0.044715, %v1683_v7 }
 0x1d6   :  { %v3869_v42 = vadd.f32 %v3868_v57, %v3598_v10  ;;  %v3599_v44 = vmul.f32 %v3343_v22, %v2063_v47  ;;  %v3216_v15 = vadd.f32 1.0, %v4337_v39  ;;  %v2834_v63 = vmul.f32 0.7978846, %v2578_v30  ;;  %v6548_v58 = vpop.f32.mrb[72].mxu0  ;;  %v6550_v55 = vpop.f32.mrb[72].mxu1 }
 0x1d7   :  { %v3774_v54 = vadd.f32 %v3773_v32, %v3471_v46  ;;  %v1937_v31 = vmul.f32 0.5, %v6468_v0  ;;  %4342 = vtanh.f32 %v2833_v40  ;;  %v2451_v60 = vadd.f32 %v2195_v56, %v6521_v14  ;;  %v8340_v40 = vld [vmem:[#allocation7_spill] sm:$0xff]  ;;  %v8341_v56 = vld [vmem:[#allocation32_spill] sm:$0xff] }
 0x1d8   :  { %v4339_v4 = vpop.eup %4338  ;;  %v6546_v61 = vadd.f32 %v3937_v5, %v3599_v44  ;;  %v3472_v36 = vmul.f32 %v3216_v15, %v1936_v21  ;;  %4344 = vtanh.f32 %v2706_v37  ;;  %v2323_v24 = vmul.f32 0.044715, %v1811_v17 }
 0x1d9   :  { %v3344_v57 = vadd.f32 1.0, %v4339_v4  ;;  %4346 = vtanh.f32 %v2834_v63  ;;  %v2707_v47 = vmul.f32 0.7978846, %v2451_v60  ;;  %v6554_v32 = vadd.f32 %v6016_v1, %v5264_v51 }
 0x1da   :  { %v3706_v0 = vadd.f32 %v3705_v25, %v3472_v36  ;;  %v2579_v26 = vadd.f32 %v2323_v24, %v6526_v34  ;;  %v6559_v5 = vadd.f32 %v6022_v49, %v5264_v51  ;;  %v6563_v21 = vadd.f32 %v6030_v2, %v5268_v52  ;;  %v6592_v36 = vpop.f32.mrb[73].mxu0 }
 0x1db   :  { %v3600_v44 = vmul.f32 %v3344_v57, %v2064_v11  ;;  %v2065_v27 = vmul.f32 0.5, %v6495_v41  ;;  %4348 = vtanh.f32 %v2707_v47  ;;  %v1428_v63 = vmul.f32 %v6554_v32, %v6554_v32 }
 0x1dc   :  { %v4341_v1 = vpop.eup %4340  ;;  %v1938_v25 = vmul.f32 0.5, %v6499_v29  ;;  %v2835_v7 = vmul.f32 0.7978846, %v2579_v26  ;;  %v1556_v10 = vmul.f32 %v6559_v5, %v6559_v5  ;;  %v1429_v49 = vmul.f32 %v6563_v21, %v6563_v21  ;;  %v8339_v29 = vld [vmem:[#allocation31_spill] sm:$0xff] }
 0x1dd   :  { %v3870_v22 = vadd.f32 %v3869_v42, %v3600_v44  ;;  %v3217_v2 = vadd.f32 1.0, %v4341_v1  ;;  %v2066_v11 = vmul.f32 0.5, %v6503_v9  ;;  %v1684_v41 = vmul.f32 %v1428_v63, %v6554_v32 }
 0x1de   :  { %4350 = vtanh.f32 %v2835_v7  ;;  %v1812_v30 = vmul.f32 %v1556_v10, %v6559_v5  ;;  %v1685_v17 = vmul.f32 %v1429_v49, %v6563_v21  ;;  %v6579_v24 = vadd.f32 %v8339_v29, %v5268_v52  ;;  %v6601_v49 = vpop.f32.mrb[73].mxu1 }
 0x1df   :  { %v3473_v39 = vmul.f32 %v3217_v2, %v1937_v31  ;;  %v2196_v46 = vmul.f32 0.044715, %v1684_v41  ;;  %v6583_v37 = vadd.f32 %v8340_v40, %v5264_v51  ;;  %v6587_v9 = vadd.f32 %v8341_v56, %v5264_v51  ;;  %8342 = vst [vmem:[#allocation27_spill] sm:$0xff] %v6601_v49 }
 0x1e0   :  { %v1939_v42 = vmul.f32 0.5, %v6521_v14  ;;  %v2324_v15 = vmul.f32 0.044715, %v1812_v30  ;;  %v2197_v60 = vmul.f32 0.044715, %v1685_v17  ;;  %v1557_v4 = vmul.f32 %v6579_v24, %v6579_v24 }
 0x1e1   :  { %v4343_v57 = vpop.eup %4342  ;;  %v3775_v31 = vadd.f32 %v3774_v54, %v3473_v39  ;;  %v2067_v47 = vmul.f32 0.5, %v6526_v34  ;;  %v2452_v26 = vadd.f32 %v2196_v46, %v6554_v32  ;;  %v1430_v44 = vmul.f32 %v6583_v37, %v6583_v37 }
 0x1e2   :  { %v4345_v63 = vpop.eup %4344  ;;  %v3345_v1 = vadd.f32 1.0, %v4343_v57  ;;  %v2580_v14 = vadd.f32 %v2324_v15, %v6559_v5  ;;  %v2453_v7 = vadd.f32 %v2197_v60, %v6563_v21  ;;  %v1813_v10 = vmul.f32 %v1557_v4, %v6579_v24 }
 0x1e3   :  { %v4347_v2 = vpop.eup %4346  ;;  %v3218_v41 = vadd.f32 1.0, %v4345_v63  ;;  %v2708_v54 = vmul.f32 0.7978846, %v2452_v26  ;;  %v1686_v34 = vmul.f32 %v1430_v44, %v6583_v37  ;;  %v1558_v30 = vmul.f32 %v6587_v9, %v6587_v9  ;;  %v6607_v26 = vpop.f32.mrb[74].mxu0 }
 0x1e4   :  { %v3601_v17 = vmul.f32 %v3345_v1, %v2065_v27  ;;  %v3346_v29 = vadd.f32 1.0, %v4347_v2  ;;  %v2836_v39 = vmul.f32 0.7978846, %v2580_v14  ;;  %v2709_v46 = vmul.f32 0.7978846, %v2453_v7  ;;  %v6609_v44 = vpop.f32.mrb[74].mxu1 }
 0x1e5   :  { %v4349_v40 = vpop.eup %4348  ;;  %v3474_v56 = vmul.f32 %v3218_v41, %v1938_v25  ;;  %4352 = vtanh.f32 %v2708_v54  ;;  %v2325_v15 = vmul.f32 0.044715, %v1813_v10  ;;  %v2198_v60 = vmul.f32 0.044715, %v1686_v34  ;;  %8343 = vst [vmem:[#allocation28_spill] sm:$0xff] %v6609_v44  ;;  %v6613_v14 = vpop.f32.mrb[75].mxu0 }
 0x1e6   :  { %v3939_v4 = vadd.f32 %v6546_v61, %v3601_v17  ;;  %v3602_v57 = vmul.f32 %v3346_v29, %v2066_v11  ;;  %v3219_v49 = vadd.f32 1.0, %v4349_v40  ;;  %4354 = vtanh.f32 %v2836_v39  ;;  %8344 = vst [vmem:[#allocation29_spill] sm:$0xff] %v6613_v14  ;;  %v8345_v34 = vld [vmem:[#allocation8_spill] sm:$0xff]  ;;  %v8346_v39 = vld [vmem:[#allocation9_spill] sm:$0xff] }
 0x1e7   :  { %v3707_v63 = vadd.f32 %v3706_v0, %v3474_v56  ;;  %4356 = vtanh.f32 %v2709_v46  ;;  %v2581_v27 = vadd.f32 %v2325_v15, %v6579_v24  ;;  %v2454_v1 = vadd.f32 %v2198_v60, %v6583_v37 }
 0x1e8   :  { %v4351_v25 = vpop.eup %4350  ;;  %v3871_v7 = vadd.f32 %v3870_v22, %v3602_v57  ;;  %v3475_v10 = vmul.f32 %v3219_v49, %v1939_v42  ;;  %v1940_v61 = vmul.f32 0.5, %v6554_v32  ;;  %v1814_v11 = vmul.f32 %v1558_v30, %v6587_v9  ;;  %v8347_v22 = vld [vmem:[#allocation10_spill] sm:$0xff]  ;;  %v6642_v57 = vpop.f32.mrb[75].mxu1 }
 0x1e9   :  { %v3347_v2 = vadd.f32 1.0, %v4351_v25  ;;  %v2837_v41 = vmul.f32 0.7978846, %v2581_v27  ;;  %v2710_v54 = vmul.f32 0.7978846, %v2454_v1  ;;  %v6619_v0 = vadd.f32 %v8345_v34, %v5268_v52  ;;  %8348 = vst [vmem:[#allocation30_spill] sm:$0xff] %v6642_v57 }
 0x1ea   :  { %v3776_v17 = vadd.f32 %v3775_v31, %v3475_v10  ;;  %v2326_v29 = vmul.f32 0.044715, %v1814_v11  ;;  %v6623_v46 = vadd.f32 %v8346_v39, %v5268_v52  ;;  %v6627_v42 = vadd.f32 %v8347_v22, %v5264_v51  ;;  %v8349_v25 = vld [vmem:[#allocation11_spill] sm:$0xff] }
 0x1eb   :  { %v3603_v32 = vmul.f32 %v3347_v2, %v2067_v47  ;;  %v2068_v49 = vmul.f32 0.5, %v6559_v5  ;;  %4358 = vtanh.f32 %v2837_v41  ;;  %v1431_v30 = vmul.f32 %v6619_v0, %v6619_v0  ;;  %v8350_v2 = vld [vmem:[#allocation12_spill] sm:$0xff] }
 0x1ec   :  { %v1941_v40 = vmul.f32 0.5, %v6563_v21  ;;  %4360 = vtanh.f32 %v2710_v54  ;;  %v2582_v31 = vadd.f32 %v2326_v29, %v6587_v9  ;;  %v1559_v56 = vmul.f32 %v6623_v46, %v6623_v46  ;;  %v8351_v54 = vld [vmem:[#allocation13_spill] sm:$0xff] }
 0x1ed   :  { %v6636_v15 = vadd.f32 %v3939_v4, %v3603_v32  ;;  %v2069_v60 = vmul.f32 0.5, %v6579_v24  ;;  %v1687_v47 = vmul.f32 %v1431_v30, %v6619_v0  ;;  %v1432_v5 = vmul.f32 %v6627_v42, %v6627_v42 }
 0x1ee   :  { %v1942_v27 = vmul.f32 0.5, %v6583_v37  ;;  %v2838_v21 = vmul.f32 0.7978846, %v2582_v31  ;;  %v1815_v1 = vmul.f32 %v1559_v56, %v6623_v46  ;;  %v6648_v10 = vadd.f32 %v8349_v25, %v5264_v51 }
 0x1ef   :  { %v4353_v4 = vpop.eup %4352  ;;  %v2199_v11 = vmul.f32 0.044715, %v1687_v47  ;;  %v1688_v24 = vmul.f32 %v1432_v5, %v6627_v42  ;;  %v6653_v41 = vadd.f32 %v8350_v2, %v5268_v52  ;;  %v6657_v34 = vadd.f32 %v8351_v54, %v5268_v52  ;;  %v8352_v47 = vld [vmem:[#allocation14_spill] sm:$0xff] }
 0x1f0   :  { %v4355_v37 = vpop.eup %4354  ;;  %v3220_v29 = vadd.f32 1.0, %v4353_v4  ;;  %4362 = vtanh.f32 %v2838_v21  ;;  %v2327_v39 = vmul.f32 0.044715, %v1815_v1  ;;  %v1560_v22 = vmul.f32 %v6648_v10, %v6648_v10  ;;  %v6668_v21 = vpop.f32.mrb[76].mxu0 }
 0x1f1   :  { %v4357_v32 = vpop.eup %4356  ;;  %v3348_v30 = vadd.f32 1.0, %v4355_v37  ;;  %v2455_v31 = vadd.f32 %v2199_v11, %v6619_v0  ;;  %v2200_v56 = vmul.f32 0.044715, %v1688_v24  ;;  %v6664_v5 = vadd.f32 %v8352_v47, %v5264_v51  ;;  %8353 = vst [vmem:[#allocation31_spill] sm:$0xff] %v6668_v21  ;;  %v6670_v1 = vpop.f32.mrb[76].mxu1 }
 0x1f2   :  { %v3476_v25 = vmul.f32 %v3220_v29, %v1940_v61  ;;  %v3221_v2 = vadd.f32 1.0, %v4357_v32  ;;  %v2583_v54 = vadd.f32 %v2327_v39, %v6623_v46  ;;  %v1816_v4 = vmul.f32 %v1560_v22, %v6648_v10  ;;  %8354 = vst [vmem:[#allocation7_spill] sm:$0xff] %v6670_v1  ;;  %v6675_v29 = vpop.f32.mrb[77].mxu0  ;;  %v6677_v39 = vpop.f32.mrb[77].mxu1 }
 0x1f3   :  { %v3604_v57 = vmul.f32 %v3348_v30, %v2068_v49  ;;  %v2711_v14 = vmul.f32 0.7978846, %v2455_v31  ;;  %v2456_v37 = vadd.f32 %v2200_v56, %v6627_v42  ;;  %v1433_v11 = vmul.f32 %v6653_v41, %v6653_v41  ;;  %8355 = vst [vmem:[#allocation32_spill] sm:$0xff] %v6675_v29  ;;  %8356 = vst [vmem:[#allocation8_spill] sm:$0xff] %v6677_v39 }
 0x1f4   :  { %v3708_v24 = vadd.f32 %v3707_v63, %v3476_v25  ;;  %v3477_v47 = vmul.f32 %v3221_v2, %v1941_v40  ;;  %v2839_v44 = vmul.f32 0.7978846, %v2583_v54  ;;  %v2328_v61 = vmul.f32 0.044715, %v1816_v4 }
 0x1f5   :  { %v4359_v22 = vpop.eup %4358  ;;  %v3872_v32 = vadd.f32 %v3871_v7, %v3604_v57  ;;  %4364 = vtanh.f32 %v2711_v14  ;;  %v2712_v21 = vmul.f32 0.7978846, %v2456_v37  ;;  %v1689_v49 = vmul.f32 %v1433_v11, %v6653_v41  ;;  %v6691_v11 = vpop.f32.mrb[78].mxu0 }
 0x1f6   :  { %v4361_v30 = vpop.eup %4360  ;;  %v6680_v31 = vadd.f32 %v3776_v17, %v3477_v47  ;;  %v3349_v56 = vadd.f32 1.0, %v4359_v22  ;;  %4366 = vtanh.f32 %v2839_v44  ;;  %v2584_v63 = vadd.f32 %v2328_v61, %v6648_v10  ;;  %8357 = vst [vmem:[#allocation9_spill] sm:$0xff] %v6691_v11 }
 0x1f7   :  { %v3222_v40 = vadd.f32 1.0, %v4361_v30  ;;  %v2070_v25 = vmul.f32 0.5, %v6587_v9  ;;  %4368 = vtanh.f32 %v2712_v21  ;;  %v2201_v2 = vmul.f32 0.044715, %v1689_v49 }
 0x1f8   :  { %v3605_v54 = vmul.f32 %v3349_v56, %v2069_v60  ;;  %v1943_v4 = vmul.f32 0.5, %v6619_v0  ;;  %v2840_v7 = vmul.f32 0.7978846, %v2584_v63  ;;  %v1561_v14 = vmul.f32 %v6657_v34, %v6657_v34  ;;  %v8358_v60 = vld [vmem:[#allocation15_spill] sm:$0xff] }
 0x1f9   :  { %v3478_v57 = vmul.f32 %v3222_v40, %v1942_v27  ;;  %v2071_v17 = vmul.f32 0.5, %v6623_v46  ;;  %v2457_v37 = vadd.f32 %v2201_v2, %v6653_v41  ;;  %v1434_v44 = vmul.f32 %v6664_v5, %v6664_v5 }
 0x1fa   :  { %v4363_v9 = vpop.eup %4362  ;;  %v3941_v21 = vadd.f32 %v6636_v15, %v3605_v54  ;;  %4370 = vtanh.f32 %v2840_v7  ;;  %v1817_v0 = vmul.f32 %v1561_v14, %v6657_v34  ;;  %v6697_v47 = vadd.f32 %v8358_v60, %v5264_v51  ;;  %v8359_v15 = vld [vmem:[#allocation33_spill] sm:$0xff]  ;;  %v8360_v54 = vld [vmem:[#allocation34_spill] sm:$0xff]  ;;  %v6711_v7 = vpop.f32.mrb[78].mxu1 }
 0x1fb   :  { %v3709_v27 = vadd.f32 %v3708_v24, %v3478_v57  ;;  %v3350_v61 = vadd.f32 1.0, %v4363_v9  ;;  %v2713_v46 = vmul.f32 0.7978846, %v2457_v37  ;;  %v1690_v22 = vmul.f32 %v1434_v44, %v6664_v5  ;;  %8361 = vst [vmem:[#allocation10_spill] sm:$0xff] %v6711_v7 }
 0x1fc   :  { %v1944_v49 = vmul.f32 0.5, %v6627_v42  ;;  %v2329_v30 = vmul.f32 0.044715, %v1817_v0  ;;  %v1562_v56 = vmul.f32 %v6697_v47, %v6697_v47  ;;  %v6705_v63 = vadd.f32 %v8359_v15, %v5268_v52  ;;  %v6723_v15 = vpop.f32.mrb[79].mxu0 }
 0x1fd   :  { %v3606_v40 = vmul.f32 %v3350_v61, %v2070_v25  ;;  %4372 = vtanh.f32 %v2713_v46  ;;  %v2202_v2 = vmul.f32 0.044715, %v1690_v22  ;;  %v6709_v24 = vadd.f32 %v8360_v54, %v5268_v52  ;;  %8362 = vst [vmem:[#allocation11_spill] sm:$0xff] %v6723_v15 }
 0x1fe   :  { %v2072_v14 = vmul.f32 0.5, %v6648_v10  ;;  %v2585_v42 = vadd.f32 %v2329_v30, %v6657_v34  ;;  %v1818_v57 = vmul.f32 %v1562_v56, %v6697_v47  ;;  %v1435_v37 = vmul.f32 %v6705_v63, %v6705_v63 }
 0x1ff   :  { %v4365_v44 = vpop.eup %4364  ;;  %v3873_v9 = vadd.f32 %v3872_v32, %v3606_v40  ;;  %v1945_v25 = vmul.f32 0.5, %v6653_v41  ;;  %v2458_v0 = vadd.f32 %v2202_v2, %v6664_v5  ;;  %v1563_v60 = vmul.f32 %v6709_v24, %v6709_v24  ;;  %v8363_v41 = vld [vmem:[#allocation16_spill] sm:$0xff]  ;;  %v6730_v2 = vpop.f32.mrb[79].mxu1 }
 0x200   :  { %v4367_v61 = vpop.eup %4366  ;;  %v3223_v46 = vadd.f32 1.0, %v4365_v44  ;;  %v2841_v22 = vmul.f32 0.7978846, %v2585_v42  ;;  %v2330_v10 = vmul.f32 0.044715, %v1818_v57  ;;  %v1691_v30 = vmul.f32 %v1435_v37, %v6705_v63 }
 0x201   :  { %v4369_v56 = vpop.eup %4368  ;;  %v3351_v54 = vadd.f32 1.0, %v4367_v61  ;;  %v2714_v7 = vmul.f32 0.7978846, %v2458_v0  ;;  %v1819_v32 = vmul.f32 %v1563_v60, %v6709_v24  ;;  %v6728_v40 = vadd.f32 %v8363_v41, %v5264_v51 }
 0x202   :  { %v3479_v11 = vmul.f32 %v3223_v46, %v1943_v4  ;;  %v3224_v39 = vadd.f32 1.0, %v4369_v56  ;;  %4374 = vtanh.f32 %v2841_v22  ;;  %v2586_v42 = vadd.f32 %v2330_v10, %v6697_v47  ;;  %v6738_v22 = vpop.f32.mrb[80].mxu0 }
 0x203   :  { %v3607_v57 = vmul.f32 %v3351_v54, %v2071_v17  ;;  %4376 = vtanh.f32 %v2714_v7  ;;  %v2203_v37 = vmul.f32 0.044715, %v1691_v30  ;;  %v2331_v44 = vmul.f32 0.044715, %v1819_v32  ;;  %v6740_v17 = vpop.f32.mrb[80].mxu1  ;;  %v8366_v32 = vld [vmem:[#allocation18_spill] sm:$0xff] }
 0x204   :  { %v4371_v15 = vpop.eup %4370  ;;  %v3778_v0 = vadd.f32 %v6680_v31, %v3479_v11  ;;  %v3480_v61 = vmul.f32 %v3224_v39, %v1944_v49  ;;  %v2842_v60 = vmul.f32 0.7978846, %v2586_v42  ;;  %v1436_v41 = vmul.f32 %v6728_v40, %v6728_v40  ;;  %8364 = vst [vmem:[#allocation12_spill] sm:$0xff] %v6740_v17 }
 0x205   :  { %v3942_v29 = vadd.f32 %v3941_v21, %v3607_v57  ;;  %v3352_v1 = vadd.f32 1.0, %v4371_v15  ;;  %v2459_v4 = vadd.f32 %v2203_v37, %v6705_v63  ;;  %v2587_v46 = vadd.f32 %v2331_v44, %v6709_v24  ;;  %v8365_v21 = vld [vmem:[#allocation17_spill] sm:$0xff] }
 0x206   :  { %v3710_v7 = vadd.f32 %v3709_v27, %v3480_v61  ;;  %v2073_v10 = vmul.f32 0.5, %v6657_v34  ;;  %4378 = vtanh.f32 %v2842_v60  ;;  %v1692_v39 = vmul.f32 %v1436_v41, %v6728_v40  ;;  %v8367_v27 = vld [vmem:[#allocation19_spill] sm:$0xff] }
 0x207   :  { %v4373_v31 = vpop.eup %4372  ;;  %v3608_v11 = vmul.f32 %v3352_v1, %v2072_v14  ;;  %v2715_v49 = vmul.f32 0.7978846, %v2459_v4  ;;  %v2843_v30 = vmul.f32 0.7978846, %v2587_v46  ;;  %v6746_v15 = vadd.f32 %v8365_v21, %v5264_v51  ;;  %v6759_v14 = vpop.f32.mrb[81].mxu0 }
 0x208   :  { %v3225_v56 = vadd.f32 1.0, %v4373_v31  ;;  %v2204_v54 = vmul.f32 0.044715, %v1692_v39  ;;  %v6750_v42 = vadd.f32 %v8366_v32, %v5268_v52  ;;  %v6754_v34 = vadd.f32 %v8367_v27, %v5268_v52  ;;  %8368 = vst [vmem:[#allocation13_spill] sm:$0xff] %v6759_v14  ;;  %v6779_v32 = vpop.f32.mrb[81].mxu1 }
 0x209   :  { %v3874_v57 = vadd.f32 %v3873_v9, %v3608_v11  ;;  %v1946_v37 = vmul.f32 0.5, %v6664_v5  ;;  %4380 = vtanh.f32 %v2715_v49  ;;  %v1564_v1 = vmul.f32 %v6746_v15, %v6746_v15  ;;  %v8369_v11 = vld [vmem:[#allocation20_spill] sm:$0xff]  ;;  %8371 = vst [vmem:[#allocation14_spill] sm:$0xff] %v6779_v32 }
 0x20a   :  { %v3481_v44 = vmul.f32 %v3225_v56, %v1945_v25  ;;  %4382 = vtanh.f32 %v2843_v30  ;;  %v2460_v61 = vadd.f32 %v2204_v54, %v6728_v40  ;;  %v1437_v60 = vmul.f32 %v6750_v42, %v6750_v42 }
 0x20b   :  { %v2074_v41 = vmul.f32 0.5, %v6697_v47  ;;  %v1947_v4 = vmul.f32 0.5, %v6705_v63  ;;  %v1820_v9 = vmul.f32 %v1564_v1, %v6746_v15  ;;  %v1565_v5 = vmul.f32 %v6754_v34, %v6754_v34  ;;  %v8370_v63 = vld [vmem:[#allocation21_spill] sm:$0xff] }
 0x20c   :  { %v4375_v46 = vpop.eup %4374  ;;  %v3779_v39 = vadd.f32 %v3778_v0, %v3481_v44  ;;  %v2716_v31 = vmul.f32 0.7978846, %v2460_v61  ;;  %v1693_v25 = vmul.f32 %v1437_v60, %v6750_v42  ;;  %v6772_v49 = vadd.f32 %v8369_v11, %v5264_v51 }
 0x20d   :  { %v4377_v30 = vpop.eup %4376  ;;  %v3353_v21 = vadd.f32 1.0, %v4375_v46  ;;  %v2332_v56 = vmul.f32 0.044715, %v1820_v9  ;;  %v1821_v47 = vmul.f32 %v1565_v5, %v6754_v34  ;;  %v6777_v54 = vadd.f32 %v8370_v63, %v5264_v51 }
 0x20e   :  { %v3226_v27 = vadd.f32 1.0, %v4377_v30  ;;  %4384 = vtanh.f32 %v2716_v31  ;;  %v2205_v0 = vmul.f32 0.044715, %v1693_v25  ;;  %v1438_v1 = vmul.f32 %v6772_v49, %v6772_v49 }
 0x20f   :  { %v3609_v44 = vmul.f32 %v3353_v21, %v2073_v10  ;;  %v2075_v61 = vmul.f32 0.5, %v6709_v24  ;;  %v2588_v60 = vadd.f32 %v2332_v56, %v6746_v15  ;;  %v2333_v9 = vmul.f32 0.044715, %v1821_v47  ;;  %v6791_v47 = vpop.f32.mrb[82].mxu0 }
 0x210   :  { %v4379_v46 = vpop.eup %4378  ;;  %v3482_v5 = vmul.f32 %v3226_v27, %v1946_v37  ;;  %v2461_v11 = vadd.f32 %v2205_v0, %v6750_v42  ;;  %v1694_v63 = vmul.f32 %v1438_v1, %v6772_v49  ;;  %v1566_v30 = vmul.f32 %v6777_v54, %v6777_v54  ;;  %v6793_v37 = vpop.f32.mrb[82].mxu1 }
 0x211   :  { %v3943_v31 = vadd.f32 %v3942_v29, %v3609_v44  ;;  %v3354_v25 = vadd.f32 1.0, %v4379_v46  ;;  %v2844_v32 = vmul.f32 0.7978846, %v2588_v60  ;;  %v2589_v14 = vadd.f32 %v2333_v9, %v6754_v34  ;;  %v6796_v29 = vpop.f32.mrb[83].mxu0 }
 0x212   :  { %v3711_v10 = vadd.f32 %v3710_v7, %v3482_v5  ;;  %v2717_v21 = vmul.f32 0.7978846, %v2461_v11  ;;  %v2206_v24 = vmul.f32 0.044715, %v1694_v63  ;;  %v1822_v56 = vmul.f32 %v1566_v30, %v6777_v54  ;;  %8372 = vst [vmem:[#allocation15_spill] sm:$0xff] %v6796_v29  ;;  %v8373_v11 = vld [vmem:[#allocation22_spill] sm:$0xff] }
 0x213   :  { %v4381_v27 = vpop.eup %4380  ;;  %v3610_v0 = vmul.f32 %v3354_v25, %v2074_v41  ;;  %v1948_v1 = vmul.f32 0.5, %v6728_v40  ;;  %4386 = vtanh.f32 %v2844_v32  ;;  %v2845_v17 = vmul.f32 0.7978846, %v2589_v14  ;;  %v8374_v14 = vld [vmem:[#allocation23_spill] sm:$0xff]  ;;  %v6808_v25 = vpop.f32.mrb[83].mxu1 }
 0x214   :  { %v4383_v44 = vpop.eup %4382  ;;  %v3227_v60 = vadd.f32 1.0, %v4381_v27  ;;  %4388 = vtanh.f32 %v2717_v21  ;;  %v2462_v7 = vadd.f32 %v2206_v24, %v6772_v49  ;;  %v2334_v9 = vmul.f32 0.044715, %v1822_v56  ;;  %8375 = vst [vmem:[#allocation33_spill] sm:$0xff] %v6808_v25 }
 0x215   :  { %v3875_v46 = vadd.f32 %v3874_v57, %v3610_v0  ;;  %v3355_v5 = vadd.f32 1.0, %v4383_v44  ;;  %4390 = vtanh.f32 %v2845_v17  ;;  %v6801_v63 = vadd.f32 %v8373_v11, %v5268_v52 }
 0x216   :  { %v3483_v41 = vmul.f32 %v3227_v60, %v1947_v4  ;;  %v2718_v30 = vmul.f32 0.7978846, %v2462_v7  ;;  %v2590_v40 = vadd.f32 %v2334_v9, %v6777_v54  ;;  %v6806_v32 = vadd.f32 %v8374_v14, %v5268_v52 }
 0x217   :  { %v3611_v21 = vmul.f32 %v3355_v5, %v2075_v61  ;;  %v2076_v24 = vmul.f32 0.5, %v6746_v15  ;;  %v1439_v17 = vmul.f32 %v6801_v63, %v6801_v63  ;;  %v6815_v57 = vadd.f32 %v6290_v43, %v5264_v51 }
 0x218   :  { %v4385_v4 = vpop.eup %4384  ;;  %v3780_v56 = vadd.f32 %v3779_v39, %v3483_v41  ;;  %4392 = vtanh.f32 %v2718_v30  ;;  %v2846_v27 = vmul.f32 0.7978846, %v2590_v40  ;;  %v1567_v0 = vmul.f32 %v6806_v32, %v6806_v32 }
 0x219   :  { %v3944_v44 = vadd.f32 %v3943_v31, %v3611_v21  ;;  %v3228_v60 = vadd.f32 1.0, %v4385_v4  ;;  %v1949_v61 = vmul.f32 0.5, %v6750_v42  ;;  %v1695_v15 = vmul.f32 %v1439_v17, %v6801_v63  ;;  %v6845_v17 = vpop.f32.mrb[84].mxu1 }
 0x21a   :  { %v2077_v7 = vmul.f32 0.5, %v6754_v34  ;;  %4394 = vtanh.f32 %v2846_v27  ;;  %v1823_v9 = vmul.f32 %v1567_v0, %v6806_v32  ;;  %v1440_v43 = vmul.f32 %v6815_v57, %v6815_v57  ;;  %8377 = vst [vmem:[#allocation16_spill] sm:$0xff] %v6845_v17 }
 0x21b   :  { %v3484_v39 = vmul.f32 %v3228_v60, %v1948_v1  ;;  %v2207_v5 = vmul.f32 0.044715, %v1695_v15  ;;  %v6827_v11 = vadd.f32 %v6293_v16, %v5264_v51  ;;  %v6831_v31 = vadd.f32 %v6296_v18, %v5268_v52  ;;  %v6843_v18 = vpop.f32.mrb[84].mxu0 }
 0x21c   :  { %v1950_v42 = vmul.f32 0.5, %v6772_v49  ;;  %v2078_v34 = vmul.f32 0.5, %v6777_v54  ;;  %v2335_v41 = vmul.f32 0.044715, %v1823_v9  ;;  %v1696_v30 = vmul.f32 %v1440_v43, %v6815_v57  ;;  %8376 = vst [vmem:[#allocation34_spill] sm:$0xff] %v6843_v18  ;;  %v6857_v18 = vpop.f32.mrb[85].mxu0 }
 0x21d   :  { %v4387_v40 = vpop.eup %4386  ;;  %v3712_v14 = vadd.f32 %v3711_v10, %v3484_v39  ;;  %v2463_v1 = vadd.f32 %v2207_v5, %v6801_v63  ;;  %v1568_v21 = vmul.f32 %v6827_v11, %v6827_v11  ;;  %v6841_v16 = vadd.f32 %v6302_v50, %v5268_v52 }
 0x21e   :  { %v4389_v49 = vpop.eup %4388  ;;  %v3356_v54 = vadd.f32 1.0, %v4387_v40  ;;  %v2591_v4 = vadd.f32 %v2335_v41, %v6806_v32  ;;  %v2208_v27 = vmul.f32 0.044715, %v1696_v30  ;;  %v1441_v10 = vmul.f32 %v6831_v31, %v6831_v31 }
 0x21f   :  { %v4391_v0 = vpop.eup %4390  ;;  %v3229_v60 = vadd.f32 1.0, %v4389_v49  ;;  %v2719_v15 = vmul.f32 0.7978846, %v2463_v1  ;;  %v1824_v9 = vmul.f32 %v1568_v21, %v6827_v11  ;;  %v6853_v50 = vadd.f32 %v6338_v3, %v5264_v51  ;;  %v6859_v49 = vpop.f32.mrb[85].mxu1 }
 0x220   :  { %v3612_v43 = vmul.f32 %v3356_v54, %v2076_v24  ;;  %v3357_v39 = vadd.f32 1.0, %v4391_v0  ;;  %v2847_v5 = vmul.f32 0.7978846, %v2591_v4  ;;  %v2464_v40 = vadd.f32 %v2208_v27, %v6815_v57 }
 0x221   :  { %v3485_v17 = vmul.f32 %v3229_v60, %v1949_v61  ;;  %4396 = vtanh.f32 %v2719_v15  ;;  %v2336_v41 = vmul.f32 0.044715, %v1824_v9  ;;  %v1697_v30 = vmul.f32 %v1441_v10, %v6831_v31 }
 0x222   :  { %v4393_v1 = vpop.eup %4392  ;;  %v3876_v21 = vadd.f32 %v3875_v46, %v3612_v43  ;;  %v3613_v25 = vmul.f32 %v3357_v39, %v2077_v7  ;;  %4398 = vtanh.f32 %v2847_v5  ;;  %v2720_v3 = vmul.f32 0.7978846, %v2464_v40  ;;  %v6866_v7 = vpop.f32.mrb[86].mxu0 }
 0x223   :  { %v3781_v29 = vadd.f32 %v3780_v56, %v3485_v17  ;;  %v3230_v24 = vadd.f32 1.0, %v4393_v1  ;;  %v2592_v54 = vadd.f32 %v2336_v41, %v6827_v11  ;;  %v2209_v4 = vmul.f32 0.044715, %v1697_v30  ;;  %v6868_v56 = vpop.f32.mrb[86].mxu1 }
 0x224   :  { %v4395_v27 = vpop.eup %4394  ;;  %v3945_v61 = vadd.f32 %v3944_v44, %v3613_v25  ;;  %v1951_v0 = vmul.f32 0.5, %v6801_v63  ;;  %4400 = vtanh.f32 %v2720_v3  ;;  %v1569_v10 = vmul.f32 %v6841_v16, %v6841_v16 }
 0x225   :  { %v3486_v60 = vmul.f32 %v3230_v24, %v1950_v42  ;;  %v3358_v15 = vadd.f32 1.0, %v4395_v27  ;;  %v2848_v9 = vmul.f32 0.7978846, %v2592_v54  ;;  %v2465_v46 = vadd.f32 %v2209_v4, %v6831_v31  ;;  %v6902_v4 = vpop.f32.mrb[87].mxu0 }
 0x226   :  { %v2079_v17 = vmul.f32 0.5, %v6806_v32  ;;  %v1825_v43 = vmul.f32 %v1569_v10, %v6841_v16  ;;  %v1442_v63 = vmul.f32 %v6853_v50, %v6853_v50  ;;  %v6876_v25 = vadd.f32 %v6340_v6, %v5264_v51  ;;  %8378 = vst [vmem:[#allocation17_spill] sm:$0xff] %v6902_v4 }
 0x227   :  { %v3713_v44 = vadd.f32 %v3712_v14, %v3486_v60  ;;  %v3614_v42 = vmul.f32 %v3358_v15, %v2078_v34  ;;  %4402 = vtanh.f32 %v2848_v9  ;;  %v2721_v39 = vmul.f32 0.7978846, %v2465_v46  ;;  %v6905_v9 = vpop.f32.mrb[87].mxu1 }
 0x228   :  { %v1952_v5 = vmul.f32 0.5, %v6815_v57  ;;  %v2337_v40 = vmul.f32 0.044715, %v1825_v43  ;;  %v1698_v41 = vmul.f32 %v1442_v63, %v6853_v50  ;;  %v1570_v32 = vmul.f32 %v6876_v25, %v6876_v25  ;;  %8379 = vst [vmem:[#allocation18_spill] sm:$0xff] %v6905_v9 }
 0x229   :  { %v3877_v30 = vadd.f32 %v3876_v21, %v3614_v42  ;;  %4404 = vtanh.f32 %v2721_v39  ;;  %v6884_v1 = vadd.f32 %v6350_v33, %v5268_v52  ;;  %v6888_v6 = vadd.f32 %v6357_v20, %v5268_v52 }
 0x22a   :  { %v2593_v34 = vadd.f32 %v2337_v40, %v6841_v16  ;;  %v2210_v14 = vmul.f32 0.044715, %v1698_v41  ;;  %v1826_v57 = vmul.f32 %v1570_v32, %v6876_v25  ;;  %v6894_v3 = vadd.f32 %v6364_v53, %v5264_v51 }
 0x22b   :  { %v4397_v24 = vpop.eup %4396  ;;  %v2080_v21 = vmul.f32 0.5, %v6827_v11  ;;  %v1953_v54 = vmul.f32 0.5, %v6831_v31  ;;  %v1443_v33 = vmul.f32 %v6884_v1, %v6884_v1  ;;  %v1571_v20 = vmul.f32 %v6888_v6, %v6888_v6 }
 0x22c   :  { %v4399_v27 = vpop.eup %4398  ;;  %v3231_v10 = vadd.f32 1.0, %v4397_v24  ;;  %v2849_v60 = vmul.f32 0.7978846, %v2593_v34  ;;  %v2466_v15 = vadd.f32 %v2210_v14, %v6853_v50  ;;  %v2338_v53 = vmul.f32 0.044715, %v1826_v57 }
 0x22d   :  { %v3359_v46 = vadd.f32 1.0, %v4399_v27  ;;  %v1699_v11 = vmul.f32 %v1443_v33, %v6884_v1  ;;  %v1827_v31 = vmul.f32 %v1571_v20, %v6888_v6  ;;  %v1444_v43 = vmul.f32 %v6894_v3, %v6894_v3 }
 0x22e   :  { %v4401_v63 = vpop.eup %4400  ;;  %v3487_v42 = vmul.f32 %v3231_v10, %v1951_v0  ;;  %4406 = vtanh.f32 %v2849_v60  ;;  %v2722_v39 = vmul.f32 0.7978846, %v2466_v15  ;;  %v2594_v40 = vadd.f32 %v2338_v53, %v6876_v25  ;;  %v6916_v15 = vpop.f32.mrb[88].mxu0 }
 0x22f   :  { %v3615_v41 = vmul.f32 %v3359_v46, %v2079_v17  ;;  %v3232_v32 = vadd.f32 1.0, %v4401_v63  ;;  %v2211_v34 = vmul.f32 0.044715, %v1699_v11  ;;  %v2339_v14 = vmul.f32 0.044715, %v1827_v31  ;;  %v6918_v53 = vpop.f32.mrb[88].mxu1 }
 0x230   :  { %v3782_v57 = vadd.f32 %v3781_v29, %v3487_v42  ;;  %4408 = vtanh.f32 %v2722_v39  ;;  %v2850_v24 = vmul.f32 0.7978846, %v2594_v40  ;;  %v1700_v33 = vmul.f32 %v1444_v43, %v6894_v3  ;;  %v6929_v42 = vpop.f32.mrb[89].mxu0  ;;  %v6938_v40 = vpop.f32.mrb[89].mxu1 }
 0x231   :  { %v4403_v27 = vpop.eup %4402  ;;  %v3946_v20 = vadd.f32 %v3945_v61, %v3615_v41  ;;  %v3488_v9 = vmul.f32 %v3232_v32, %v1952_v5  ;;  %v2467_v4 = vadd.f32 %v2211_v34, %v6884_v1  ;;  %v2595_v0 = vadd.f32 %v2339_v14, %v6888_v6 }
 0x232   :  { %v3360_v10 = vadd.f32 1.0, %v4403_v27  ;;  %v2081_v60 = vmul.f32 0.5, %v6841_v16  ;;  %4410 = vtanh.f32 %v2850_v24  ;;  %v2212_v17 = vmul.f32 0.044715, %v1700_v33 }
 0x233   :  { %v4405_v29 = vpop.eup %4404  ;;  %v3714_v46 = vadd.f32 %v3713_v44, %v3488_v9  ;;  %v2723_v11 = vmul.f32 0.7978846, %v2467_v4  ;;  %v2851_v31 = vmul.f32 0.7978846, %v2595_v0  ;;  %v6922_v61 = vadd.f32 %v6387_v23, %v5264_v51 }
 0x234   :  { %v3616_v5 = vmul.f32 %v3360_v10, %v2080_v21  ;;  %v3233_v43 = vadd.f32 1.0, %v4405_v29  ;;  %v2468_v63 = vadd.f32 %v2212_v17, %v6894_v3  ;;  %v6927_v16 = vadd.f32 %v6400_v8, %v5268_v52 }
 0x235   :  { %v1954_v39 = vmul.f32 0.5, %v6853_v50  ;;  %4412 = vtanh.f32 %v2723_v11  ;;  %v1572_v44 = vmul.f32 %v6922_v61, %v6922_v61  ;;  %v6936_v23 = vadd.f32 %v6409_v59, %v5268_v52 }
 0x236   :  { %v3878_v21 = vadd.f32 %v3877_v30, %v3616_v5  ;;  %v3489_v4 = vmul.f32 %v3233_v43, %v1953_v54  ;;  %4414 = vtanh.f32 %v2851_v31  ;;  %v2724_v9 = vmul.f32 0.7978846, %v2468_v63 }
 0x237   :  { %v2082_v8 = vmul.f32 0.5, %v6876_v25  ;;  %v1828_v41 = vmul.f32 %v1572_v44, %v6922_v61  ;;  %v1445_v50 = vmul.f32 %v6927_v16, %v6927_v16  ;;  %v1573_v32 = vmul.f32 %v6936_v23, %v6936_v23 }
 0x238   :  { %v4407_v34 = vpop.eup %4406  ;;  %v3783_v14 = vadd.f32 %v3782_v57, %v3489_v4  ;;  %v1955_v59 = vmul.f32 0.5, %v6884_v1  ;;  %4416 = vtanh.f32 %v2724_v9  ;;  %v6949_v30 = vadd.f32 %v6417_v45, %v5264_v51 }
 0x239   :  { %v3361_v54 = vadd.f32 1.0, %v4407_v34  ;;  %v2340_v24 = vmul.f32 0.044715, %v1828_v41  ;;  %v1701_v25 = vmul.f32 %v1445_v50, %v6927_v16  ;;  %v1829_v33 = vmul.f32 %v1573_v32, %v6936_v23  ;;  %v6972_v32 = vpop.f32.mrb[90].mxu0 }
 0x23a   :  { %v4409_v27 = vpop.eup %4408  ;;  %v2083_v0 = vmul.f32 0.5, %v6888_v6  ;;  %v1446_v10 = vmul.f32 %v6949_v30, %v6949_v30  ;;  %v6958_v1 = vadd.f32 %v6419_v19, %v5264_v51  ;;  %v6962_v45 = vadd.f32 %v6429_v38, %v5268_v52 }
 0x23b   :  { %v3617_v57 = vmul.f32 %v3361_v54, %v2081_v60  ;;  %v3234_v17 = vadd.f32 1.0, %v4409_v27  ;;  %v2596_v29 = vadd.f32 %v2340_v24, %v6922_v61  ;;  %v2213_v11 = vmul.f32 0.044715, %v1701_v25 }
 0x23c   :  { %v4411_v31 = vpop.eup %4410  ;;  %v1956_v5 = vmul.f32 0.5, %v6894_v3  ;;  %v2341_v6 = vmul.f32 0.044715, %v1829_v33  ;;  %v1702_v43 = vmul.f32 %v1446_v10, %v6949_v30  ;;  %v1574_v63 = vmul.f32 %v6958_v1, %v6958_v1  ;;  %v6974_v3 = vpop.f32.mrb[90].mxu1 }
 0x23d   :  { %v3947_v19 = vadd.f32 %v3946_v20, %v3617_v57  ;;  %v3490_v44 = vmul.f32 %v3234_v17, %v1954_v39  ;;  %v3362_v4 = vadd.f32 1.0, %v4411_v31  ;;  %v2852_v9 = vmul.f32 0.7978846, %v2596_v29  ;;  %v6979_v57 = vpop.f32.mrb[91].mxu0 }
 0x23e   :  { %v2469_v38 = vadd.f32 %v2213_v11, %v6927_v16  ;;  %v2597_v60 = vadd.f32 %v2341_v6, %v6936_v23  ;;  %v2214_v41 = vmul.f32 0.044715, %v1702_v43  ;;  %v1830_v50 = vmul.f32 %v1574_v63, %v6958_v1  ;;  %v6982_v6 = vpop.f32.mrb[91].mxu1 }
 0x23f   :  { %v4413_v34 = vpop.eup %4412  ;;  %v3715_v54 = vadd.f32 %v3714_v46, %v3490_v44  ;;  %v3618_v24 = vmul.f32 %v3362_v4, %v2082_v8  ;;  %4418 = vtanh.f32 %v2852_v9  ;;  %v1447_v20 = vmul.f32 %v6962_v45, %v6962_v45 }
 0x240   :  { %v4415_v39 = vpop.eup %4414  ;;  %v3235_v25 = vadd.f32 1.0, %v4413_v34  ;;  %v2725_v33 = vmul.f32 0.7978846, %v2469_v38  ;;  %v2853_v27 = vmul.f32 0.7978846, %v2597_v60  ;;  %v2470_v10 = vadd.f32 %v2214_v41, %v6949_v30 }
 0x241   :  { %v3879_v17 = vadd.f32 %v3878_v21, %v3618_v24  ;;  %v3363_v29 = vadd.f32 1.0, %v4415_v39  ;;  %v2342_v11 = vmul.f32 0.044715, %v1830_v50  ;;  %v1703_v31 = vmul.f32 %v1447_v20, %v6962_v45 }
 0x242   :  { %v4417_v46 = vpop.eup %4416  ;;  %v3491_v8 = vmul.f32 %v3235_v25, %v1955_v59  ;;  %v2084_v43 = vmul.f32 0.5, %v6922_v61  ;;  %4420 = vtanh.f32 %v2725_v33  ;;  %v2726_v63 = vmul.f32 0.7978846, %v2470_v10 }
 0x243   :  { %v3619_v44 = vmul.f32 %v3363_v29, %v2083_v0  ;;  %v3236_v4 = vadd.f32 1.0, %v4417_v46  ;;  %4422 = vtanh.f32 %v2853_v27  ;;  %v2598_v9 = vadd.f32 %v2342_v11, %v6958_v1  ;;  %v7022_v11 = vpop.f32.mrb[92].mxu1 }
 0x244   :  { %v3784_v38 = vadd.f32 %v3783_v14, %v3491_v8  ;;  %4424 = vtanh.f32 %v2726_v63  ;;  %v2215_v21 = vmul.f32 0.044715, %v1703_v31  ;;  %v6988_v60 = vadd.f32 %v6454_v13, %v5268_v52  ;;  %v7002_v13 = vpop.f32.mrb[92].mxu0  ;;  %8380 = vst [vmem:[#allocation19_spill] sm:$0xff] %v7022_v11 }
 0x245   :  { %v3948_v41 = vadd.f32 %v3947_v19, %v3619_v44  ;;  %v3492_v50 = vmul.f32 %v3236_v4, %v1956_v5  ;;  %v2854_v34 = vmul.f32 0.7978846, %v2598_v9  ;;  %v6992_v61 = vadd.f32 %v6479_v62, %v5264_v51  ;;  %v8381_v4 = vld [vmem:[#allocation24_spill] sm:$0xff] }
 0x246   :  { %v1957_v59 = vmul.f32 0.5, %v6927_v16  ;;  %v2471_v0 = vadd.f32 %v2215_v21, %v6962_v45  ;;  %v1575_v14 = vmul.f32 %v6988_v60, %v6988_v60  ;;  %v7000_v24 = vadd.f32 %v6482_v48, %v5264_v51 }
 0x247   :  { %v3716_v19 = vadd.f32 %v3715_v54, %v3492_v50  ;;  %v2085_v5 = vmul.f32 0.5, %v6936_v23  ;;  %4426 = vtanh.f32 %v2854_v34  ;;  %v1448_v62 = vmul.f32 %v6992_v61, %v6992_v61 }
 0x248   :  { %v1958_v16 = vmul.f32 0.5, %v6949_v30  ;;  %v2727_v20 = vmul.f32 0.7978846, %v2471_v0  ;;  %v1831_v39 = vmul.f32 %v1575_v14, %v6988_v60  ;;  %v1576_v25 = vmul.f32 %v7000_v24, %v7000_v24  ;;  %v7037_v14 = vpop.f32.mrb[93].mxu0 }
 0x249   :  { %v4419_v33 = vpop.eup %4418  ;;  %v2086_v48 = vmul.f32 0.5, %v6958_v1  ;;  %v1704_v27 = vmul.f32 %v1448_v62, %v6992_v61  ;;  %v7015_v23 = vadd.f32 %v6484_v12, %v5268_v52  ;;  %v7019_v54 = vadd.f32 %v6487_v35, %v5268_v52 }
 0x24a   :  { %v3364_v30 = vadd.f32 1.0, %v4419_v33  ;;  %4428 = vtanh.f32 %v2727_v20  ;;  %v2343_v10 = vmul.f32 0.044715, %v1831_v39  ;;  %v1832_v29 = vmul.f32 %v1576_v25, %v7000_v24  ;;  %v7040_v33 = vpop.f32.mrb[93].mxu1 }
 0x24b   :  { %v1959_v31 = vmul.f32 0.5, %v6962_v45  ;;  %v2216_v1 = vmul.f32 0.044715, %v1704_v27  ;;  %v1449_v46 = vmul.f32 %v7015_v23, %v7015_v23  ;;  %v1577_v12 = vmul.f32 %v7019_v54, %v7019_v54 }
 0x24c   :  { %v4421_v8 = vpop.eup %4420  ;;  %v3620_v63 = vmul.f32 %v3364_v30, %v2084_v43  ;;  %v2599_v35 = vadd.f32 %v2343_v10, %v6988_v60  ;;  %v2344_v44 = vmul.f32 0.044715, %v1832_v29  ;;  %v7032_v9 = vadd.f32 %v8381_v4, %v5264_v51 }
 0x24d   :  { %v4423_v21 = vpop.eup %4422  ;;  %v3237_v50 = vadd.f32 1.0, %v4421_v8  ;;  %v2472_v45 = vadd.f32 %v2216_v1, %v6992_v61  ;;  %v1705_v34 = vmul.f32 %v1449_v46, %v7015_v23  ;;  %v1833_v0 = vmul.f32 %v1577_v12, %v7019_v54 }
 0x24e   :  { %v4425_v62 = vpop.eup %4424  ;;  %v3880_v20 = vadd.f32 %v3879_v17, %v3620_v63  ;;  %v3365_v43 = vadd.f32 1.0, %v4423_v21  ;;  %v2855_v39 = vmul.f32 0.7978846, %v2599_v35  ;;  %v2600_v25 = vadd.f32 %v2344_v44, %v7000_v24  ;;  %v7044_v21 = vpop.f32.mrb[94].mxu0 }
 0x24f   :  { %v3493_v27 = vmul.f32 %v3237_v50, %v1957_v59  ;;  %v3238_v30 = vadd.f32 1.0, %v4425_v62  ;;  %v2728_v10 = vmul.f32 0.7978846, %v2472_v45  ;;  %v2217_v29 = vmul.f32 0.044715, %v1705_v34  ;;  %v7046_v59 = vpop.f32.mrb[94].mxu1 }
 0x250   :  { %v3621_v8 = vmul.f32 %v3365_v43, %v2085_v5  ;;  %4430 = vtanh.f32 %v2855_v39  ;;  %v2856_v1 = vmul.f32 0.7978846, %v2600_v25  ;;  %v2345_v46 = vmul.f32 0.044715, %v1833_v0  ;;  %v7064_v25 = vpop.f32.mrb[95].mxu0 }
 0x251   :  { %v4427_v4 = vpop.eup %4426  ;;  %v3785_v12 = vadd.f32 %v3784_v38, %v3493_v27  ;;  %v3494_v11 = vmul.f32 %v3238_v30, %v1958_v16  ;;  %4432 = vtanh.f32 %v2728_v10  ;;  %v2473_v17 = vadd.f32 %v2217_v29, %v7015_v23  ;;  %8384 = vst [vmem:[#allocation20_spill] sm:$0xff] %v7064_v25 }
 0x252   :  { %v3949_v63 = vadd.f32 %v3948_v41, %v3621_v8  ;;  %v3366_v35 = vadd.f32 1.0, %v4427_v4  ;;  %4434 = vtanh.f32 %v2856_v1  ;;  %v2601_v44 = vadd.f32 %v2345_v46, %v7019_v54  ;;  %v8382_v41 = vld [vmem:[#allocation25_spill] sm:$0xff] }
 0x253   :  { %v3717_v50 = vadd.f32 %v3716_v19, %v3494_v11  ;;  %v2087_v5 = vmul.f32 0.5, %v6988_v60  ;;  %v2729_v45 = vmul.f32 0.7978846, %v2473_v17  ;;  %v1450_v38 = vmul.f32 %v7032_v9, %v7032_v9  ;;  %v8383_v60 = vld [vmem:[#allocation26_spill] sm:$0xff] }
 0x254   :  { %v4429_v16 = vpop.eup %4428  ;;  %v3622_v34 = vmul.f32 %v3366_v35, %v2086_v48  ;;  %v2857_v0 = vmul.f32 0.7978846, %v2601_v44  ;;  %v7053_v62 = vadd.f32 %v8382_v41, %v5264_v51  ;;  %v7057_v43 = vadd.f32 %v6540_v28, %v5268_v52  ;;  %v7092_v41 = vpop.f32.mrb[95].mxu1 }
 0x255   :  { %v3239_v39 = vadd.f32 1.0, %v4429_v16  ;;  %4436 = vtanh.f32 %v2729_v45  ;;  %v1706_v19 = vmul.f32 %v1450_v38, %v7032_v9  ;;  %v7062_v11 = vadd.f32 %v8383_v60, %v5268_v52  ;;  %8385 = vst [vmem:[#allocation21_spill] sm:$0xff] %v7092_v41 }
 0x256   :  { %v3881_v48 = vadd.f32 %v3880_v20, %v3622_v34  ;;  %v1960_v27 = vmul.f32 0.5, %v6992_v61  ;;  %4438 = vtanh.f32 %v2857_v0  ;;  %v1578_v30 = vmul.f32 %v7053_v62, %v7053_v62 }
 0x257   :  { %v3495_v10 = vmul.f32 %v3239_v39, %v1959_v31  ;;  %v2088_v28 = vmul.f32 0.5, %v7000_v24  ;;  %v2218_v29 = vmul.f32 0.044715, %v1706_v19  ;;  %v1451_v8 = vmul.f32 %v7057_v43, %v7057_v43 }
 0x258   :  { %v1961_v1 = vmul.f32 0.5, %v7015_v23  ;;  %v1834_v46 = vmul.f32 %v1578_v30, %v7053_v62  ;;  %v1579_v20 = vmul.f32 %v7062_v11, %v7062_v11  ;;  %v7078_v61 = vadd.f32 %v6548_v58, %v5264_v51 }
 0x259   :  { %v3786_v4 = vadd.f32 %v3785_v12, %v3495_v10  ;;  %v2474_v31 = vadd.f32 %v2218_v29, %v7032_v9  ;;  %v1707_v24 = vmul.f32 %v1451_v8, %v7057_v43  ;;  %v7084_v17 = vadd.f32 %v6550_v55, %v5264_v51 }
 0x25a   :  { %v4431_v35 = vpop.eup %4430  ;;  %v2089_v23 = vmul.f32 0.5, %v7019_v54  ;;  %v2346_v44 = vmul.f32 0.044715, %v1834_v46  ;;  %v1835_v45 = vmul.f32 %v1579_v20, %v7062_v11  ;;  %v1452_v38 = vmul.f32 %v7078_v61, %v7078_v61 }
 0x25b   :  { %v4433_v58 = vpop.eup %4432  ;;  %v3367_v16 = vadd.f32 1.0, %v4431_v35  ;;  %v2730_v12 = vmul.f32 0.7978846, %v2474_v31  ;;  %v2219_v34 = vmul.f32 0.044715, %v1707_v24  ;;  %v1580_v0 = vmul.f32 %v7084_v17, %v7084_v17 }
 0x25c   :  { %v4435_v55 = vpop.eup %4434  ;;  %v3240_v39 = vadd.f32 1.0, %v4433_v58  ;;  %v2602_v19 = vadd.f32 %v2346_v44, %v7053_v62  ;;  %v2347_v54 = vmul.f32 0.044715, %v1835_v45  ;;  %v1708_v60 = vmul.f32 %v1452_v38, %v7078_v61  ;;  %v7099_v44 = vpop.f32.mrb[96].mxu0 }
 0x25d   :  { %v3623_v30 = vmul.f32 %v3367_v16, %v2087_v5  ;;  %v3368_v10 = vadd.f32 1.0, %v4435_v55  ;;  %4440 = vtanh.f32 %v2730_v12  ;;  %v2475_v29 = vadd.f32 %v2219_v34, %v7057_v43  ;;  %v7101_v45 = vpop.f32.mrb[96].mxu1 }
 0x25e   :  { %v3496_v8 = vmul.f32 %v3240_v39, %v1960_v27  ;;  %v2858_v46 = vmul.f32 0.7978846, %v2602_v19  ;;  %v2603_v20 = vadd.f32 %v2347_v54, %v7062_v11  ;;  %v2220_v31 = vmul.f32 0.044715, %v1708_v60  ;;  %v7108_v39 = vpop.f32.mrb[97].mxu1 }
 0x25f   :  { %v4437_v24 = vpop.eup %4436  ;;  %v3950_v35 = vadd.f32 %v3949_v63, %v3623_v30  ;;  %v3624_v41 = vmul.f32 %v3368_v10, %v2088_v28  ;;  %v2731_v25 = vmul.f32 0.7978846, %v2475_v29  ;;  %v1836_v58 = vmul.f32 %v1580_v0, %v7084_v17  ;;  %v7106_v63 = vpop.f32.mrb[97].mxu0  ;;  %8387 = vst [vmem:[#allocation23_spill] sm:$0xff] %v7108_v39  ;;  %v8389_v30 = vld [vmem:[#allocation28_spill] sm:$0xff] }
 0x260   :  { %v4439_v5 = vpop.eup %4438  ;;  %v3718_v38 = vadd.f32 %v3717_v50, %v3496_v8  ;;  %v3241_v16 = vadd.f32 1.0, %v4437_v24  ;;  %4442 = vtanh.f32 %v2858_v46  ;;  %v2859_v12 = vmul.f32 0.7978846, %v2603_v20  ;;  %8386 = vst [vmem:[#allocation22_spill] sm:$0xff] %v7106_v63 }
 0x261   :  { %v7103_v27 = vadd.f32 %v3881_v48, %v3624_v41  ;;  %v3369_v34 = vadd.f32 1.0, %v4439_v5  ;;  %4444 = vtanh.f32 %v2731_v25  ;;  %v2476_v55 = vadd.f32 %v2220_v31, %v7078_v61  ;;  %v8388_v48 = vld [vmem:[#allocation27_spill] sm:$0xff] }
 0x262   :  { %v3497_v28 = vmul.f32 %v3241_v16, %v1961_v1  ;;  %4446 = vtanh.f32 %v2859_v12  ;;  %v2348_v0 = vmul.f32 0.044715, %v1836_v58  ;;  %v7112_v50 = vadd.f32 %v6592_v36, %v5268_v52 }
 0x263   :  { %v3625_v19 = vmul.f32 %v3369_v34, %v2089_v23  ;;  %v2732_v54 = vmul.f32 0.7978846, %v2476_v55  ;;  %v7116_v41 = vadd.f32 %v8388_v48, %v5268_v52  ;;  %v7121_v1 = vadd.f32 %v6607_v26, %v5264_v51  ;;  %v8390_v34 = vld [vmem:[#allocation29_spill] sm:$0xff]  ;;  %v8392_v48 = vld [vmem:[#allocation31_spill] sm:$0xff] }
 0x264   :  { %v3787_v25 = vadd.f32 %v3786_v4, %v3497_v28  ;;  %v2604_v60 = vadd.f32 %v2348_v0, %v7084_v17  ;;  %v7125_v10 = vadd.f32 %v8389_v30, %v5264_v51  ;;  %v1962_v29 = vmul.f32 0.5, %v7032_v9 }
 0x265   :  { %v3951_v23 = vadd.f32 %v3950_v35, %v3625_v19  ;;  %4448 = vtanh.f32 %v2732_v54  ;;  %v1453_v36 = vmul.f32 %v7112_v50, %v7112_v50  ;;  %v2090_v8 = vmul.f32 0.5, %v7053_v62 }
 0x266   :  { %v2860_v4 = vmul.f32 0.7978846, %v2604_v60  ;;  %v1581_v46 = vmul.f32 %v7116_v41, %v7116_v41  ;;  %v1454_v26 = vmul.f32 %v7121_v1, %v7121_v1  ;;  %v1963_v31 = vmul.f32 0.5, %v7057_v43  ;;  %v8391_v43 = vld [vmem:[#allocation30_spill] sm:$0xff] }
 0x267   :  { %v4441_v20 = vpop.eup %4440  ;;  %v2091_v24 = vmul.f32 0.5, %v7062_v11  ;;  %v1709_v9 = vmul.f32 %v1453_v36, %v7112_v50  ;;  %v1582_v35 = vmul.f32 %v7125_v10, %v7125_v10  ;;  %v7145_v55 = vadd.f32 %v8390_v34, %v5268_v52 }
 0x268   :  { %v3242_v58 = vadd.f32 1.0, %v4441_v20  ;;  %4450 = vtanh.f32 %v2860_v4  ;;  %v1837_v62 = vmul.f32 %v1581_v46, %v7116_v41  ;;  %v1710_v5 = vmul.f32 %v1454_v26, %v7121_v1  ;;  %v7158_v20 = vpop.f32.mrb[98].mxu0 }
 0x269   :  { %v2221_v16 = vmul.f32 0.044715, %v1709_v9  ;;  %v1838_v12 = vmul.f32 %v1582_v35, %v7125_v10  ;;  %v7149_v11 = vadd.f32 %v8391_v43, %v5268_v52  ;;  %v7153_v60 = vadd.f32 %v8392_v48, %v5264_v51  ;;  %8393 = vst [vmem:[#allocation24_spill] sm:$0xff] %v7158_v20  ;;  %v7160_v9 = vpop.f32.mrb[98].mxu1 }
 0x26a   :  { %v4443_v28 = vpop.eup %4442  ;;  %v3498_v0 = vmul.f32 %v3242_v58, %v1962_v29  ;;  %v2349_v19 = vmul.f32 0.044715, %v1837_v62  ;;  %v2222_v54 = vmul.f32 0.044715, %v1710_v5  ;;  %v1455_v26 = vmul.f32 %v7145_v55, %v7145_v55  ;;  %8394 = vst [vmem:[#allocation25_spill] sm:$0xff] %v7160_v9  ;;  %v7168_v9 = vpop.f32.mrb[99].mxu1 }
 0x26b   :  { %v4445_v30 = vpop.eup %4444  ;;  %v3370_v36 = vadd.f32 1.0, %v4443_v28  ;;  %v2477_v4 = vadd.f32 %v2221_v16, %v7112_v50  ;;  %v2350_v46 = vmul.f32 0.044715, %v1838_v12  ;;  %v7165_v12 = vpop.f32.mrb[99].mxu0  ;;  %8395 = vst [vmem:[#allocation26_spill] sm:$0xff] %v7168_v9 }
 0x26c   :  { %v4447_v35 = vpop.eup %4446  ;;  %v3719_v29 = vadd.f32 %v3718_v38, %v3498_v0  ;;  %v3243_v58 = vadd.f32 1.0, %v4445_v30  ;;  %v2605_v62 = vadd.f32 %v2349_v19, %v7116_v41  ;;  %v2478_v5 = vadd.f32 %v2222_v54, %v7121_v1 }
 0x26d   :  { %v3626_v34 = vmul.f32 %v3370_v36, %v2090_v8  ;;  %v3371_v43 = vadd.f32 1.0, %v4447_v35  ;;  %v2733_v28 = vmul.f32 0.7978846, %v2477_v4  ;;  %v2606_v16 = vadd.f32 %v2350_v46, %v7125_v10 }
 0x26e   :  { %v3499_v48 = vmul.f32 %v3243_v58, %v1963_v31  ;;  %v2861_v39 = vmul.f32 0.7978846, %v2605_v62  ;;  %v2734_v63 = vmul.f32 0.7978846, %v2478_v5  ;;  %v1711_v20 = vmul.f32 %v1455_v26, %v7145_v55  ;;  %v7178_v26 = vpop.f32.mrb[100].mxu0  ;;  %v8397_v62 = vld [vmem:[#allocation7_spill] sm:$0xff] }
 0x26f   :  { %v4449_v38 = vpop.eup %4448  ;;  %v3883_v0 = vadd.f32 %v7103_v27, %v3626_v34  ;;  %v3627_v19 = vmul.f32 %v3371_v43, %v2091_v24  ;;  %4452 = vtanh.f32 %v2733_v28  ;;  %v2862_v54 = vmul.f32 0.7978846, %v2606_v16  ;;  %8396 = vst [vmem:[#allocation27_spill] sm:$0xff] %v7178_v26 }
 0x270   :  { %v7171_v8 = vadd.f32 %v3787_v25, %v3499_v48  ;;  %v1964_v30 = vmul.f32 0.5, %v7078_v61  ;;  %v3244_v36 = vadd.f32 1.0, %v4449_v38  ;;  %4454 = vtanh.f32 %v2861_v39  ;;  %v7199_v38 = vpop.f32.mrb[100].mxu1 }
 0x271   :  { %v7174_v4 = vadd.f32 %v3951_v23, %v3627_v19  ;;  %4456 = vtanh.f32 %v2734_v63  ;;  %v2223_v31 = vmul.f32 0.044715, %v1711_v20  ;;  %v1583_v46 = vmul.f32 %v7149_v11, %v7149_v11  ;;  %8400 = vst [vmem:[#allocation28_spill] sm:$0xff] %v7199_v38 }
 0x272   :  { %v4451_v35 = vpop.eup %4450  ;;  %v3500_v27 = vmul.f32 %v3244_v36, %v1964_v30  ;;  %v2092_v24 = vmul.f32 0.5, %v7084_v17  ;;  %4458 = vtanh.f32 %v2862_v54  ;;  %v1456_v25 = vmul.f32 %v7153_v60, %v7153_v60  ;;  %v8398_v17 = vld [vmem:[#allocation32_spill] sm:$0xff] }
 0x273   :  { %v3372_v61 = vadd.f32 1.0, %v4451_v35  ;;  %v1965_v39 = vmul.f32 0.5, %v7112_v50  ;;  %v2479_v23 = vadd.f32 %v2223_v31, %v7145_v55  ;;  %v1839_v63 = vmul.f32 %v1583_v46, %v7149_v11  ;;  %v8399_v50 = vld [vmem:[#allocation8_spill] sm:$0xff] }
 0x274   :  { %v3720_v20 = vadd.f32 %v3719_v29, %v3500_v27  ;;  %v1712_v58 = vmul.f32 %v1456_v25, %v7153_v60  ;;  %v7189_v5 = vadd.f32 %v8397_v62, %v5264_v51  ;;  %v7193_v34 = vadd.f32 %v8398_v17, %v5268_v52  ;;  %v7222_v62 = vpop.f32.mrb[101].mxu0 }
 0x275   :  { %v3628_v43 = vmul.f32 %v3372_v61, %v2092_v24  ;;  %v2735_v28 = vmul.f32 0.7978846, %v2479_v23  ;;  %v2351_v16 = vmul.f32 0.044715, %v1839_v63  ;;  %v7197_v48 = vadd.f32 %v8399_v50, %v5268_v52  ;;  %8403 = vst [vmem:[#allocation29_spill] sm:$0xff] %v7222_v62 }
 0x276   :  { %v2093_v29 = vmul.f32 0.5, %v7116_v41  ;;  %v2224_v19 = vmul.f32 0.044715, %v1712_v58  ;;  %v1584_v54 = vmul.f32 %v7189_v5, %v7189_v5  ;;  %v1457_v30 = vmul.f32 %v7193_v34, %v7193_v34 }
 0x277   :  { %v3884_v36 = vadd.f32 %v3883_v0, %v3628_v43  ;;  %v1966_v31 = vmul.f32 0.5, %v7121_v1  ;;  %4460 = vtanh.f32 %v2735_v28  ;;  %v2607_v46 = vadd.f32 %v2351_v16, %v7149_v11  ;;  %v8401_v0 = vld [vmem:[#allocation9_spill] sm:$0xff]  ;;  %v8402_v1 = vld [vmem:[#allocation10_spill] sm:$0xff] }
 0x278   :  { %v2480_v35 = vadd.f32 %v2224_v19, %v7153_v60  ;;  %v1840_v27 = vmul.f32 %v1584_v54, %v7189_v5  ;;  %v1713_v24 = vmul.f32 %v1457_v30, %v7193_v34  ;;  %v1585_v41 = vmul.f32 %v7197_v48, %v7197_v48  ;;  %v7225_v19 = vpop.f32.mrb[101].mxu1 }
 0x279   :  { %v4453_v25 = vpop.eup %4452  ;;  %v2094_v61 = vmul.f32 0.5, %v7125_v10  ;;  %v2863_v23 = vmul.f32 0.7978846, %v2607_v46  ;;  %v7216_v63 = vadd.f32 %v8401_v0, %v5264_v51  ;;  %v7220_v58 = vadd.f32 %v8402_v1, %v5264_v51  ;;  %8404 = vst [vmem:[#allocation30_spill] sm:$0xff] %v7225_v19 }
 0x27a   :  { %v4455_v17 = vpop.eup %4454  ;;  %v3245_v43 = vadd.f32 1.0, %v4453_v25  ;;  %v2736_v28 = vmul.f32 0.7978846, %v2480_v35  ;;  %v2352_v16 = vmul.f32 0.044715, %v1840_v27  ;;  %v1841_v50 = vmul.f32 %v1585_v41, %v7197_v48 }
 0x27b   :  { %v4457_v10 = vpop.eup %4456  ;;  %v3373_v54 = vadd.f32 1.0, %v4455_v17  ;;  %4462 = vtanh.f32 %v2863_v23  ;;  %v2225_v30 = vmul.f32 0.044715, %v1713_v24  ;;  %v1458_v46 = vmul.f32 %v7216_v63, %v7216_v63  ;;  %v7233_v23 = vpop.f32.mrb[102].mxu0 }
 0x27c   :  { %v4459_v0 = vpop.eup %4458  ;;  %v3501_v1 = vmul.f32 %v3245_v43, %v1965_v39  ;;  %v3246_v38 = vadd.f32 1.0, %v4457_v10  ;;  %4464 = vtanh.f32 %v2736_v28  ;;  %v2608_v62 = vadd.f32 %v2352_v16, %v7189_v5  ;;  %v7237_v16 = vpop.f32.mrb[102].mxu1 }
 0x27d   :  { %v3629_v25 = vmul.f32 %v3373_v54, %v2093_v29  ;;  %v3374_v35 = vadd.f32 1.0, %v4459_v0  ;;  %v2481_v27 = vadd.f32 %v2225_v30, %v7193_v34  ;;  %v2353_v41 = vmul.f32 0.044715, %v1841_v50 }
 0x27e   :  { %v3789_v19 = vadd.f32 %v7171_v8, %v3501_v1  ;;  %v3502_v26 = vmul.f32 %v3246_v38, %v1966_v31  ;;  %v2864_v17 = vmul.f32 0.7978846, %v2608_v62  ;;  %v1714_v24 = vmul.f32 %v1458_v46, %v7216_v63 }
 0x27f   :  { %v3953_v9 = vadd.f32 %v7174_v4, %v3629_v25  ;;  %v3630_v39 = vmul.f32 %v3374_v35, %v2094_v61  ;;  %v2737_v43 = vmul.f32 0.7978846, %v2481_v27  ;;  %v2609_v28 = vadd.f32 %v2353_v41, %v7197_v48  ;;  %v7244_v4 = vpop.f32.mrb[103].mxu0 }
 0x280   :  { %v3721_v29 = vadd.f32 %v3720_v20, %v3502_v26  ;;  %v1967_v10 = vmul.f32 0.5, %v7145_v55  ;;  %4466 = vtanh.f32 %v2864_v17  ;;  %v2226_v50 = vmul.f32 0.044715, %v1714_v24  ;;  %v8405_v26 = vld [vmem:[#allocation11_spill] sm:$0xff] }
 0x281   :  { %v4461_v8 = vpop.eup %4460  ;;  %v7240_v38 = vadd.f32 %v3884_v36, %v3630_v39  ;;  %4468 = vtanh.f32 %v2737_v43  ;;  %v2865_v31 = vmul.f32 0.7978846, %v2609_v28  ;;  %v1586_v62 = vmul.f32 %v7220_v58, %v7220_v58  ;;  %v7270_v43 = vpop.f32.mrb[103].mxu1 }
 0x282   :  { %v3247_v61 = vadd.f32 1.0, %v4461_v8  ;;  %v2095_v54 = vmul.f32 0.5, %v7149_v11  ;;  %v2482_v30 = vadd.f32 %v2226_v50, %v7216_v63  ;;  %v7250_v55 = vadd.f32 %v8405_v26, %v5268_v52 }
 0x283   :  { %4470 = vtanh.f32 %v2865_v31  ;;  %v1842_v20 = vmul.f32 %v1586_v62, %v7220_v58  ;;  %v7255_v36 = vadd.f32 %v6730_v2, %v5268_v52  ;;  %v7259_v46 = vadd.f32 %v6738_v22, %v5264_v51 }
 0x284   :  { %v3503_v0 = vmul.f32 %v3247_v61, %v1967_v10  ;;  %v1968_v11 = vmul.f32 0.5, %v7153_v60  ;;  %v2738_v1 = vmul.f32 0.7978846, %v2482_v30  ;;  %v1459_v25 = vmul.f32 %v7250_v55, %v7250_v55  ;;  %v8406_v61 = vld [vmem:[#allocation12_spill] sm:$0xff] }
 0x285   :  { %v4463_v35 = vpop.eup %4462  ;;  %v2096_v27 = vmul.f32 0.5, %v7189_v5  ;;  %v2354_v41 = vmul.f32 0.044715, %v1842_v20  ;;  %v1587_v17 = vmul.f32 %v7255_v36, %v7255_v36  ;;  %v1460_v2 = vmul.f32 %v7259_v46, %v7259_v46 }
 0x286   :  { %v4465_v24 = vpop.eup %4464  ;;  %v3790_v22 = vadd.f32 %v3789_v19, %v3503_v0  ;;  %v3375_v39 = vadd.f32 1.0, %v4463_v35  ;;  %4472 = vtanh.f32 %v2738_v1  ;;  %v1715_v60 = vmul.f32 %v1459_v25, %v7250_v55 }
 0x287   :  { %v3248_v28 = vadd.f32 1.0, %v4465_v24  ;;  %v2610_v10 = vadd.f32 %v2354_v41, %v7220_v58  ;;  %v1843_v5 = vmul.f32 %v1587_v17, %v7255_v36  ;;  %v1716_v50 = vmul.f32 %v1460_v2, %v7259_v46 }
 0x288   :  { %v3631_v8 = vmul.f32 %v3375_v39, %v2095_v54  ;;  %v1969_v31 = vmul.f32 0.5, %v7193_v34  ;;  %v2227_v62 = vmul.f32 0.044715, %v1715_v60  ;;  %v7278_v19 = vadd.f32 %v8406_v61, %v5264_v51 }
 0x289   :  { %v3504_v30 = vmul.f32 %v3248_v28, %v1968_v11  ;;  %v2866_v26 = vmul.f32 0.7978846, %v2610_v10  ;;  %v2355_v20 = vmul.f32 0.044715, %v1843_v5  ;;  %v2228_v0 = vmul.f32 0.044715, %v1716_v50 }
 0x28a   :  { %v4467_v1 = vpop.eup %4466  ;;  %v3954_v25 = vadd.f32 %v3953_v9, %v3631_v8  ;;  %v2097_v35 = vmul.f32 0.5, %v7197_v48  ;;  %v2483_v41 = vadd.f32 %v2227_v62, %v7250_v55  ;;  %v1588_v54 = vmul.f32 %v7278_v19, %v7278_v19  ;;  %v7287_v9 = vpop.f32.mrb[104].mxu0  ;;  %v8407_v8 = vld [vmem:[#allocation13_spill] sm:$0xff]  ;;  %v8408_v62 = vld [vmem:[#allocation14_spill] sm:$0xff] }
 0x28b   :  { %v4469_v17 = vpop.eup %4468  ;;  %v3722_v34 = vadd.f32 %v3721_v29, %v3504_v30  ;;  %v3376_v2 = vadd.f32 1.0, %v4467_v1  ;;  %4474 = vtanh.f32 %v2866_v26  ;;  %v2611_v24 = vadd.f32 %v2355_v20, %v7255_v36  ;;  %v7289_v48 = vpop.f32.mrb[104].mxu1 }
 0x28c   :  { %v3249_v39 = vadd.f32 1.0, %v4469_v17  ;;  %v2739_v11 = vmul.f32 0.7978846, %v2483_v41  ;;  %v2484_v60 = vadd.f32 %v2228_v0, %v7259_v46  ;;  %v1844_v28 = vmul.f32 %v1588_v54, %v7278_v19  ;;  %v7299_v30 = vpop.f32.mrb[105].mxu0  ;;  %v7301_v26 = vpop.f32.mrb[105].mxu1 }
 0x28d   :  { %v4471_v10 = vpop.eup %4470  ;;  %v3632_v5 = vmul.f32 %v3376_v2, %v2096_v27  ;;  %v2867_v50 = vmul.f32 0.7978846, %v2611_v24  ;;  %v7293_v29 = vadd.f32 %v8407_v8, %v5268_v52  ;;  %v7297_v61 = vadd.f32 %v8408_v62, %v5268_v52  ;;  %8409 = vst [vmem:[#allocation31_spill] sm:$0xff] %v7299_v30  ;;  %8410 = vst [vmem:[#allocation7_spill] sm:$0xff] %v7301_v26 }
 0x28e   :  { %v3505_v20 = vmul.f32 %v3249_v39, %v1969_v31  ;;  %v3377_v0 = vadd.f32 1.0, %v4471_v10  ;;  %4476 = vtanh.f32 %v2739_v11  ;;  %v2740_v1 = vmul.f32 0.7978846, %v2484_v60 }
 0x28f   :  { %v3886_v41 = vadd.f32 %v7240_v38, %v3632_v5  ;;  %4478 = vtanh.f32 %v2867_v50  ;;  %v2356_v27 = vmul.f32 0.044715, %v1844_v28  ;;  %v1461_v54 = vmul.f32 %v7293_v29, %v7293_v29 }
 0x290   :  { %v4473_v17 = vpop.eup %4472  ;;  %v3791_v2 = vadd.f32 %v3790_v22, %v3505_v20  ;;  %v3633_v24 = vmul.f32 %v3377_v0, %v2097_v35  ;;  %v1970_v8 = vmul.f32 0.5, %v7216_v63  ;;  %4480 = vtanh.f32 %v2740_v1 }
 0x291   :  { %v3250_v62 = vadd.f32 1.0, %v4473_v17  ;;  %v2612_v26 = vadd.f32 %v2356_v27, %v7278_v19  ;;  %v1717_v31 = vmul.f32 %v1461_v54, %v7293_v29  ;;  %v1589_v39 = vmul.f32 %v7297_v61, %v7297_v61 }
 0x292   :  { %v3955_v38 = vadd.f32 %v3954_v25, %v3633_v24  ;;  %v2098_v11 = vmul.f32 0.5, %v7220_v58  ;;  %v7314_v60 = vadd.f32 %v6791_v47, %v5264_v51  ;;  %v7318_v22 = vadd.f32 %v6793_v37, %v5264_v51 }
 0x293   :  { %v3506_v63 = vmul.f32 %v3250_v62, %v1970_v8  ;;  %v2868_v35 = vmul.f32 0.7978846, %v2612_v26  ;;  %v2229_v28 = vmul.f32 0.044715, %v1717_v31  ;;  %v1845_v10 = vmul.f32 %v1589_v39, %v7297_v61  ;;  %v7328_v26 = vpop.f32.mrb[106].mxu0  ;;  %v8413_v8 = vld [vmem:[#allocation33_spill] sm:$0xff] }
 0x294   :  { %v1971_v5 = vmul.f32 0.5, %v7250_v55  ;;  %v2099_v50 = vmul.f32 0.5, %v7255_v36  ;;  %v1462_v58 = vmul.f32 %v7314_v60, %v7314_v60  ;;  %v1590_v47 = vmul.f32 %v7318_v22, %v7318_v22  ;;  %8411 = vst [vmem:[#allocation32_spill] sm:$0xff] %v7328_v26  ;;  %v8412_v36 = vld [vmem:[#allocation15_spill] sm:$0xff]  ;;  %v7342_v31 = vpop.f32.mrb[106].mxu1 }
 0x295   :  { %v4475_v25 = vpop.eup %4474  ;;  %v3723_v20 = vadd.f32 %v3722_v34, %v3506_v63  ;;  %4482 = vtanh.f32 %v2868_v35  ;;  %v2485_v37 = vadd.f32 %v2229_v28, %v7293_v29  ;;  %v2357_v0 = vmul.f32 0.044715, %v1845_v10  ;;  %8414 = vst [vmem:[#allocation8_spill] sm:$0xff] %v7342_v31 }
 0x296   :  { %v3378_v1 = vadd.f32 1.0, %v4475_v25  ;;  %v1718_v27 = vmul.f32 %v1462_v58, %v7314_v60  ;;  %v1846_v55 = vmul.f32 %v1590_v47, %v7318_v22  ;;  %v7334_v54 = vadd.f32 %v8412_v36, %v5268_v52  ;;  %v8415_v25 = vld [vmem:[#allocation34_spill] sm:$0xff]  ;;  %v7352_v36 = vpop.f32.mrb[107].mxu1 }
 0x297   :  { %v1972_v17 = vmul.f32 0.5, %v7259_v46  ;;  %v2741_v24 = vmul.f32 0.7978846, %v2485_v37  ;;  %v2613_v34 = vadd.f32 %v2357_v0, %v7297_v61  ;;  %v7340_v62 = vadd.f32 %v8413_v8, %v5268_v52  ;;  %v7350_v0 = vpop.f32.mrb[107].mxu0  ;;  %8417 = vst [vmem:[#allocation10_spill] sm:$0xff] %v7352_v36 }
 0x298   :  { %v4477_v39 = vpop.eup %4476  ;;  %v3634_v63 = vmul.f32 %v3378_v1, %v2098_v11  ;;  %v2230_v35 = vmul.f32 0.044715, %v1718_v27  ;;  %v2358_v28 = vmul.f32 0.044715, %v1846_v55  ;;  %v1463_v10 = vmul.f32 %v7334_v54, %v7334_v54  ;;  %8416 = vst [vmem:[#allocation9_spill] sm:$0xff] %v7350_v0 }
 0x299   :  { %v4479_v58 = vpop.eup %4478  ;;  %v3251_v47 = vadd.f32 1.0, %v4477_v39  ;;  %4484 = vtanh.f32 %v2741_v24  ;;  %v2869_v46 = vmul.f32 0.7978846, %v2613_v34  ;;  %v7348_v37 = vadd.f32 %v8415_v25, %v5264_v51 }
 0x29a   :  { %v4481_v8 = vpop.eup %4480  ;;  %v3887_v31 = vadd.f32 %v3886_v41, %v3634_v63  ;;  %v3379_v11 = vadd.f32 1.0, %v4479_v58  ;;  %v2486_v1 = vadd.f32 %v2230_v35, %v7314_v60  ;;  %v2614_v27 = vadd.f32 %v2358_v28, %v7318_v22 }
 0x29b   :  { %v3507_v55 = vmul.f32 %v3251_v47, %v1971_v5  ;;  %v3252_v26 = vadd.f32 1.0, %v4481_v8  ;;  %4486 = vtanh.f32 %v2869_v46  ;;  %v1719_v24 = vmul.f32 %v1463_v10, %v7334_v54  ;;  %v7372_v46 = vpop.f32.mrb[108].mxu0 }
 0x29c   :  { %v3635_v34 = vmul.f32 %v3379_v11, %v2099_v50  ;;  %v2742_v39 = vmul.f32 0.7978846, %v2486_v1  ;;  %v2870_v25 = vmul.f32 0.7978846, %v2614_v27  ;;  %v1591_v0 = vmul.f32 %v7340_v62, %v7340_v62 }
 0x29d   :  { %v3792_v30 = vadd.f32 %v3791_v2, %v3507_v55  ;;  %v3508_v36 = vmul.f32 %v3252_v26, %v1972_v17  ;;  %v2100_v41 = vmul.f32 0.5, %v7278_v19  ;;  %v2231_v63 = vmul.f32 0.044715, %v1719_v24 }
 0x29e   :  { %v3956_v58 = vadd.f32 %v3955_v38, %v3635_v34  ;;  %4488 = vtanh.f32 %v2742_v39  ;;  %v1847_v35 = vmul.f32 %v1591_v0, %v7340_v62  ;;  %v1464_v5 = vmul.f32 %v7348_v37, %v7348_v37  ;;  %v8418_v38 = vld [vmem:[#allocation16_spill] sm:$0xff]  ;;  %v7374_v0 = vpop.f32.mrb[108].mxu1 }
 0x29f   :  { %v4483_v28 = vpop.eup %4482  ;;  %v7363_v10 = vadd.f32 %v3723_v20, %v3508_v36  ;;  %v1973_v50 = vmul.f32 0.5, %v7293_v29  ;;  %4490 = vtanh.f32 %v2870_v25  ;;  %v2487_v47 = vadd.f32 %v2231_v63, %v7334_v54 }
 0x2a0   :  { %v3380_v2 = vadd.f32 1.0, %v4483_v28  ;;  %v2359_v26 = vmul.f32 0.044715, %v1847_v35  ;;  %v1720_v19 = vmul.f32 %v1464_v5, %v7348_v37  ;;  %v7370_v17 = vadd.f32 %v8418_v38, %v5264_v51 }
 0x2a1   :  { %v2101_v20 = vmul.f32 0.5, %v7297_v61  ;;  %v2743_v36 = vmul.f32 0.7978846, %v2487_v47  ;;  %v7379_v29 = vadd.f32 %v6857_v18, %v5268_v52  ;;  %v7383_v8 = vadd.f32 %v6859_v49, %v5268_v52  ;;  %v7401_v47 = vpop.f32.mrb[109].mxu0 }
 0x2a2   :  { %v3636_v11 = vmul.f32 %v3380_v2, %v2100_v41  ;;  %v2615_v1 = vadd.f32 %v2359_v26, %v7340_v62  ;;  %v2232_v27 = vmul.f32 0.044715, %v1720_v19  ;;  %v1592_v55 = vmul.f32 %v7370_v17, %v7370_v17 }
 0x2a3   :  { %v4485_v24 = vpop.eup %4484  ;;  %v1974_v34 = vmul.f32 0.5, %v7314_v60  ;;  %4492 = vtanh.f32 %v2743_v36  ;;  %v1465_v61 = vmul.f32 %v7379_v29, %v7379_v29  ;;  %v7393_v18 = vadd.f32 %v6866_v7, %v5264_v51  ;;  %v7406_v36 = vpop.f32.mrb[109].mxu1 }
 0x2a4   :  { %v3888_v49 = vadd.f32 %v3887_v31, %v3636_v11  ;;  %v3253_v39 = vadd.f32 1.0, %v4485_v24  ;;  %v2871_v25 = vmul.f32 0.7978846, %v2615_v1  ;;  %v2488_v41 = vadd.f32 %v2232_v27, %v7348_v37 }
 0x2a5   :  { %v4487_v63 = vpop.eup %4486  ;;  %v2102_v35 = vmul.f32 0.5, %v7318_v22  ;;  %v1848_v5 = vmul.f32 %v1592_v55, %v7370_v17  ;;  %v1721_v60 = vmul.f32 %v1465_v61, %v7379_v29  ;;  %v1593_v28 = vmul.f32 %v7383_v8, %v7383_v8 }
 0x2a6   :  { %v3509_v2 = vmul.f32 %v3253_v39, %v1973_v50  ;;  %v3381_v7 = vadd.f32 1.0, %v4487_v63  ;;  %4494 = vtanh.f32 %v2871_v25  ;;  %v2744_v31 = vmul.f32 0.7978846, %v2488_v41 }
 0x2a7   :  { %v2360_v26 = vmul.f32 0.044715, %v1848_v5  ;;  %v2233_v19 = vmul.f32 0.044715, %v1721_v60  ;;  %v1849_v38 = vmul.f32 %v1593_v28, %v7383_v8  ;;  %v1466_v22 = vmul.f32 %v7393_v18, %v7393_v18 }
 0x2a8   :  { %v4489_v11 = vpop.eup %4488  ;;  %v3793_v1 = vadd.f32 %v3792_v30, %v3509_v2  ;;  %v3637_v27 = vmul.f32 %v3381_v7, %v2101_v20  ;;  %v1975_v55 = vmul.f32 0.5, %v7334_v54  ;;  %4496 = vtanh.f32 %v2744_v31  ;;  %v7417_v2 = vpop.f32.mrb[110].mxu0 }
 0x2a9   :  { %v4491_v24 = vpop.eup %4490  ;;  %v3254_v50 = vadd.f32 1.0, %v4489_v11  ;;  %v2616_v61 = vadd.f32 %v2360_v26, %v7370_v17  ;;  %v2489_v39 = vadd.f32 %v2233_v19, %v7379_v29  ;;  %v2361_v25 = vmul.f32 0.044715, %v1849_v38  ;;  %v7419_v7 = vpop.f32.mrb[110].mxu1 }
 0x2aa   :  { %v3957_v41 = vadd.f32 %v3956_v58, %v3637_v27  ;;  %v3382_v63 = vadd.f32 1.0, %v4491_v24  ;;  %v1722_v5 = vmul.f32 %v1466_v22, %v7393_v18  ;;  %v7414_v60 = vadd.f32 %v6868_v56, %v5264_v51  ;;  %v8419_v22 = vld [vmem:[#allocation17_spill] sm:$0xff] }
 0x2ab   :  { %v3510_v30 = vmul.f32 %v3254_v50, %v1974_v34  ;;  %v2872_v20 = vmul.f32 0.7978846, %v2616_v61  ;;  %v2745_v28 = vmul.f32 0.7978846, %v2489_v39  ;;  %v2617_v54 = vadd.f32 %v2361_v25, %v7383_v8 }
 0x2ac   :  { %v3638_v31 = vmul.f32 %v3382_v63, %v2102_v35  ;;  %v2103_v26 = vmul.f32 0.5, %v7340_v62  ;;  %v2234_v58 = vmul.f32 0.044715, %v1722_v5  ;;  %v1594_v19 = vmul.f32 %v7414_v60, %v7414_v60  ;;  %v7432_v62 = vpop.f32.mrb[111].mxu0 }
 0x2ad   :  { %v4493_v38 = vpop.eup %4492  ;;  %v3725_v56 = vadd.f32 %v7363_v10, %v3510_v30  ;;  %4498 = vtanh.f32 %v2872_v20  ;;  %v2873_v34 = vmul.f32 0.7978846, %v2617_v54  ;;  %v7427_v11 = vadd.f32 %v8419_v22, %v5268_v52 }
 0x2ae   :  { %v7429_v27 = vadd.f32 %v3888_v49, %v3638_v31  ;;  %v3255_v24 = vadd.f32 1.0, %v4493_v38  ;;  %4500 = vtanh.f32 %v2745_v28  ;;  %v2490_v35 = vadd.f32 %v2234_v58, %v7393_v18  ;;  %v8420_v49 = vld [vmem:[#allocation18_spill] sm:$0xff] }
 0x2af   :  { %v1976_v50 = vmul.f32 0.5, %v7348_v37  ;;  %4502 = vtanh.f32 %v2873_v34  ;;  %v1850_v61 = vmul.f32 %v1594_v19, %v7414_v60  ;;  %v1467_v10 = vmul.f32 %v7427_v11, %v7427_v11 }
 0x2b0   :  { %v4495_v39 = vpop.eup %4494  ;;  %v3511_v25 = vmul.f32 %v3255_v24, %v1975_v55  ;;  %v2746_v63 = vmul.f32 0.7978846, %v2490_v35  ;;  %v7440_v5 = vadd.f32 %v8420_v49, %v5268_v52  ;;  %v7444_v30 = vadd.f32 %v6916_v15, %v5264_v51  ;;  %v7455_v24 = vpop.f32.mrb[111].mxu1 }
 0x2b1   :  { %v3383_v20 = vadd.f32 1.0, %v4495_v39  ;;  %v2362_v28 = vmul.f32 0.044715, %v1850_v61  ;;  %v1723_v37 = vmul.f32 %v1467_v10, %v7427_v11  ;;  %v7449_v54 = vadd.f32 %v6918_v53, %v5264_v51 }
 0x2b2   :  { %v4497_v31 = vpop.eup %4496  ;;  %v3794_v58 = vadd.f32 %v3793_v1, %v3511_v25  ;;  %v2104_v55 = vmul.f32 0.5, %v7370_v17  ;;  %4504 = vtanh.f32 %v2746_v63  ;;  %v1595_v19 = vmul.f32 %v7440_v5, %v7440_v5 }
 0x2b3   :  { %v3639_v38 = vmul.f32 %v3383_v20, %v2103_v26  ;;  %v3256_v34 = vadd.f32 1.0, %v4497_v31  ;;  %v2618_v15 = vadd.f32 %v2362_v28, %v7414_v60  ;;  %v2235_v22 = vmul.f32 0.044715, %v1723_v37 }
 0x2b4   :  { %v1977_v35 = vmul.f32 0.5, %v7379_v29  ;;  %v1851_v53 = vmul.f32 %v1595_v19, %v7440_v5  ;;  %v1468_v1 = vmul.f32 %v7444_v30, %v7444_v30  ;;  %v1596_v17 = vmul.f32 %v7449_v54, %v7449_v54 }
 0x2b5   :  { %v3958_v61 = vadd.f32 %v3957_v41, %v3639_v38  ;;  %v3512_v10 = vmul.f32 %v3256_v34, %v1976_v50  ;;  %v2874_v39 = vmul.f32 0.7978846, %v2618_v15  ;;  %v2491_v26 = vadd.f32 %v2235_v22, %v7427_v11  ;;  %v7471_v41 = vpop.f32.mrb[112].mxu0  ;;  %v7473_v50 = vpop.f32.mrb[112].mxu1 }
 0x2b6   :  { %v2105_v25 = vmul.f32 0.5, %v7383_v8  ;;  %v2363_v63 = vmul.f32 0.044715, %v1851_v53  ;;  %v1724_v49 = vmul.f32 %v1468_v1, %v7444_v30  ;;  %v1852_v29 = vmul.f32 %v1596_v17, %v7449_v54 }
 0x2b7   :  { %v4499_v20 = vpop.eup %4498  ;;  %v3726_v28 = vadd.f32 %v3725_v56, %v3512_v10  ;;  %4506 = vtanh.f32 %v2874_v39  ;;  %v2747_v37 = vmul.f32 0.7978846, %v2491_v26  ;;  %v7469_v31 = vadd.f32 %v6929_v42, %v5268_v52  ;;  %v7479_v42 = vpop.f32.mrb[113].mxu0 }
 0x2b8   :  { %v4501_v19 = vpop.eup %4500  ;;  %v3384_v38 = vadd.f32 1.0, %v4499_v20  ;;  %v2619_v8 = vadd.f32 %v2363_v63, %v7440_v5  ;;  %v2236_v34 = vmul.f32 0.044715, %v1724_v49  ;;  %v2364_v15 = vmul.f32 0.044715, %v1852_v29  ;;  %8421 = vst [vmem:[#allocation11_spill] sm:$0xff] %v7479_v42 }
 0x2b9   :  { %v4503_v22 = vpop.eup %4502  ;;  %v3257_v53 = vadd.f32 1.0, %v4501_v19  ;;  %v1978_v56 = vmul.f32 0.5, %v7393_v18  ;;  %4508 = vtanh.f32 %v2747_v37  ;;  %v1469_v1 = vmul.f32 %v7469_v31, %v7469_v31  ;;  %v7488_v18 = vpop.f32.mrb[113].mxu1 }
 0x2ba   :  { %v3640_v17 = vmul.f32 %v3384_v38, %v2104_v55  ;;  %v3385_v10 = vadd.f32 1.0, %v4503_v22  ;;  %v2875_v39 = vmul.f32 0.7978846, %v2619_v8  ;;  %v2492_v26 = vadd.f32 %v2236_v34, %v7444_v30 }
 0x2bb   :  { %v3513_v20 = vmul.f32 %v3257_v53, %v1977_v35  ;;  %v2620_v63 = vadd.f32 %v2364_v15, %v7449_v54  ;;  %v1725_v49 = vmul.f32 %v1469_v1, %v7469_v31  ;;  %v7486_v29 = vadd.f32 %v6938_v40, %v5268_v52 }
 0x2bc   :  { %v4505_v37 = vpop.eup %4504  ;;  %v3890_v19 = vadd.f32 %v7429_v27, %v3640_v17  ;;  %v3641_v42 = vmul.f32 %v3385_v10, %v2105_v25  ;;  %4510 = vtanh.f32 %v2875_v39  ;;  %v2748_v55 = vmul.f32 0.7978846, %v2492_v26  ;;  %v7499_v25 = vpop.f32.mrb[114].mxu0 }
 0x2bd   :  { %v3795_v38 = vadd.f32 %v3794_v58, %v3513_v20  ;;  %v3258_v8 = vadd.f32 1.0, %v4505_v37  ;;  %v2876_v34 = vmul.f32 0.7978846, %v2620_v63  ;;  %v2237_v35 = vmul.f32 0.044715, %v1725_v49  ;;  %v7520_v63 = vpop.f32.mrb[114].mxu1 }
 0x2be   :  { %v3959_v22 = vadd.f32 %v3958_v61, %v3641_v42  ;;  %v2106_v15 = vmul.f32 0.5, %v7414_v60  ;;  %4512 = vtanh.f32 %v2748_v55  ;;  %v1597_v40 = vmul.f32 %v7486_v29, %v7486_v29 }
 0x2bf   :  { %v3514_v53 = vmul.f32 %v3258_v8, %v1978_v56  ;;  %4514 = vtanh.f32 %v2876_v34  ;;  %v2493_v1 = vadd.f32 %v2237_v35, %v7469_v31  ;;  %v7497_v27 = vadd.f32 %v6972_v32, %v5264_v51 }
 0x2c0   :  { %v1979_v58 = vmul.f32 0.5, %v7427_v11  ;;  %v1853_v61 = vmul.f32 %v1597_v40, %v7486_v29  ;;  %v7505_v60 = vadd.f32 %v6974_v3, %v5264_v51  ;;  %v7509_v56 = vadd.f32 %v6979_v57, %v5268_v52 }
 0x2c1   :  { %v4507_v42 = vpop.eup %4506  ;;  %v3727_v17 = vadd.f32 %v3726_v28, %v3514_v53  ;;  %v2749_v10 = vmul.f32 0.7978846, %v2493_v1  ;;  %v1470_v32 = vmul.f32 %v7497_v27, %v7497_v27  ;;  %v7515_v39 = vadd.f32 %v6982_v6, %v5268_v52 }
 0x2c2   :  { %v3386_v11 = vadd.f32 1.0, %v4507_v42  ;;  %v2107_v26 = vmul.f32 0.5, %v7440_v5  ;;  %v2365_v20 = vmul.f32 0.044715, %v1853_v61  ;;  %v1598_v3 = vmul.f32 %v7505_v60, %v7505_v60 }
 0x2c3   :  { %v4509_v57 = vpop.eup %4508  ;;  %v1980_v28 = vmul.f32 0.5, %v7444_v30  ;;  %4516 = vtanh.f32 %v2749_v10  ;;  %v1726_v49 = vmul.f32 %v1470_v32, %v7497_v27  ;;  %v1471_v37 = vmul.f32 %v7509_v56, %v7509_v56  ;;  %v7532_v32 = vpop.f32.mrb[115].mxu0 }
 0x2c4   :  { %v3642_v6 = vmul.f32 %v3386_v11, %v2106_v15  ;;  %v3259_v55 = vadd.f32 1.0, %v4509_v57  ;;  %v2621_v8 = vadd.f32 %v2365_v20, %v7486_v29  ;;  %v1854_v5 = vmul.f32 %v1598_v3, %v7505_v60 }
 0x2c5   :  { %v2108_v34 = vmul.f32 0.5, %v7449_v54  ;;  %v2238_v35 = vmul.f32 0.044715, %v1726_v49  ;;  %v1727_v40 = vmul.f32 %v1471_v37, %v7509_v56  ;;  %v1599_v30 = vmul.f32 %v7515_v39, %v7515_v39  ;;  %v7536_v54 = vpop.f32.mrb[115].mxu1 }
 0x2c6   :  { %v4511_v53 = vpop.eup %4510  ;;  %v3891_v1 = vadd.f32 %v3890_v19, %v3642_v6  ;;  %v3515_v61 = vmul.f32 %v3259_v55, %v1979_v58  ;;  %v2877_v42 = vmul.f32 0.7978846, %v2621_v8  ;;  %v2366_v10 = vmul.f32 0.044715, %v1854_v5  ;;  %8422 = vst [vmem:[#allocation12_spill] sm:$0xff] %v7536_v54 }
 0x2c7   :  { %v3387_v15 = vadd.f32 1.0, %v4511_v53  ;;  %v2494_v11 = vadd.f32 %v2238_v35, %v7497_v27  ;;  %v2239_v20 = vmul.f32 0.044715, %v1727_v40  ;;  %v1855_v3 = vmul.f32 %v1599_v30, %v7515_v39 }
 0x2c8   :  { %v4513_v57 = vpop.eup %4512  ;;  %v3796_v49 = vadd.f32 %v3795_v38, %v3515_v61  ;;  %4518 = vtanh.f32 %v2877_v42  ;;  %v2622_v37 = vadd.f32 %v2366_v10, %v7505_v60  ;;  %v7541_v19 = vadd.f32 %v7002_v13, %v5264_v51  ;;  %v7546_v38 = vpop.f32.mrb[116].mxu0 }
 0x2c9   :  { %v4515_v58 = vpop.eup %4514  ;;  %v3643_v6 = vmul.f32 %v3387_v15, %v2107_v26  ;;  %v3260_v55 = vadd.f32 1.0, %v4513_v57  ;;  %v2750_v8 = vmul.f32 0.7978846, %v2494_v11  ;;  %v2495_v5 = vadd.f32 %v2239_v20, %v7509_v56  ;;  %v7548_v13 = vpop.f32.mrb[116].mxu1  ;;  %v8423_v57 = vld [vmem:[#allocation19_spill] sm:$0xff] }
 0x2ca   :  { %v3388_v35 = vadd.f32 1.0, %v4515_v58  ;;  %v2878_v40 = vmul.f32 0.7978846, %v2622_v37  ;;  %v2367_v30 = vmul.f32 0.044715, %v1855_v3  ;;  %v1472_v53 = vmul.f32 %v7541_v19, %v7541_v19 }
 0x2cb   :  { %v3960_v61 = vadd.f32 %v3959_v22, %v3643_v6  ;;  %v3516_v42 = vmul.f32 %v3260_v55, %v1980_v28  ;;  %4520 = vtanh.f32 %v2750_v8  ;;  %v2751_v10 = vmul.f32 0.7978846, %v2495_v5 }
 0x2cc   :  { %v3644_v54 = vmul.f32 %v3388_v35, %v2108_v34  ;;  %4522 = vtanh.f32 %v2878_v40  ;;  %v2623_v26 = vadd.f32 %v2367_v30, %v7515_v39  ;;  %v1728_v15 = vmul.f32 %v1472_v53, %v7541_v19 }
 0x2cd   :  { %v4517_v11 = vpop.eup %4516  ;;  %v3728_v20 = vadd.f32 %v3727_v17, %v3516_v42  ;;  %v1981_v3 = vmul.f32 0.5, %v7469_v31  ;;  %4524 = vtanh.f32 %v2751_v10  ;;  %v7555_v37 = vadd.f32 %v8423_v57, %v5264_v51 }
 0x2ce   :  { %v3892_v22 = vadd.f32 %v3891_v1, %v3644_v54  ;;  %v3261_v28 = vadd.f32 1.0, %v4517_v11  ;;  %v2879_v58 = vmul.f32 0.7978846, %v2623_v26  ;;  %v2240_v6 = vmul.f32 0.044715, %v1728_v15  ;;  %v7586_v11 = vpop.f32.mrb[117].mxu1 }
 0x2cf   :  { %v2109_v34 = vmul.f32 0.5, %v7486_v29  ;;  %v1600_v55 = vmul.f32 %v7555_v37, %v7555_v37  ;;  %v7562_v8 = vadd.f32 %v7037_v14, %v5268_v52  ;;  %v7566_v31 = vadd.f32 %v7040_v33, %v5268_v52  ;;  %v7573_v29 = vpop.f32.mrb[117].mxu0  ;;  %8425 = vst [vmem:[#allocation14_spill] sm:$0xff] %v7586_v11 }
 0x2d0   :  { %v3517_v17 = vmul.f32 %v3261_v28, %v1981_v3  ;;  %4526 = vtanh.f32 %v2879_v58  ;;  %v2496_v1 = vadd.f32 %v2240_v6, %v7541_v19  ;;  %v7571_v54 = vadd.f32 %v7044_v21, %v5264_v51  ;;  %8424 = vst [vmem:[#allocation13_spill] sm:$0xff] %v7573_v29 }
 0x2d1   :  { %v1982_v5 = vmul.f32 0.5, %v7497_v27  ;;  %v1856_v35 = vmul.f32 %v1600_v55, %v7555_v37  ;;  %v1473_v14 = vmul.f32 %v7562_v8, %v7562_v8  ;;  %v1601_v33 = vmul.f32 %v7566_v31, %v7566_v31 }
 0x2d2   :  { %v4519_v40 = vpop.eup %4518  ;;  %v3797_v30 = vadd.f32 %v3796_v49, %v3517_v17  ;;  %v2110_v53 = vmul.f32 0.5, %v7505_v60  ;;  %v2752_v42 = vmul.f32 0.7978846, %v2496_v1  ;;  %v1474_v21 = vmul.f32 %v7571_v54, %v7571_v54 }
 0x2d3   :  { %v3389_v10 = vadd.f32 1.0, %v4519_v40  ;;  %v2368_v26 = vmul.f32 0.044715, %v1856_v35  ;;  %v1729_v27 = vmul.f32 %v1473_v14, %v7562_v8  ;;  %v1857_v15 = vmul.f32 %v1601_v33, %v7566_v31 }
 0x2d4   :  { %v1983_v3 = vmul.f32 0.5, %v7509_v56  ;;  %4528 = vtanh.f32 %v2752_v42  ;;  %v1730_v57 = vmul.f32 %v1474_v21, %v7571_v54  ;;  %v7592_v60 = vadd.f32 %v7046_v59, %v5264_v51 }
 0x2d5   :  { %v4521_v49 = vpop.eup %4520  ;;  %v3645_v28 = vmul.f32 %v3389_v10, %v2109_v34  ;;  %v2624_v58 = vadd.f32 %v2368_v26, %v7555_v37  ;;  %v2241_v6 = vmul.f32 0.044715, %v1729_v27  ;;  %v2369_v55 = vmul.f32 0.044715, %v1857_v15  ;;  %v7601_v27 = vpop.f32.mrb[118].mxu0 }
 0x2d6   :  { %v4523_v17 = vpop.eup %4522  ;;  %v3262_v1 = vadd.f32 1.0, %v4521_v49  ;;  %v2111_v35 = vmul.f32 0.5, %v7515_v39  ;;  %v2242_v14 = vmul.f32 0.044715, %v1730_v57  ;;  %v1602_v56 = vmul.f32 %v7592_v60, %v7592_v60  ;;  %8426 = vst [vmem:[#allocation15_spill] sm:$0xff] %v7601_v27  ;;  %v7603_v15 = vpop.f32.mrb[118].mxu1 }
 0x2d7   :  { %v4525_v33 = vpop.eup %4524  ;;  %v3961_v40 = vadd.f32 %v3960_v61, %v3645_v28  ;;  %v3390_v42 = vadd.f32 1.0, %v4523_v17  ;;  %v2880_v21 = vmul.f32 0.7978846, %v2624_v58  ;;  %v2497_v59 = vadd.f32 %v2241_v6, %v7562_v8  ;;  %8427 = vst [vmem:[#allocation33_spill] sm:$0xff] %v7603_v15 }
 0x2d8   :  { %v3518_v11 = vmul.f32 %v3262_v1, %v1982_v5  ;;  %v3263_v34 = vadd.f32 1.0, %v4525_v33  ;;  %v2625_v10 = vadd.f32 %v2369_v55, %v7566_v31  ;;  %v2498_v26 = vadd.f32 %v2242_v14, %v7571_v54  ;;  %v7606_v5 = vpop.f32.mrb[119].mxu0  ;;  %v7608_v33 = vpop.f32.mrb[119].mxu1 }
 0x2d9   :  { %v3646_v39 = vmul.f32 %v3390_v42, %v2110_v53  ;;  %4530 = vtanh.f32 %v2880_v21  ;;  %v2753_v57 = vmul.f32 0.7978846, %v2497_v59  ;;  %v1858_v49 = vmul.f32 %v1602_v56, %v7592_v60  ;;  %8428 = vst [vmem:[#allocation34_spill] sm:$0xff] %v7606_v5  ;;  %8429 = vst [vmem:[#allocation16_spill] sm:$0xff] %v7608_v33  ;;  %v8430_v53 = vld [vmem:[#allocation20_spill] sm:$0xff] }
 0x2da   :  { %v4527_v61 = vpop.eup %4526  ;;  %v3729_v28 = vadd.f32 %v3728_v20, %v3518_v11  ;;  %v3519_v58 = vmul.f32 %v3263_v34, %v1983_v3  ;;  %v2881_v17 = vmul.f32 0.7978846, %v2625_v10  ;;  %v2754_v6 = vmul.f32 0.7978846, %v2498_v26  ;;  %v8431_v20 = vld [vmem:[#allocation21_spill] sm:$0xff] }
 0x2db   :  { %v3893_v1 = vadd.f32 %v3892_v22, %v3646_v39  ;;  %v3391_v55 = vadd.f32 1.0, %v4527_v61  ;;  %4532 = vtanh.f32 %v2753_v57  ;;  %v2370_v14 = vmul.f32 0.044715, %v1858_v49 }
 0x2dc   :  { %v7610_v27 = vadd.f32 %v3797_v30, %v3519_v58  ;;  %4534 = vtanh.f32 %v2881_v17  ;;  %v7614_v42 = vadd.f32 %v8430_v53, %v5268_v52  ;;  %v7618_v11 = vadd.f32 %v8431_v20, %v5268_v52 }
 0x2dd   :  { %v3647_v3 = vmul.f32 %v3391_v55, %v2111_v35  ;;  %4536 = vtanh.f32 %v2754_v6  ;;  %v2626_v22 = vadd.f32 %v2370_v14, %v7592_v60  ;;  %v7623_v56 = vadd.f32 %v7099_v44, %v5264_v51 }
 0x2de   :  { %v4529_v21 = vpop.eup %4528  ;;  %v1984_v30 = vmul.f32 0.5, %v7541_v19  ;;  %v2112_v59 = vmul.f32 0.5, %v7555_v37  ;;  %v1475_v34 = vmul.f32 %v7614_v42, %v7614_v42  ;;  %v1603_v10 = vmul.f32 %v7618_v11, %v7618_v11 }
 0x2df   :  { %v3962_v26 = vadd.f32 %v3961_v40, %v3647_v3  ;;  %v3264_v35 = vadd.f32 1.0, %v4529_v21  ;;  %v2882_v39 = vmul.f32 0.7978846, %v2626_v22  ;;  %v1476_v57 = vmul.f32 %v7623_v56, %v7623_v56  ;;  %v8432_v40 = vld [vmem:[#allocation22_spill] sm:$0xff]  ;;  %v7651_v21 = vpop.f32.mrb[120].mxu0 }
 0x2e0   :  { %v1985_v44 = vmul.f32 0.5, %v7562_v8  ;;  %v1731_v49 = vmul.f32 %v1475_v34, %v7614_v42  ;;  %v1859_v19 = vmul.f32 %v1603_v10, %v7618_v11  ;;  %v7638_v37 = vadd.f32 %v7101_v45, %v5264_v51  ;;  %8433 = vst [vmem:[#allocation17_spill] sm:$0xff] %v7651_v21 }
 0x2e1   :  { %v3520_v61 = vmul.f32 %v3264_v35, %v1984_v30  ;;  %4538 = vtanh.f32 %v2882_v39  ;;  %v1732_v58 = vmul.f32 %v1476_v57, %v7623_v56  ;;  %v7643_v17 = vadd.f32 %v8432_v40, %v5268_v52  ;;  %v7653_v30 = vpop.f32.mrb[120].mxu1  ;;  %v8435_v57 = vld [vmem:[#allocation23_spill] sm:$0xff] }
 0x2e2   :  { %v2113_v6 = vmul.f32 0.5, %v7566_v31  ;;  %v2243_v55 = vmul.f32 0.044715, %v1731_v49  ;;  %v2371_v8 = vmul.f32 0.044715, %v1859_v19  ;;  %v1604_v14 = vmul.f32 %v7638_v37, %v7638_v37  ;;  %8434 = vst [vmem:[#allocation18_spill] sm:$0xff] %v7653_v30 }
 0x2e3   :  { %v4531_v53 = vpop.eup %4530  ;;  %v3730_v20 = vadd.f32 %v3729_v28, %v3520_v61  ;;  %v1986_v45 = vmul.f32 0.5, %v7571_v54  ;;  %v2244_v3 = vmul.f32 0.044715, %v1732_v58  ;;  %v1477_v22 = vmul.f32 %v7643_v17, %v7643_v17  ;;  %v8436_v19 = vld [vmem:[#allocation24_spill] sm:$0xff]  ;;  %v7668_v58 = vpop.f32.mrb[121].mxu0 }
 0x2e4   :  { %v3392_v34 = vadd.f32 1.0, %v4531_v53  ;;  %v2499_v31 = vadd.f32 %v2243_v55, %v7614_v42  ;;  %v2627_v10 = vadd.f32 %v2371_v8, %v7618_v11  ;;  %v1860_v35 = vmul.f32 %v1604_v14, %v7638_v37 }
 0x2e5   :  { %v4533_v39 = vpop.eup %4532  ;;  %v2500_v28 = vadd.f32 %v2244_v3, %v7623_v56  ;;  %v1733_v54 = vmul.f32 %v1477_v22, %v7643_v17  ;;  %v7662_v49 = vadd.f32 %v8435_v57, %v5268_v52  ;;  %v7666_v61 = vadd.f32 %v8436_v19, %v5264_v51  ;;  %v7672_v57 = vpop.f32.mrb[121].mxu1 }
 0x2e6   :  { %v4535_v40 = vpop.eup %4534  ;;  %v3648_v55 = vmul.f32 %v3392_v34, %v2112_v59  ;;  %v3265_v8 = vadd.f32 1.0, %v4533_v39  ;;  %v2755_v53 = vmul.f32 0.7978846, %v2499_v31  ;;  %v2883_v14 = vmul.f32 0.7978846, %v2627_v10  ;;  %8437 = vst [vmem:[#allocation19_spill] sm:$0xff] %v7672_v57 }
 0x2e7   :  { %v4537_v30 = vpop.eup %4536  ;;  %v3393_v21 = vadd.f32 1.0, %v4535_v40  ;;  %v2756_v3 = vmul.f32 0.7978846, %v2500_v28  ;;  %v2372_v33 = vmul.f32 0.044715, %v1860_v35  ;;  %v1605_v22 = vmul.f32 %v7662_v49, %v7662_v49 }
 0x2e8   :  { %v3894_v5 = vadd.f32 %v3893_v1, %v3648_v55  ;;  %v3521_v15 = vmul.f32 %v3265_v8, %v1985_v44  ;;  %v3266_v19 = vadd.f32 1.0, %v4537_v30  ;;  %4540 = vtanh.f32 %v2755_v53  ;;  %v7679_v44 = vpop.f32.mrb[122].mxu0  ;;  %v7694_v55 = vpop.f32.mrb[122].mxu1  ;;  %v8441_v53 = vld [vmem:[#allocation26_spill] sm:$0xff] }
 0x2e9   :  { %v3649_v29 = vmul.f32 %v3393_v21, %v2113_v6  ;;  %4542 = vtanh.f32 %v2883_v14  ;;  %v2628_v59 = vadd.f32 %v2372_v33, %v7638_v37  ;;  %v2245_v34 = vmul.f32 0.044715, %v1733_v54  ;;  %8438 = vst [vmem:[#allocation20_spill] sm:$0xff] %v7679_v44  ;;  %8440 = vst [vmem:[#allocation21_spill] sm:$0xff] %v7694_v55 }
 0x2ea   :  { %v3799_v31 = vadd.f32 %v7610_v27, %v3521_v15  ;;  %v3522_v10 = vmul.f32 %v3266_v19, %v1986_v45  ;;  %4544 = vtanh.f32 %v2756_v3  ;;  %v1861_v35 = vmul.f32 %v1605_v22, %v7662_v49  ;;  %v8439_v45 = vld [vmem:[#allocation25_spill] sm:$0xff] }
 0x2eb   :  { %v4539_v39 = vpop.eup %4538  ;;  %v3963_v28 = vadd.f32 %v3962_v26, %v3649_v29  ;;  %v2114_v40 = vmul.f32 0.5, %v7592_v60  ;;  %v2884_v57 = vmul.f32 0.7978846, %v2628_v59  ;;  %v2501_v1 = vadd.f32 %v2245_v34, %v7643_v17 }
 0x2ec   :  { %v3731_v6 = vadd.f32 %v3730_v20, %v3522_v10  ;;  %v3394_v21 = vadd.f32 1.0, %v4539_v39  ;;  %v2373_v30 = vmul.f32 0.044715, %v1861_v35  ;;  %v1478_v33 = vmul.f32 %v7666_v61, %v7666_v61  ;;  %v8442_v39 = vld [vmem:[#allocation27_spill] sm:$0xff] }
 0x2ed   :  { %v1987_v27 = vmul.f32 0.5, %v7614_v42  ;;  %4546 = vtanh.f32 %v2884_v57  ;;  %v2757_v15 = vmul.f32 0.7978846, %v2501_v1  ;;  %v7686_v29 = vadd.f32 %v8439_v45, %v5264_v51  ;;  %v7716_v1 = vpop.f32.mrb[123].mxu0 }
 0x2ee   :  { %v3650_v60 = vmul.f32 %v3394_v21, %v2114_v40  ;;  %v2629_v26 = vadd.f32 %v2373_v30, %v7662_v49  ;;  %v1734_v54 = vmul.f32 %v1478_v33, %v7666_v61  ;;  %v7692_v20 = vadd.f32 %v7165_v12, %v5268_v52  ;;  %8443 = vst [vmem:[#allocation22_spill] sm:$0xff] %v7716_v1  ;;  %v8444_v33 = vld [vmem:[#allocation28_spill] sm:$0xff] }
 0x2ef   :  { %v2115_v8 = vmul.f32 0.5, %v7618_v11  ;;  %4548 = vtanh.f32 %v2757_v15  ;;  %v1606_v42 = vmul.f32 %v7686_v29, %v7686_v29  ;;  %v7701_v14 = vadd.f32 %v8441_v53, %v5268_v52  ;;  %v7725_v53 = vpop.f32.mrb[123].mxu1 }
 0x2f0   :  { %v3895_v3 = vadd.f32 %v3894_v5, %v3650_v60  ;;  %v2885_v22 = vmul.f32 0.7978846, %v2629_v26  ;;  %v2246_v57 = vmul.f32 0.044715, %v1734_v54  ;;  %v1479_v19 = vmul.f32 %v7692_v20, %v7692_v20 }
 0x2f1   :  { %v1988_v12 = vmul.f32 0.5, %v7623_v56  ;;  %v2116_v59 = vmul.f32 0.5, %v7638_v37  ;;  %v1862_v11 = vmul.f32 %v1606_v42, %v7686_v29  ;;  %v1607_v34 = vmul.f32 %v7701_v14, %v7701_v14 }
 0x2f2   :  { %v4541_v10 = vpop.eup %4540  ;;  %4550 = vtanh.f32 %v2885_v22  ;;  %v2502_v35 = vadd.f32 %v2246_v57, %v7666_v61  ;;  %v1735_v5 = vmul.f32 %v1479_v19, %v7692_v20  ;;  %v7714_v40 = vadd.f32 %v8442_v39, %v5264_v51 }
 0x2f3   :  { %v4543_v56 = vpop.eup %4542  ;;  %v3267_v21 = vadd.f32 1.0, %v4541_v10  ;;  %v2374_v37 = vmul.f32 0.044715, %v1862_v11  ;;  %v1863_v30 = vmul.f32 %v1607_v34, %v7701_v14  ;;  %v7721_v15 = vadd.f32 %v8444_v33, %v5264_v51 }
 0x2f4   :  { %v4545_v45 = vpop.eup %4544  ;;  %v3395_v60 = vadd.f32 1.0, %v4543_v56  ;;  %v2758_v26 = vmul.f32 0.7978846, %v2502_v35  ;;  %v2247_v54 = vmul.f32 0.044715, %v1735_v5  ;;  %v1480_v42 = vmul.f32 %v7714_v40, %v7714_v40 }
 0x2f5   :  { %v3523_v22 = vmul.f32 %v3267_v21, %v1987_v27  ;;  %v3268_v57 = vadd.f32 1.0, %v4545_v45  ;;  %v2630_v19 = vadd.f32 %v2374_v37, %v7686_v29  ;;  %v2375_v11 = vmul.f32 0.044715, %v1863_v30  ;;  %v7732_v45 = vpop.f32.mrb[124].mxu0  ;;  %v7734_v37 = vpop.f32.mrb[124].mxu1 }
 0x2f6   :  { %v3651_v10 = vmul.f32 %v3395_v60, %v2115_v8  ;;  %4552 = vtanh.f32 %v2758_v26  ;;  %v2503_v34 = vadd.f32 %v2247_v54, %v7692_v20  ;;  %v1736_v39 = vmul.f32 %v1480_v42, %v7714_v40 }
 0x2f7   :  { %v4547_v33 = vpop.eup %4546  ;;  %v3800_v56 = vadd.f32 %v3799_v31, %v3523_v22  ;;  %v3524_v35 = vmul.f32 %v3268_v57, %v1988_v12  ;;  %v2886_v5 = vmul.f32 0.7978846, %v2630_v19  ;;  %v2631_v1 = vadd.f32 %v2375_v11, %v7701_v14  ;;  %v8445_v22 = vld [vmem:[#allocation29_spill] sm:$0xff] }
 0x2f8   :  { %v3964_v55 = vadd.f32 %v3963_v28, %v3651_v10  ;;  %v3396_v44 = vadd.f32 1.0, %v4547_v33  ;;  %v1989_v27 = vmul.f32 0.5, %v7643_v17  ;;  %v2759_v21 = vmul.f32 0.7978846, %v2503_v34  ;;  %v7738_v28 = vpop.f32.mrb[125].mxu0 }
 0x2f9   :  { %v4549_v8 = vpop.eup %4548  ;;  %v3732_v30 = vadd.f32 %v3731_v6, %v3524_v35  ;;  %4554 = vtanh.f32 %v2886_v5  ;;  %v2887_v60 = vmul.f32 0.7978846, %v2631_v1  ;;  %v2248_v26 = vmul.f32 0.044715, %v1736_v39 }
 0x2fa   :  { %v3652_v54 = vmul.f32 %v3396_v44, %v2116_v59  ;;  %v3269_v31 = vadd.f32 1.0, %v4549_v8  ;;  %4556 = vtanh.f32 %v2759_v21  ;;  %v1608_v12 = vmul.f32 %v7721_v15, %v7721_v15  ;;  %v8446_v59 = vld [vmem:[#allocation30_spill] sm:$0xff] }
 0x2fb   :  { %v2117_v17 = vmul.f32 0.5, %v7662_v49  ;;  %4558 = vtanh.f32 %v2887_v60  ;;  %v2504_v42 = vadd.f32 %v2248_v26, %v7714_v40  ;;  %v7744_v57 = vadd.f32 %v8445_v22, %v5268_v52 }
 0x2fc   :  { %v4551_v6 = vpop.eup %4550  ;;  %v3896_v1 = vadd.f32 %v3895_v3, %v3652_v54  ;;  %v3525_v19 = vmul.f32 %v3269_v31, %v1989_v27  ;;  %v1864_v44 = vmul.f32 %v1608_v12, %v7721_v15  ;;  %v7749_v11 = vadd.f32 %v8446_v59, %v5268_v52  ;;  %v7757_v27 = vpop.f32.mrb[125].mxu1 }
 0x2fd   :  { %v3397_v10 = vadd.f32 1.0, %v4551_v6  ;;  %v1990_v34 = vmul.f32 0.5, %v7666_v61  ;;  %v2760_v49 = vmul.f32 0.7978846, %v2504_v42  ;;  %v1481_v39 = vmul.f32 %v7744_v57, %v7744_v57 }
 0x2fe   :  { %v3801_v33 = vadd.f32 %v3800_v56, %v3525_v19  ;;  %v2118_v35 = vmul.f32 0.5, %v7686_v29  ;;  %v2376_v5 = vmul.f32 0.044715, %v1864_v44  ;;  %v1609_v3 = vmul.f32 %v7749_v11, %v7749_v11 }
 0x2ff   :  { %v3653_v21 = vmul.f32 %v3397_v10, %v2117_v17  ;;  %4560 = vtanh.f32 %v2760_v49  ;;  %v1737_v8 = vmul.f32 %v1481_v39, %v7744_v57  ;;  %v7762_v61 = vadd.f32 %v7233_v23, %v5264_v51 }
 0x300   :  { %v4553_v60 = vpop.eup %4552  ;;  %v1991_v26 = vmul.f32 0.5, %v7692_v20  ;;  %v2632_v56 = vadd.f32 %v2376_v5, %v7721_v15  ;;  %v1865_v29 = vmul.f32 %v1609_v3, %v7749_v11  ;;  %v7769_v54 = vadd.f32 %v7237_v16, %v5264_v51 }
 0x301   :  { %v3965_v31 = vadd.f32 %v3964_v55, %v3653_v21  ;;  %v3270_v12 = vadd.f32 1.0, %v4553_v60  ;;  %v2249_v17 = vmul.f32 0.044715, %v1737_v8  ;;  %v1482_v42 = vmul.f32 %v7762_v61, %v7762_v61  ;;  %v7784_v60 = vpop.f32.mrb[126].mxu0 }
 0x302   :  { %v2119_v23 = vmul.f32 0.5, %v7701_v14  ;;  %v2888_v22 = vmul.f32 0.7978846, %v2632_v56  ;;  %v2377_v6 = vmul.f32 0.044715, %v1865_v29  ;;  %v1610_v20 = vmul.f32 %v7769_v54, %v7769_v54 }
 0x303   :  { %v4555_v19 = vpop.eup %4554  ;;  %v3526_v44 = vmul.f32 %v3270_v12, %v1990_v34  ;;  %v2505_v59 = vadd.f32 %v2249_v17, %v7744_v57  ;;  %v1738_v16 = vmul.f32 %v1482_v42, %v7762_v61  ;;  %v7780_v55 = vadd.f32 %v7244_v4, %v5268_v52  ;;  %v7786_v4 = vpop.f32.mrb[126].mxu1 }
 0x304   :  { %v4557_v10 = vpop.eup %4556  ;;  %v3398_v49 = vadd.f32 1.0, %v4555_v19  ;;  %4562 = vtanh.f32 %v2888_v22  ;;  %v2633_v14 = vadd.f32 %v2377_v6, %v7749_v11  ;;  %v1866_v39 = vmul.f32 %v1610_v20, %v7769_v54  ;;  %v7791_v20 = vpop.f32.mrb[127].mxu0 }
 0x305   :  { %v4559_v5 = vpop.eup %4558  ;;  %v3733_v3 = vadd.f32 %v3732_v30, %v3526_v44  ;;  %v3271_v21 = vadd.f32 1.0, %v4557_v10  ;;  %v2761_v8 = vmul.f32 0.7978846, %v2505_v59  ;;  %v2250_v34 = vmul.f32 0.044715, %v1738_v16  ;;  %8447 = vst [vmem:[#allocation23_spill] sm:$0xff] %v7791_v20 }
 0x306   :  { %v3654_v56 = vmul.f32 %v3398_v49, %v2118_v35  ;;  %v3399_v29 = vadd.f32 1.0, %v4559_v5  ;;  %v2889_v12 = vmul.f32 0.7978846, %v2633_v14  ;;  %v2378_v17 = vmul.f32 0.044715, %v1866_v39  ;;  %v7793_v30 = vpop.f32.mrb[127].mxu1 }
 0x307   :  { %v3527_v42 = vmul.f32 %v3271_v21, %v1991_v26  ;;  %4564 = vtanh.f32 %v2761_v8  ;;  %v2506_v22 = vadd.f32 %v2250_v34, %v7762_v61  ;;  %v1483_v6 = vmul.f32 %v7780_v55, %v7780_v55  ;;  %8448 = vst [vmem:[#allocation24_spill] sm:$0xff] %v7793_v30 }
 0x308   :  { %v3897_v19 = vadd.f32 %v3896_v1, %v3654_v56  ;;  %v3655_v44 = vmul.f32 %v3399_v29, %v2119_v23  ;;  %4566 = vtanh.f32 %v2889_v12  ;;  %v2634_v35 = vadd.f32 %v2378_v17, %v7769_v54  ;;  %v8449_v17 = vld [vmem:[#allocation31_spill] sm:$0xff] }
 0x309   :  { %v4561_v59 = vpop.eup %4560  ;;  %v3802_v16 = vadd.f32 %v3801_v33, %v3527_v42  ;;  %v1992_v10 = vmul.f32 0.5, %v7714_v40  ;;  %v2762_v26 = vmul.f32 0.7978846, %v2506_v22  ;;  %v1739_v49 = vmul.f32 %v1483_v6, %v7780_v55 }
 0x30a   :  { %v3966_v14 = vadd.f32 %v3965_v31, %v3655_v44  ;;  %v3272_v39 = vadd.f32 1.0, %v4561_v59  ;;  %v2890_v5 = vmul.f32 0.7978846, %v2634_v35  ;;  %v7800_v21 = vadd.f32 %v7270_v43, %v5268_v52 }
 0x30b   :  { %4568 = vtanh.f32 %v2762_v26  ;;  %v2251_v1 = vmul.f32 0.044715, %v1739_v49  ;;  %v7804_v23 = vadd.f32 %v7287_v9, %v5264_v51  ;;  %v7808_v33 = vadd.f32 %v7289_v48, %v5264_v51 }
 0x30c   :  { %v3528_v40 = vmul.f32 %v3272_v39, %v1992_v10  ;;  %v2120_v8 = vmul.f32 0.5, %v7721_v15  ;;  %4570 = vtanh.f32 %v2890_v5  ;;  %v1611_v31 = vmul.f32 %v7800_v21, %v7800_v21 }
 0x30d   :  { %v1993_v43 = vmul.f32 0.5, %v7744_v57  ;;  %v2507_v34 = vadd.f32 %v2251_v1, %v7780_v55  ;;  %v1484_v56 = vmul.f32 %v7804_v23, %v7804_v23  ;;  %v1612_v9 = vmul.f32 %v7808_v33, %v7808_v33 }
 0x30e   :  { %v4563_v29 = vpop.eup %4562  ;;  %v3734_v48 = vadd.f32 %v3733_v3, %v3528_v40  ;;  %v2121_v12 = vmul.f32 0.5, %v7749_v11  ;;  %v1867_v15 = vmul.f32 %v1611_v31, %v7800_v21  ;;  %v7823_v42 = vadd.f32 %v8449_v17, %v5268_v52  ;;  %v8450_v11 = vld [vmem:[#allocation7_spill] sm:$0xff] }
 0x30f   :  { %v3400_v22 = vadd.f32 1.0, %v4563_v29  ;;  %v2763_v57 = vmul.f32 0.7978846, %v2507_v34  ;;  %v1740_v6 = vmul.f32 %v1484_v56, %v7804_v23  ;;  %v1868_v44 = vmul.f32 %v1612_v9, %v7808_v33 }
 0x310   :  { %v1994_v35 = vmul.f32 0.5, %v7762_v61  ;;  %v2379_v59 = vmul.f32 0.044715, %v1867_v15  ;;  %v1485_v3 = vmul.f32 %v7823_v42, %v7823_v42  ;;  %v7832_v10 = vadd.f32 %v8450_v11, %v5268_v52 }
 0x311   :  { %v4565_v26 = vpop.eup %4564  ;;  %v3656_v49 = vmul.f32 %v3400_v22, %v2120_v8  ;;  %4572 = vtanh.f32 %v2763_v57  ;;  %v2252_v39 = vmul.f32 0.044715, %v1740_v6  ;;  %v2380_v5 = vmul.f32 0.044715, %v1868_v44 }
 0x312   :  { %v4567_v1 = vpop.eup %4566  ;;  %v3273_v40 = vadd.f32 1.0, %v4565_v26  ;;  %v2635_v31 = vadd.f32 %v2379_v59, %v7800_v21  ;;  %v1741_v34 = vmul.f32 %v1485_v3, %v7823_v42  ;;  %v1613_v61 = vmul.f32 %v7832_v10, %v7832_v10 }
 0x313   :  { %v3898_v56 = vadd.f32 %v3897_v19, %v3656_v49  ;;  %v3401_v9 = vadd.f32 1.0, %v4567_v1  ;;  %v2508_v29 = vadd.f32 %v2252_v39, %v7804_v23  ;;  %v2636_v15 = vadd.f32 %v2380_v5, %v7808_v33 }
 0x314   :  { %v3529_v17 = vmul.f32 %v3273_v40, %v1993_v43  ;;  %v2891_v8 = vmul.f32 0.7978846, %v2635_v31  ;;  %v2253_v22 = vmul.f32 0.044715, %v1741_v34  ;;  %v1869_v57 = vmul.f32 %v1613_v61, %v7832_v10  ;;  %v8451_v40 = vld [vmem:[#allocation32_spill] sm:$0xff]  ;;  %v8453_v61 = vld [vmem:[#allocation9_spill] sm:$0xff] }
 0x315   :  { %v4569_v6 = vpop.eup %4568  ;;  %v3657_v44 = vmul.f32 %v3401_v9, %v2121_v12  ;;  %v2122_v59 = vmul.f32 0.5, %v7769_v54  ;;  %v2764_v11 = vmul.f32 0.7978846, %v2508_v29  ;;  %v2892_v3 = vmul.f32 0.7978846, %v2636_v15 }
 0x316   :  { %v4571_v26 = vpop.eup %4570  ;;  %v3803_v30 = vadd.f32 %v3802_v16, %v3529_v17  ;;  %v3274_v20 = vadd.f32 1.0, %v4569_v6  ;;  %4574 = vtanh.f32 %v2891_v8  ;;  %v2509_v19 = vadd.f32 %v2253_v22, %v7823_v42  ;;  %v8452_v16 = vld [vmem:[#allocation8_spill] sm:$0xff] }
 0x317   :  { %v3967_v49 = vadd.f32 %v3966_v14, %v3657_v44  ;;  %v3402_v39 = vadd.f32 1.0, %v4571_v26  ;;  %4576 = vtanh.f32 %v2764_v11  ;;  %v2381_v43 = vmul.f32 0.044715, %v1869_v57 }
 0x318   :  { %v3530_v5 = vmul.f32 %v3274_v20, %v1994_v35  ;;  %4578 = vtanh.f32 %v2892_v3  ;;  %v2765_v1 = vmul.f32 0.7978846, %v2509_v19  ;;  %v7845_v12 = vadd.f32 %v8451_v40, %v5264_v51 }
 0x319   :  { %v3658_v54 = vmul.f32 %v3402_v39, %v2122_v59  ;;  %v2637_v31 = vadd.f32 %v2381_v43, %v7832_v10  ;;  %v7850_v34 = vadd.f32 %v8452_v16, %v5264_v51  ;;  %v7854_v14 = vadd.f32 %v8453_v61, %v5268_v52  ;;  %v8454_v59 = vld [vmem:[#allocation10_spill] sm:$0xff] }
 0x31a   :  { %v3735_v9 = vadd.f32 %v3734_v48, %v3530_v5  ;;  %v1995_v20 = vmul.f32 0.5, %v7780_v55  ;;  %4580 = vtanh.f32 %v2765_v1  ;;  %v1486_v35 = vmul.f32 %v7845_v12, %v7845_v12 }
 0x31b   :  { %v4573_v29 = vpop.eup %4572  ;;  %v3899_v15 = vadd.f32 %v3898_v56, %v3658_v54  ;;  %v2123_v17 = vmul.f32 0.5, %v7800_v21  ;;  %v2893_v8 = vmul.f32 0.7978846, %v2637_v31  ;;  %v1614_v22 = vmul.f32 %v7850_v34, %v7850_v34 }
 0x31c   :  { %v3275_v57 = vadd.f32 1.0, %v4573_v29  ;;  %v1996_v6 = vmul.f32 0.5, %v7804_v23  ;;  %v1742_v44 = vmul.f32 %v1486_v35, %v7845_v12  ;;  %v1487_v55 = vmul.f32 %v7854_v14, %v7854_v14 }
 0x31d   :  { %4582 = vtanh.f32 %v2893_v8  ;;  %v1870_v48 = vmul.f32 %v1614_v22, %v7850_v34  ;;  %v7869_v56 = vadd.f32 %v8454_v59, %v5268_v52  ;;  %v7873_v21 = vadd.f32 %v7372_v46, %v5264_v51 }
 0x31e   :  { %v3531_v11 = vmul.f32 %v3275_v57, %v1995_v20  ;;  %v2254_v3 = vmul.f32 0.044715, %v1742_v44  ;;  %v1743_v23 = vmul.f32 %v1487_v55, %v7854_v14  ;;  %v7878_v26 = vadd.f32 %v7374_v0, %v5264_v51 }
 0x31f   :  { %v2124_v19 = vmul.f32 0.5, %v7808_v33  ;;  %v2382_v39 = vmul.f32 0.044715, %v1870_v48  ;;  %v1615_v43 = vmul.f32 %v7869_v56, %v7869_v56  ;;  %v1488_v5 = vmul.f32 %v7873_v21, %v7873_v21 }
 0x320   :  { %v4575_v1 = vpop.eup %4574  ;;  %v3804_v46 = vadd.f32 %v3803_v30, %v3531_v11  ;;  %v1997_v40 = vmul.f32 0.5, %v7823_v42  ;;  %v2510_v54 = vadd.f32 %v2254_v3, %v7845_v12  ;;  %v2255_v31 = vmul.f32 0.044715, %v1743_v23 }
 0x321   :  { %v4577_v16 = vpop.eup %4576  ;;  %v3403_v61 = vadd.f32 1.0, %v4575_v1  ;;  %v2638_v0 = vadd.f32 %v2382_v39, %v7850_v34  ;;  %v1871_v33 = vmul.f32 %v1615_v43, %v7869_v56  ;;  %v1744_v20 = vmul.f32 %v1488_v5, %v7873_v21 }
 0x322   :  { %v4579_v35 = vpop.eup %4578  ;;  %v3276_v29 = vadd.f32 1.0, %v4577_v16  ;;  %v2766_v8 = vmul.f32 0.7978846, %v2510_v54  ;;  %v2511_v22 = vadd.f32 %v2255_v31, %v7854_v14  ;;  %v1616_v30 = vmul.f32 %v7878_v26, %v7878_v26 }
 0x323   :  { %v3659_v42 = vmul.f32 %v3403_v61, %v2123_v17  ;;  %v3404_v57 = vadd.f32 1.0, %v4579_v35  ;;  %v2894_v44 = vmul.f32 0.7978846, %v2638_v0  ;;  %v2383_v55 = vmul.f32 0.044715, %v1871_v33 }
 0x324   :  { %v4581_v48 = vpop.eup %4580  ;;  %v3532_v59 = vmul.f32 %v3276_v29, %v1996_v6  ;;  %4584 = vtanh.f32 %v2766_v8  ;;  %v2767_v11 = vmul.f32 0.7978846, %v2511_v22  ;;  %v2256_v3 = vmul.f32 0.044715, %v1744_v20 }
 0x325   :  { %v3968_v23 = vadd.f32 %v3967_v49, %v3659_v42  ;;  %v3660_v39 = vmul.f32 %v3404_v57, %v2124_v19  ;;  %v3277_v43 = vadd.f32 1.0, %v4581_v48  ;;  %4586 = vtanh.f32 %v2894_v44 }
 0x326   :  { %v3736_v5 = vadd.f32 %v3735_v9, %v3532_v59  ;;  %4588 = vtanh.f32 %v2767_v11  ;;  %v2639_v1 = vadd.f32 %v2383_v55, %v7869_v56  ;;  %v2512_v54 = vadd.f32 %v2256_v3, %v7873_v21 }
 0x327   :  { %v4583_v31 = vpop.eup %4582  ;;  %v3900_v17 = vadd.f32 %v3899_v15, %v3660_v39  ;;  %v3533_v16 = vmul.f32 %v3277_v43, %v1997_v40  ;;  %v2125_v61 = vmul.f32 0.5, %v7832_v10  ;;  %v1872_v6 = vmul.f32 %v1616_v30, %v7878_v26 }
 0x328   :  { %v3405_v0 = vadd.f32 1.0, %v4583_v31  ;;  %v2895_v33 = vmul.f32 0.7978846, %v2639_v1  ;;  %v2768_v20 = vmul.f32 0.7978846, %v2512_v54  ;;  %v7899_v49 = vadd.f32 %v7401_v47, %v5268_v52 }
 0x329   :  { %v3805_v9 = vadd.f32 %v3804_v46, %v3533_v16  ;;  %v2384_v19 = vmul.f32 0.044715, %v1872_v6  ;;  %v7903_v35 = vadd.f32 %v7406_v36, %v5268_v52  ;;  %v7907_v15 = vadd.f32 %v7417_v2, %v5264_v51 }
 0x32a   :  { %v3661_v10 = vmul.f32 %v3405_v0, %v2125_v61  ;;  %v1998_v40 = vmul.f32 0.5, %v7845_v12  ;;  %4590 = vtanh.f32 %v2895_v33  ;;  %v1489_v29 = vmul.f32 %v7899_v49, %v7899_v49 }
 0x32b   :  { %v2126_v47 = vmul.f32 0.5, %v7850_v34  ;;  %4592 = vtanh.f32 %v2768_v20  ;;  %v2640_v46 = vadd.f32 %v2384_v19, %v7878_v26  ;;  %v1617_v36 = vmul.f32 %v7903_v35, %v7903_v35 }
 0x32c   :  { %v3969_v8 = vadd.f32 %v3968_v23, %v3661_v10  ;;  %v1999_v22 = vmul.f32 0.5, %v7854_v14  ;;  %v1745_v2 = vmul.f32 %v1489_v29, %v7899_v49  ;;  %v1490_v12 = vmul.f32 %v7907_v15, %v7907_v15 }
 0x32d   :  { %v2127_v30 = vmul.f32 0.5, %v7869_v56  ;;  %v2896_v42 = vmul.f32 0.7978846, %v2640_v46  ;;  %v1873_v57 = vmul.f32 %v1617_v36, %v7903_v35  ;;  %v7924_v34 = vadd.f32 %v7419_v7, %v5264_v51 }
 0x32e   :  { %v4585_v44 = vpop.eup %4584  ;;  %v2257_v55 = vmul.f32 0.044715, %v1745_v2  ;;  %v1746_v48 = vmul.f32 %v1490_v12, %v7907_v15  ;;  %v7929_v14 = vadd.f32 %v7432_v62, %v5268_v52  ;;  %v7933_v59 = vadd.f32 %v7455_v24, %v5268_v52 }
 0x32f   :  { %v4587_v56 = vpop.eup %4586  ;;  %v3278_v11 = vadd.f32 1.0, %v4585_v44  ;;  %4594 = vtanh.f32 %v2896_v42  ;;  %v2385_v3 = vmul.f32 0.044715, %v1873_v57  ;;  %v1618_v7 = vmul.f32 %v7924_v34, %v7924_v34 }
 0x330   :  { %v4589_v23 = vpop.eup %4588  ;;  %v3406_v39 = vadd.f32 1.0, %v4587_v56  ;;  %v2513_v43 = vadd.f32 %v2257_v55, %v7899_v49  ;;  %v2258_v1 = vmul.f32 0.044715, %v1746_v48  ;;  %v7940_v62 = vadd.f32 %v7471_v41, %v5264_v51 }
 0x331   :  { %v3534_v54 = vmul.f32 %v3278_v11, %v1998_v40  ;;  %v3279_v31 = vadd.f32 1.0, %v4589_v23  ;;  %v2641_v24 = vadd.f32 %v2385_v3, %v7903_v35  ;;  %v1874_v16 = vmul.f32 %v1618_v7, %v7924_v34 }
 0x332   :  { %v3662_v61 = vmul.f32 %v3406_v39, %v2126_v47  ;;  %v2769_v6 = vmul.f32 0.7978846, %v2513_v43  ;;  %v2514_v0 = vadd.f32 %v2258_v1, %v7907_v15  ;;  %v1491_v33 = vmul.f32 %v7929_v14, %v7929_v14 }
 0x333   :  { %v3737_v20 = vadd.f32 %v3736_v5, %v3534_v54  ;;  %v3535_v19 = vmul.f32 %v3279_v31, %v1999_v22  ;;  %v2897_v10 = vmul.f32 0.7978846, %v2641_v24  ;;  %v2386_v29 = vmul.f32 0.044715, %v1874_v16 }
 0x334   :  { %v4591_v46 = vpop.eup %4590  ;;  %v3901_v41 = vadd.f32 %v3900_v17, %v3662_v61  ;;  %4596 = vtanh.f32 %v2769_v6  ;;  %v2770_v40 = vmul.f32 0.7978846, %v2514_v0  ;;  %v1747_v36 = vmul.f32 %v1491_v33, %v7929_v14 }
 0x335   :  { %v4593_v2 = vpop.eup %4592  ;;  %v3806_v12 = vadd.f32 %v3805_v9, %v3535_v19  ;;  %v3407_v42 = vadd.f32 1.0, %v4591_v46  ;;  %4598 = vtanh.f32 %v2897_v10  ;;  %v2642_v47 = vadd.f32 %v2386_v29, %v7924_v34 }
 0x336   :  { %v2000_v57 = vmul.f32 0.5, %v7873_v21  ;;  %v3280_v44 = vadd.f32 1.0, %v4593_v2  ;;  %4600 = vtanh.f32 %v2770_v40  ;;  %v2259_v5 = vmul.f32 0.044715, %v1747_v36 }
 0x337   :  { %v3663_v22 = vmul.f32 %v3407_v42, %v2127_v30  ;;  %v2128_v55 = vmul.f32 0.5, %v7878_v26  ;;  %v2898_v48 = vmul.f32 0.7978846, %v2642_v47  ;;  %v1619_v17 = vmul.f32 %v7933_v59, %v7933_v59 }
 0x338   :  { %v3536_v56 = vmul.f32 %v3280_v44, %v2000_v57  ;;  %v2001_v11 = vmul.f32 0.5, %v7899_v49  ;;  %v2515_v9 = vadd.f32 %v2259_v5, %v7929_v14  ;;  %v1492_v3 = vmul.f32 %v7940_v62, %v7940_v62 }
 0x339   :  { %v4595_v7 = vpop.eup %4594  ;;  %v3970_v21 = vadd.f32 %v3969_v8, %v3663_v22  ;;  %4602 = vtanh.f32 %v2898_v48  ;;  %v1875_v23 = vmul.f32 %v1619_v17, %v7933_v59  ;;  %v7960_v26 = vadd.f32 %v7473_v50, %v5264_v51  ;;  %v8455_v8 = vld [vmem:[#allocation11_spill] sm:$0xff] }
 0x33a   :  { %v3738_v30 = vadd.f32 %v3737_v20, %v3536_v56  ;;  %v3408_v39 = vadd.f32 1.0, %v4595_v7  ;;  %v2771_v43 = vmul.f32 0.7978846, %v2515_v9  ;;  %v1748_v1 = vmul.f32 %v1492_v3, %v7940_v62 }
 0x33b   :  { %v2129_v49 = vmul.f32 0.5, %v7903_v35  ;;  %v2387_v54 = vmul.f32 0.044715, %v1875_v23  ;;  %v1620_v31 = vmul.f32 %v7960_v26, %v7960_v26  ;;  %v7968_v24 = vadd.f32 %v8455_v8, %v5268_v52 }
 0x33c   :  { %v3664_v16 = vmul.f32 %v3408_v39, %v2128_v55  ;;  %4604 = vtanh.f32 %v2771_v43  ;;  %v2260_v61 = vmul.f32 0.044715, %v1748_v1  ;;  %v7972_v50 = vadd.f32 %v7488_v18, %v5268_v52 }
 0x33d   :  { %v2002_v6 = vmul.f32 0.5, %v7907_v15  ;;  %v2643_v0 = vadd.f32 %v2387_v54, %v7933_v59  ;;  %v1876_v35 = vmul.f32 %v1620_v31, %v7960_v26  ;;  %v1493_v33 = vmul.f32 %v7968_v24, %v7968_v24 }
 0x33e   :  { %v4597_v20 = vpop.eup %4596  ;;  %v3902_v19 = vadd.f32 %v3901_v41, %v3664_v16  ;;  %v2130_v10 = vmul.f32 0.5, %v7924_v34  ;;  %v2516_v29 = vadd.f32 %v2260_v61, %v7940_v62  ;;  %v1621_v46 = vmul.f32 %v7972_v50, %v7972_v50 }
 0x33f   :  { %v4599_v18 = vpop.eup %4598  ;;  %v3281_v40 = vadd.f32 1.0, %v4597_v20  ;;  %v2899_v36 = vmul.f32 0.7978846, %v2643_v0  ;;  %v2388_v15 = vmul.f32 0.044715, %v1876_v35  ;;  %v1749_v2 = vmul.f32 %v1493_v33, %v7968_v24 }
 0x340   :  { %v4601_v42 = vpop.eup %4600  ;;  %v3409_v47 = vadd.f32 1.0, %v4599_v18  ;;  %v2772_v57 = vmul.f32 0.7978846, %v2516_v29  ;;  %v1877_v44 = vmul.f32 %v1621_v46, %v7972_v50  ;;  %v7987_v41 = vadd.f32 %v7499_v25, %v5264_v51 }
 0x341   :  { %v3537_v34 = vmul.f32 %v3281_v40, %v2001_v11  ;;  %v3282_v5 = vadd.f32 1.0, %v4601_v42  ;;  %4606 = vtanh.f32 %v2899_v36  ;;  %v2644_v22 = vadd.f32 %v2388_v15, %v7960_v26 }
 0x342   :  { %v3665_v55 = vmul.f32 %v3409_v47, %v2129_v49  ;;  %4608 = vtanh.f32 %v2772_v57  ;;  %v2261_v48 = vmul.f32 0.044715, %v1749_v2  ;;  %v2389_v17 = vmul.f32 0.044715, %v1877_v44 }
 0x343   :  { %v4603_v56 = vpop.eup %4602  ;;  %v3807_v9 = vadd.f32 %v3806_v12, %v3537_v34  ;;  %v3538_v3 = vmul.f32 %v3282_v5, %v2002_v6  ;;  %v2900_v7 = vmul.f32 0.7978846, %v2644_v22  ;;  %v1494_v23 = vmul.f32 %v7987_v41, %v7987_v41 }
 0x344   :  { %v3971_v39 = vadd.f32 %v3970_v21, %v3665_v55  ;;  %v3410_v43 = vadd.f32 1.0, %v4603_v56  ;;  %v2517_v25 = vadd.f32 %v2261_v48, %v7968_v24  ;;  %v2645_v11 = vadd.f32 %v2389_v17, %v7972_v50 }
 0x345   :  { %v3739_v1 = vadd.f32 %v3738_v30, %v3538_v3  ;;  %v2003_v54 = vmul.f32 0.5, %v7929_v14  ;;  %4610 = vtanh.f32 %v2900_v7  ;;  %v1750_v49 = vmul.f32 %v1494_v23, %v7987_v41  ;;  %v8456_v30 = vld [vmem:[#allocation12_spill] sm:$0xff] }
 0x346   :  { %v4605_v31 = vpop.eup %4604  ;;  %v3666_v8 = vmul.f32 %v3410_v43, %v2130_v10  ;;  %v2773_v12 = vmul.f32 0.7978846, %v2517_v25  ;;  %v2901_v16 = vmul.f32 0.7978846, %v2645_v11  ;;  %v7998_v61 = vadd.f32 %v7520_v63, %v5264_v51 }
 0x347   :  { %v3283_v21 = vadd.f32 1.0, %v4605_v31  ;;  %v2262_v6 = vmul.f32 0.044715, %v1750_v49  ;;  %v8002_v0 = vadd.f32 %v7532_v32, %v5268_v52  ;;  %v8006_v14 = vadd.f32 %v8456_v30, %v5268_v52 }
 0x348   :  { %v3903_v35 = vadd.f32 %v3902_v19, %v3666_v8  ;;  %v2131_v33 = vmul.f32 0.5, %v7933_v59  ;;  %4612 = vtanh.f32 %v2773_v12  ;;  %v1622_v20 = vmul.f32 %v7998_v61, %v7998_v61 }
 0x349   :  { %v3539_v10 = vmul.f32 %v3283_v21, %v2003_v54  ;;  %4614 = vtanh.f32 %v2901_v16  ;;  %v2518_v63 = vadd.f32 %v2262_v6, %v7987_v41  ;;  %v1495_v29 = vmul.f32 %v8002_v0, %v8002_v0 }
 0x34a   :  { %v2004_v32 = vmul.f32 0.5, %v7940_v62  ;;  %v2132_v46 = vmul.f32 0.5, %v7960_v26  ;;  %v1878_v18 = vmul.f32 %v1622_v20, %v7998_v61  ;;  %v1623_v59 = vmul.f32 %v8006_v14, %v8006_v14 }
 0x34b   :  { %v4607_v19 = vpop.eup %4606  ;;  %v3808_v40 = vadd.f32 %v3807_v9, %v3539_v10  ;;  %v2774_v36 = vmul.f32 0.7978846, %v2518_v63  ;;  %v1751_v15 = vmul.f32 %v1495_v29, %v8002_v0  ;;  %v8022_v2 = vadd.f32 %v7546_v38, %v5264_v51 }
 0x34c   :  { %v4609_v42 = vpop.eup %4608  ;;  %v3411_v47 = vadd.f32 1.0, %v4607_v19  ;;  %v2390_v57 = vmul.f32 0.044715, %v1878_v18  ;;  %v1879_v62 = vmul.f32 %v1623_v59, %v8006_v14  ;;  %v8027_v26 = vadd.f32 %v7548_v13, %v5264_v51  ;;  %v8459_v19 = vld [vmem:[#allocation15_spill] sm:$0xff] }
 0x34d   :  { %v3284_v44 = vadd.f32 1.0, %v4609_v42  ;;  %4616 = vtanh.f32 %v2774_v36  ;;  %v2263_v34 = vmul.f32 0.044715, %v1751_v15  ;;  %v1496_v5 = vmul.f32 %v8022_v2, %v8022_v2 }
 0x34e   :  { %v3667_v22 = vmul.f32 %v3411_v47, %v2131_v33  ;;  %v2005_v55 = vmul.f32 0.5, %v7968_v24  ;;  %v2646_v38 = vadd.f32 %v2390_v57, %v7998_v61  ;;  %v2391_v48 = vmul.f32 0.044715, %v1879_v62 }
 0x34f   :  { %v4611_v17 = vpop.eup %4610  ;;  %v3540_v56 = vmul.f32 %v3284_v44, %v2004_v32  ;;  %v2519_v9 = vadd.f32 %v2263_v34, %v8002_v0  ;;  %v1752_v3 = vmul.f32 %v1496_v5, %v8022_v2  ;;  %v1624_v13 = vmul.f32 %v8027_v26, %v8027_v26 }
 0x350   :  { %v3972_v7 = vadd.f32 %v3971_v39, %v3667_v22  ;;  %v3412_v23 = vadd.f32 1.0, %v4611_v17  ;;  %v2902_v43 = vmul.f32 0.7978846, %v2646_v38  ;;  %v2647_v25 = vadd.f32 %v2391_v48, %v8006_v14  ;;  %v8460_v48 = vld [vmem:[#allocation33_spill] sm:$0xff] }
 0x351   :  { %v3740_v11 = vadd.f32 %v3739_v1, %v3540_v56  ;;  %v2775_v54 = vmul.f32 0.7978846, %v2519_v9  ;;  %v2264_v24 = vmul.f32 0.044715, %v1752_v3  ;;  %v1880_v49 = vmul.f32 %v1624_v13, %v8027_v26  ;;  %v8457_v1 = vld [vmem:[#allocation13_spill] sm:$0xff]  ;;  %v8461_v56 = vld [vmem:[#allocation34_spill] sm:$0xff] }
 0x352   :  { %v4613_v31 = vpop.eup %4612  ;;  %v3668_v8 = vmul.f32 %v3412_v23, %v2132_v46  ;;  %v2133_v12 = vmul.f32 0.5, %v7972_v50  ;;  %4618 = vtanh.f32 %v2902_v43  ;;  %v2903_v16 = vmul.f32 0.7978846, %v2647_v25  ;;  %v8458_v50 = vld [vmem:[#allocation14_spill] sm:$0xff] }
 0x353   :  { %v4615_v21 = vpop.eup %4614  ;;  %v3285_v6 = vadd.f32 1.0, %v4613_v31  ;;  %4620 = vtanh.f32 %v2775_v54  ;;  %v2520_v39 = vadd.f32 %v2264_v24, %v8022_v2  ;;  %v2392_v30 = vmul.f32 0.044715, %v1880_v49  ;;  %v8462_v54 = vld [vmem:[#allocation16_spill] sm:$0xff] }
 0x354   :  { %v3904_v33 = vadd.f32 %v3903_v35, %v3668_v8  ;;  %v3413_v20 = vadd.f32 1.0, %v4615_v21  ;;  %4622 = vtanh.f32 %v2903_v16  ;;  %v8043_v10 = vadd.f32 %v8457_v1, %v5268_v52 }
 0x355   :  { %v3541_v63 = vmul.f32 %v3285_v6, %v2005_v55  ;;  %v2776_v29 = vmul.f32 0.7978846, %v2520_v39  ;;  %v2648_v32 = vadd.f32 %v2392_v30, %v8027_v26  ;;  %v8048_v46 = vadd.f32 %v8458_v50, %v5268_v52  ;;  %v8463_v6 = vld [vmem:[#allocation17_spill] sm:$0xff] }
 0x356   :  { %v3669_v18 = vmul.f32 %v3413_v20, %v2133_v12  ;;  %v2006_v59 = vmul.f32 0.5, %v7987_v41  ;;  %v1497_v35 = vmul.f32 %v8043_v10, %v8043_v10  ;;  %v8055_v36 = vadd.f32 %v8459_v19, %v5264_v51 }
 0x357   :  { %v4617_v15 = vpop.eup %4616  ;;  %v3809_v42 = vadd.f32 %v3808_v40, %v3541_v63  ;;  %4624 = vtanh.f32 %v2776_v29  ;;  %v2904_v47 = vmul.f32 0.7978846, %v2648_v32  ;;  %v1625_v57 = vmul.f32 %v8048_v46, %v8048_v46 }
 0x358   :  { %v3973_v62 = vadd.f32 %v3972_v7, %v3669_v18  ;;  %v3286_v44 = vadd.f32 1.0, %v4617_v15  ;;  %v2134_v34 = vmul.f32 0.5, %v7998_v61  ;;  %v1753_v41 = vmul.f32 %v1497_v35, %v8043_v10 }
 0x359   :  { %v2007_v5 = vmul.f32 0.5, %v8002_v0  ;;  %4626 = vtanh.f32 %v2904_v47  ;;  %v1881_v22 = vmul.f32 %v1625_v57, %v8048_v46  ;;  %v1498_v55 = vmul.f32 %v8055_v36, %v8055_v36 }
 0x35a   :  { %v3542_v40 = vmul.f32 %v3286_v44, %v2006_v59  ;;  %v2265_v38 = vmul.f32 0.044715, %v1753_v41  ;;  %v8067_v17 = vadd.f32 %v8460_v48, %v5264_v51  ;;  %v8071_v9 = vadd.f32 %v8461_v56, %v5268_v52 }
 0x35b   :  { %v2135_v61 = vmul.f32 0.5, %v8006_v14  ;;  %v2008_v0 = vmul.f32 0.5, %v8022_v2  ;;  %v2393_v3 = vmul.f32 0.044715, %v1881_v22  ;;  %v1754_v13 = vmul.f32 %v1498_v55, %v8055_v36 }
 0x35c   :  { %v4619_v7 = vpop.eup %4618  ;;  %v3741_v23 = vadd.f32 %v3740_v11, %v3542_v40  ;;  %v2521_v43 = vadd.f32 %v2265_v38, %v8043_v10  ;;  %v1626_v25 = vmul.f32 %v8067_v17, %v8067_v17  ;;  %v8081_v24 = vadd.f32 %v8462_v54, %v5268_v52 }
 0x35d   :  { %v4621_v49 = vpop.eup %4620  ;;  %v3414_v31 = vadd.f32 1.0, %v4619_v7  ;;  %v2649_v14 = vadd.f32 %v2393_v3, %v8048_v46  ;;  %v2266_v8 = vmul.f32 0.044715, %v1754_v13  ;;  %v1499_v2 = vmul.f32 %v8071_v9, %v8071_v9 }
 0x35e   :  { %v4623_v12 = vpop.eup %4622  ;;  %v3287_v16 = vadd.f32 1.0, %v4621_v49  ;;  %v2777_v11 = vmul.f32 0.7978846, %v2521_v43  ;;  %v1882_v21 = vmul.f32 %v1626_v25, %v8067_v17  ;;  %v8089_v39 = vadd.f32 %v8463_v6, %v5264_v51  ;;  %v8465_v49 = vld [vmem:[#allocation19_spill] sm:$0xff] }
 0x35f   :  { %v3670_v30 = vmul.f32 %v3414_v31, %v2134_v34  ;;  %v3415_v20 = vadd.f32 1.0, %v4623_v12  ;;  %v2905_v1 = vmul.f32 0.7978846, %v2649_v14  ;;  %v2522_v63 = vadd.f32 %v2266_v8, %v8055_v36  ;;  %v8466_v8 = vld [vmem:[#allocation20_spill] sm:$0xff] }
 0x360   :  { %v3543_v29 = vmul.f32 %v3287_v16, %v2007_v5  ;;  %4628 = vtanh.f32 %v2777_v11  ;;  %v2394_v32 = vmul.f32 0.044715, %v1882_v21  ;;  %v1755_v50 = vmul.f32 %v1499_v2, %v8071_v9 }
 0x361   :  { %v4625_v18 = vpop.eup %4624  ;;  %v3905_v59 = vadd.f32 %v3904_v33, %v3670_v30  ;;  %v3671_v35 = vmul.f32 %v3415_v20, %v2135_v61  ;;  %4630 = vtanh.f32 %v2905_v1  ;;  %v2778_v19 = vmul.f32 0.7978846, %v2522_v63 }
 0x362   :  { %v3810_v15 = vadd.f32 %v3809_v42, %v3543_v29  ;;  %v3288_v47 = vadd.f32 1.0, %v4625_v18  ;;  %v2650_v57 = vadd.f32 %v2394_v32, %v8067_v17  ;;  %v2267_v44 = vmul.f32 0.044715, %v1755_v50 }
 0x363   :  { %v4627_v34 = vpop.eup %4626  ;;  %v3974_v41 = vadd.f32 %v3973_v62, %v3671_v35  ;;  %v2136_v22 = vmul.f32 0.5, %v8027_v26  ;;  %4632 = vtanh.f32 %v2778_v19  ;;  %v1627_v5 = vmul.f32 %v8081_v24, %v8081_v24  ;;  %v8464_v62 = vld [vmem:[#allocation18_spill] sm:$0xff] }
 0x364   :  { %v3544_v55 = vmul.f32 %v3288_v47, %v2008_v0  ;;  %v3416_v40 = vadd.f32 1.0, %v4627_v34  ;;  %v2906_v38 = vmul.f32 0.7978846, %v2650_v57  ;;  %v2523_v33 = vadd.f32 %v2267_v44, %v8071_v9 }
 0x365   :  { %v2009_v48 = vmul.f32 0.5, %v8043_v10  ;;  %v1883_v42 = vmul.f32 %v1627_v5, %v8081_v24  ;;  %v1500_v56 = vmul.f32 %v8089_v39, %v8089_v39  ;;  %v8104_v61 = vadd.f32 %v8464_v62, %v5264_v51 }
 0x366   :  { %v3742_v26 = vadd.f32 %v3741_v23, %v3544_v55  ;;  %v3672_v3 = vmul.f32 %v3416_v40, %v2136_v22  ;;  %4634 = vtanh.f32 %v2906_v38  ;;  %v2779_v13 = vmul.f32 0.7978846, %v2523_v33 }
 0x367   :  { %v2137_v0 = vmul.f32 0.5, %v8048_v46  ;;  %v2395_v7 = vmul.f32 0.044715, %v1883_v42  ;;  %v1756_v43 = vmul.f32 %v1500_v56, %v8089_v39  ;;  %v1628_v10 = vmul.f32 %v8104_v61, %v8104_v61 }
 0x368   :  { %v3906_v25 = vadd.f32 %v3905_v59, %v3672_v3  ;;  %4636 = vtanh.f32 %v2779_v13  ;;  %v8112_v54 = vadd.f32 %v7668_v58, %v5268_v52  ;;  %v8116_v23 = vadd.f32 %v8465_v49, %v5268_v52 }
 0x369   :  { %v2651_v31 = vadd.f32 %v2395_v7, %v8081_v24  ;;  %v2268_v14 = vmul.f32 0.044715, %v1756_v43  ;;  %v1884_v46 = vmul.f32 %v1628_v10, %v8104_v61  ;;  %v8122_v2 = vadd.f32 %v8466_v8, %v5264_v51  ;;  %v8467_v7 = vld [vmem:[#allocation21_spill] sm:$0xff] }
 0x36a   :  { %v4629_v12 = vpop.eup %4628  ;;  %v2010_v16 = vmul.f32 0.5, %v8055_v36  ;;  %v2138_v11 = vmul.f32 0.5, %v8067_v17  ;;  %v1501_v58 = vmul.f32 %v8112_v54, %v8112_v54  ;;  %v1629_v21 = vmul.f32 %v8116_v23, %v8116_v23 }
 0x36b   :  { %v4631_v6 = vpop.eup %4630  ;;  %v3289_v30 = vadd.f32 1.0, %v4629_v12  ;;  %v2907_v20 = vmul.f32 0.7978846, %v2651_v31  ;;  %v2524_v1 = vadd.f32 %v2268_v14, %v8089_v39  ;;  %v2396_v63 = vmul.f32 0.044715, %v1884_v46  ;;  %v8468_v31 = vld [vmem:[#allocation22_spill] sm:$0xff] }
 0x36c   :  { %v3417_v29 = vadd.f32 1.0, %v4631_v6  ;;  %v1757_v32 = vmul.f32 %v1501_v58, %v8112_v54  ;;  %v1885_v50 = vmul.f32 %v1629_v21, %v8116_v23  ;;  %v1502_v36 = vmul.f32 %v8122_v2, %v8122_v2 }
 0x36d   :  { %v4633_v17 = vpop.eup %4632  ;;  %v3545_v18 = vmul.f32 %v3289_v30, %v2009_v48  ;;  %4638 = vtanh.f32 %v2907_v20  ;;  %v2780_v59 = vmul.f32 0.7978846, %v2524_v1  ;;  %v2652_v35 = vadd.f32 %v2396_v63, %v8104_v61 }
 0x36e   :  { %v3673_v19 = vmul.f32 %v3417_v29, %v2137_v0  ;;  %v3290_v47 = vadd.f32 1.0, %v4633_v17  ;;  %v2269_v57 = vmul.f32 0.044715, %v1757_v32  ;;  %v2397_v44 = vmul.f32 0.044715, %v1885_v50 }
 0x36f   :  { %v3811_v34 = vadd.f32 %v3810_v15, %v3545_v18  ;;  %4640 = vtanh.f32 %v2780_v59  ;;  %v2908_v22 = vmul.f32 0.7978846, %v2652_v35  ;;  %v1758_v5 = vmul.f32 %v1502_v36, %v8122_v2 }
 0x370   :  { %v4635_v55 = vpop.eup %4634  ;;  %v3975_v40 = vadd.f32 %v3974_v41, %v3673_v19  ;;  %v3546_v38 = vmul.f32 %v3290_v47, %v2010_v16  ;;  %v2525_v33 = vadd.f32 %v2269_v57, %v8112_v54  ;;  %v2653_v48 = vadd.f32 %v2397_v44, %v8116_v23 }
 0x371   :  { %v3418_v42 = vadd.f32 1.0, %v4635_v55  ;;  %v2011_v56 = vmul.f32 0.5, %v8071_v9  ;;  %4642 = vtanh.f32 %v2908_v22  ;;  %v2270_v62 = vmul.f32 0.044715, %v1758_v5 }
 0x372   :  { %v4637_v3 = vpop.eup %4636  ;;  %v3743_v13 = vadd.f32 %v3742_v26, %v3546_v38  ;;  %v2781_v0 = vmul.f32 0.7978846, %v2525_v33  ;;  %v2909_v15 = vmul.f32 0.7978846, %v2653_v48  ;;  %v8142_v43 = vadd.f32 %v8467_v7, %v5264_v51 }
 0x373   :  { %v3674_v10 = vmul.f32 %v3418_v42, %v2138_v11  ;;  %v3291_v41 = vadd.f32 1.0, %v4637_v3  ;;  %v2526_v49 = vadd.f32 %v2270_v62, %v8122_v2  ;;  %v8147_v14 = vadd.f32 %v8468_v31, %v5268_v52 }
 0x374   :  { %v2139_v9 = vmul.f32 0.5, %v8081_v24  ;;  %4644 = vtanh.f32 %v2781_v0  ;;  %v1630_v26 = vmul.f32 %v8142_v43, %v8142_v43  ;;  %v8154_v46 = vadd.f32 %v7725_v53, %v5268_v52 }
 0x375   :  { %v3907_v8 = vadd.f32 %v3906_v25, %v3674_v10  ;;  %v3547_v12 = vmul.f32 %v3291_v41, %v2011_v56  ;;  %4646 = vtanh.f32 %v2909_v15  ;;  %v2782_v16 = vmul.f32 0.7978846, %v2526_v49 }
 0x376   :  { %v2012_v11 = vmul.f32 0.5, %v8089_v39  ;;  %v1886_v58 = vmul.f32 %v1630_v26, %v8142_v43  ;;  %v1503_v21 = vmul.f32 %v8147_v14, %v8147_v14  ;;  %v1631_v24 = vmul.f32 %v8154_v46, %v8154_v46 }
 0x377   :  { %v4639_v6 = vpop.eup %4638  ;;  %v3812_v30 = vadd.f32 %v3811_v34, %v3547_v12  ;;  %v2140_v20 = vmul.f32 0.5, %v8104_v61  ;;  %4648 = vtanh.f32 %v2782_v16  ;;  %v8165_v53 = vadd.f32 %v7732_v45, %v5264_v51 }
 0x378   :  { %v3419_v25 = vadd.f32 1.0, %v4639_v6  ;;  %v2398_v1 = vmul.f32 0.044715, %v1886_v58  ;;  %v1759_v39 = vmul.f32 %v1503_v21, %v8147_v14  ;;  %v1887_v63 = vmul.f32 %v1631_v24, %v8154_v46 }
 0x379   :  { %v4641_v29 = vpop.eup %4640  ;;  %v2013_v32 = vmul.f32 0.5, %v8112_v54  ;;  %v1504_v50 = vmul.f32 %v8165_v53, %v8165_v53  ;;  %v8174_v61 = vadd.f32 %v7734_v37, %v5264_v51  ;;  %v8178_v45 = vadd.f32 %v7738_v28, %v5268_v52 }
 0x37a   :  { %v3675_v36 = vmul.f32 %v3419_v25, %v2139_v9  ;;  %v3292_v17 = vadd.f32 1.0, %v4641_v29  ;;  %v2654_v18 = vadd.f32 %v2398_v1, %v8142_v43  ;;  %v2271_v59 = vmul.f32 0.044715, %v1759_v39 }
 0x37b   :  { %v4643_v35 = vpop.eup %4642  ;;  %v2141_v19 = vmul.f32 0.5, %v8116_v23  ;;  %v2399_v54 = vmul.f32 0.044715, %v1887_v63  ;;  %v1760_v47 = vmul.f32 %v1504_v50, %v8165_v53  ;;  %v1632_v57 = vmul.f32 %v8174_v61, %v8174_v61 }
 0x37c   :  { %v3976_v37 = vadd.f32 %v3975_v40, %v3675_v36  ;;  %v3548_v44 = vmul.f32 %v3292_v17, %v2012_v11  ;;  %v3420_v34 = vadd.f32 1.0, %v4643_v35  ;;  %v2910_v22 = vmul.f32 0.7978846, %v2654_v18  ;;  %v8469_v36 = vld [vmem:[#allocation23_spill] sm:$0xff] }
 0x37d   :  { %v2527_v28 = vadd.f32 %v2271_v59, %v8147_v14  ;;  %v2655_v5 = vadd.f32 %v2399_v54, %v8154_v46  ;;  %v2272_v55 = vmul.f32 0.044715, %v1760_v47  ;;  %v1888_v38 = vmul.f32 %v1632_v57, %v8174_v61 }
 0x37e   :  { %v4645_v33 = vpop.eup %4644  ;;  %v3744_v48 = vadd.f32 %v3743_v13, %v3548_v44  ;;  %v3676_v23 = vmul.f32 %v3420_v34, %v2140_v20  ;;  %4650 = vtanh.f32 %v2910_v22  ;;  %v1505_v42 = vmul.f32 %v8178_v45, %v8178_v45 }
 0x37f   :  { %v4647_v56 = vpop.eup %4646  ;;  %v3293_v62 = vadd.f32 1.0, %v4645_v33  ;;  %v2783_v40 = vmul.f32 0.7978846, %v2527_v28  ;;  %v2911_v3 = vmul.f32 0.7978846, %v2655_v5  ;;  %v2528_v0 = vadd.f32 %v2272_v55, %v8165_v53 }
 0x380   :  { %v3908_v15 = vadd.f32 %v3907_v8, %v3676_v23  ;;  %v3421_v7 = vadd.f32 1.0, %v4647_v56  ;;  %v2400_v10 = vmul.f32 0.044715, %v1888_v38  ;;  %v1761_v41 = vmul.f32 %v1505_v42, %v8178_v45 }
 0x381   :  { %v4649_v49 = vpop.eup %4648  ;;  %v3549_v31 = vmul.f32 %v3293_v62, %v2013_v32  ;;  %v2014_v13 = vmul.f32 0.5, %v8122_v2  ;;  %4652 = vtanh.f32 %v2783_v40  ;;  %v2784_v9 = vmul.f32 0.7978846, %v2528_v0 }
 0x382   :  { %v3677_v26 = vmul.f32 %v3421_v7, %v2141_v19  ;;  %v3294_v12 = vadd.f32 1.0, %v4649_v49  ;;  %4654 = vtanh.f32 %v2911_v3  ;;  %v2656_v16 = vadd.f32 %v2400_v10, %v8174_v61 }
 0x383   :  { %v3813_v11 = vadd.f32 %v3812_v30, %v3549_v31  ;;  %4656 = vtanh.f32 %v2784_v9  ;;  %v2273_v58 = vmul.f32 0.044715, %v1761_v41  ;;  %v8196_v8 = vadd.f32 %v7757_v27, %v5268_v52 }
 0x384   :  { %v3977_v21 = vadd.f32 %v3976_v37, %v3677_v26  ;;  %v3550_v24 = vmul.f32 %v3294_v12, %v2014_v13  ;;  %v2912_v6 = vmul.f32 0.7978846, %v2656_v16  ;;  %v8200_v2 = vadd.f32 %v7784_v60, %v5264_v51 }
 0x385   :  { %v2529_v20 = vadd.f32 %v2273_v58, %v8178_v45  ;;  %v1633_v25 = vmul.f32 %v8196_v8, %v8196_v8  ;;  %v8207_v30 = vadd.f32 %v7786_v4, %v5264_v51  ;;  %v2142_v32 = vmul.f32 0.5, %v8142_v43 }
 0x386   :  { %v3745_v1 = vadd.f32 %v3744_v48, %v3550_v24  ;;  %4658 = vtanh.f32 %v2912_v6  ;;  %v1506_v27 = vmul.f32 %v8200_v2, %v8200_v2  ;;  %v8218_v51 = vadd.f32 %v8469_v36, %v5268_v52 }
 0x387   :  { %v2785_v39 = vmul.f32 0.7978846, %v2529_v20  ;;  %v1889_v63 = vmul.f32 %v1633_v25, %v8196_v8  ;;  %v1634_v60 = vmul.f32 %v8207_v30, %v8207_v30  ;;  %v2015_v59 = vmul.f32 0.5, %v8147_v14  ;;  %v8470_v14 = vld [vmem:[#allocation24_spill] sm:$0xff] }
 0x388   :  { %v4651_v29 = vpop.eup %4650  ;;  %v1762_v50 = vmul.f32 %v1506_v27, %v8200_v2  ;;  %v2143_v35 = vmul.f32 0.5, %v8154_v46  ;;  %v1507_v54 = vmul.f32 %v8218_v51, %v8218_v51  ;;  %v2016_v57 = vmul.f32 0.5, %v8165_v53 }
 0x389   :  { %v3422_v4 = vadd.f32 1.0, %v4651_v29  ;;  %4660 = vtanh.f32 %v2785_v39  ;;  %v2401_v17 = vmul.f32 0.044715, %v1889_v63  ;;  %v1890_v18 = vmul.f32 %v1634_v60, %v8207_v30 }
 0x38a   :  { %v2274_v19 = vmul.f32 0.044715, %v1762_v50  ;;  %v1763_v5 = vmul.f32 %v1507_v54, %v8218_v51  ;;  %v8231_v46 = vadd.f32 %v8470_v14, %v5268_v52  ;;  %v2144_v3 = vmul.f32 0.5, %v8174_v61 }
 0x38b   :  { %v4653_v43 = vpop.eup %4652  ;;  %v3678_v47 = vmul.f32 %v3422_v4, %v2142_v32  ;;  %v2657_v37 = vadd.f32 %v2401_v17, %v8196_v8  ;;  %v2402_v44 = vmul.f32 0.044715, %v1890_v18  ;;  %v2017_v16 = vmul.f32 0.5, %v8178_v45 }
 0x38c   :  { %v4655_v34 = vpop.eup %4654  ;;  %v3295_v22 = vadd.f32 1.0, %v4653_v43  ;;  %v2530_v28 = vadd.f32 %v2274_v19, %v8200_v2  ;;  %v2275_v62 = vmul.f32 0.044715, %v1763_v5  ;;  %v1635_v31 = vmul.f32 %v8231_v46, %v8231_v46 }
 0x38d   :  { %v4657_v55 = vpop.eup %4656  ;;  %v3909_v38 = vadd.f32 %v3908_v15, %v3678_v47  ;;  %v3423_v33 = vadd.f32 1.0, %v4655_v34  ;;  %v2913_v48 = vmul.f32 0.7978846, %v2657_v37  ;;  %v2658_v23 = vadd.f32 %v2402_v44, %v8207_v30 }
 0x38e   :  { %v3551_v53 = vmul.f32 %v3295_v22, %v2015_v59  ;;  %v3296_v42 = vadd.f32 1.0, %v4657_v55  ;;  %v2786_v56 = vmul.f32 0.7978846, %v2530_v28  ;;  %v2531_v52 = vadd.f32 %v2275_v62, %v8218_v51 }
 0x38f   :  { %v3679_v40 = vmul.f32 %v3423_v33, %v2143_v35  ;;  %4662 = vtanh.f32 %v2913_v48  ;;  %v2914_v0 = vmul.f32 0.7978846, %v2658_v23  ;;  %v1891_v61 = vmul.f32 %v1635_v31, %v8231_v46 }
 0x390   :  { %v4659_v7 = vpop.eup %4658  ;;  %v3814_v10 = vadd.f32 %v3813_v11, %v3551_v53  ;;  %v3552_v41 = vmul.f32 %v3296_v42, %v2016_v57  ;;  %4664 = vtanh.f32 %v2786_v56  ;;  %v2787_v9 = vmul.f32 0.7978846, %v2531_v52  ;;  %v8471_v52 = vld [vmem:[#allocation6_spill] sm:$0xff] }
 0x391   :  { %v3978_v15 = vadd.f32 %v3977_v21, %v3679_v40  ;;  %v3424_v49 = vadd.f32 1.0, %v4659_v7  ;;  %4666 = vtanh.f32 %v2914_v0  ;;  %v2403_v24 = vmul.f32 0.044715, %v1891_v61 }
 0x392   :  { %v3746_v13 = vadd.f32 %v3745_v1, %v3552_v41  ;;  %4668 = vtanh.f32 %v2787_v9  ;;  %v2145_v1 = vmul.f32 0.5, %v8196_v8  ;;  %v2018_v29 = vmul.f32 0.5, %v8200_v2 }
 0x393   :  { %v4661_v26 = vpop.eup %4660  ;;  %v3680_v12 = vmul.f32 %v3424_v49, %v2144_v3  ;;  %v2659_v21 = vadd.f32 %v2403_v24, %v8231_v46  ;;  %v2146_v50 = vmul.f32 0.5, %v8207_v30  ;;  %v2019_v19 = vmul.f32 0.5, %v8218_v51 }
 0x394   :  { %v3297_v58 = vadd.f32 1.0, %v4661_v26  ;;  %v2147_v30 = vmul.f32 0.5, %v8231_v46 }
 0x395   :  { %v3910_v11 = vadd.f32 %v3909_v38, %v3680_v12  ;;  %v2915_v27 = vmul.f32 0.7978846, %v2659_v21  ;;  %v4697_v38 = vmov 1966171168  }
 0x396   :  { %v3553_v6 = vmul.f32 %v3297_v58, %v2017_v16  ;;  %v3827_v33 = vunpack.c.l.s4 %v4697_v38  ;;  %v3684_v12 = vld [vmem:[#allocation2] ss:$2 sm:$0x3]  ;;  %v8472_v58 = vlaneseq }
 0x397   :  { %4670 = vtanh.f32 %v2915_v27 }
 0x398   :  { %v3815_v20 = vadd.f32 %v3814_v10, %v3553_v6  ;;  %v3828_v62 = vunpack.c.0.s8 %v3827_v33  ;;  %vm3844_vm1 = vcmp.lt.s32.totalorder %v8472_v58, 256 }
 0x399   :  { %v4663_v25 = vpop.eup %4662 }
 0x39a   :  { %v4665_v39 = vpop.eup %4664  ;;  %v3425_v63 = vadd.f32 1.0, %v4663_v25  ;;  %v3831_v46 = vsub.s32 %v3828_v62, %v8471_v52 }
 0x39b   :  { %v4667_v60 = vpop.eup %4666  ;;  %v3298_v32 = vadd.f32 1.0, %v4665_v39 }
 0x39c   :  { %v3681_v45 = vmul.f32 %v3425_v63, %v2145_v1  ;;  %v3426_v36 = vadd.f32 1.0, %v4667_v60  ;;  %v4669_v17 = vpop.eup %4668 }
 0x39d   :  { %v3554_v4 = vmul.f32 %v3298_v32, %v2018_v29  ;;  %v3299_v54 = vadd.f32 1.0, %v4669_v17 }
 0x39e   :  { %v3979_v18 = vadd.f32 %v3978_v15, %v3681_v45  ;;  %v3682_v59 = vmul.f32 %v3426_v36, %v2146_v50 }
 0x39f   :  { %v3747_v35 = vadd.f32 %v3746_v13, %v3554_v4  ;;  %v3555_v47 = vmul.f32 %v3299_v54, %v2019_v19 }
 0x3a0   :  { %v3911_v43 = vadd.f32 %v3910_v11, %v3682_v59 }
 0x3a1   :  { %v3748_v8 = vrot.slane %v3747_v35, 4  ;;  %v3816_v2 = vadd.f32 %v3815_v20, %v3555_v47  ;;  %v4671_v34 = vpop.eup %4670  ;;  %v3848_v20 = vld [vmem:[#allocation2 + $0x1] ss:$2 sm:$0x3] }
 0x3a2   :  { %v3912_v57 = vrot.slane %v3911_v43, 4  ;;  %v3427_v5 = vadd.f32 1.0, %v4671_v34 }
 0x3a3   :  { %v3749_v37 = vadd.f32 %v3748_v8, %v3747_v35  ;;  %v3817_v28 = vrot.slane %v3816_v2, 4 }
 0x3a4   :  { %v3913_v44 = vadd.f32 %v3912_v57, %v3911_v43  ;;  %v3683_v51 = vmul.f32 %v3427_v5, %v2147_v30 }
 0x3a5   :  { %v3750_v22 = vrot.slane %v3749_v37, 2  ;;  %v3818_v55 = vadd.f32 %v3817_v28, %v3816_v2 }
 0x3a6   :  { %v3914_v48 = vrot.slane %v3913_v44, 2  ;;  %v3980_v42 = vadd.f32 %v3979_v18, %v3683_v51 }
 0x3a7   :  { %v3751_v14 = vadd.f32 %v3750_v22, %v3749_v37  ;;  %v3819_v53 = vrot.slane %v3818_v55, 2 }
 0x3a8   :  { %v3915_v40 = vadd.f32 %v3914_v48, %v3913_v44  ;;  %v3981_v3 = vrot.slane %v3980_v42, 4 }
 0x3a9   :  { %v3752_v23 = vrot.slane %v3751_v14, 1  ;;  %v3820_v56 = vadd.f32 %v3819_v53, %v3818_v55 }
 0x3aa   :  { %v3982_v10 = vadd.f32 %v3981_v3, %v3980_v42  ;;  %v3916_v15 = vrot.slane %v3915_v40, 1 }
 0x3ab   :  { %v3753_v0 = vadd.f32 %v3752_v23, %v3751_v14  ;;  %v3821_v7 = vrot.slane %v3820_v56, 1 }
 0x3ac   :  { %v3983_v49 = vrot.slane %v3982_v10, 2  ;;  %v3917_v26 = vadd.f32 %v3916_v15, %v3915_v40 }
 0x3ad   :  { %v3822_v41 = vadd.f32 %v3821_v7, %v3820_v56 }
 0x3ae   :  { %v3984_v13 = vadd.f32 %v3983_v49, %v3982_v10 }
 0x3af   :  { %v3825_v31 = vcombine.low %v3753_v0, %v3822_v41 }
 0x3b0   :  { %v3985_v61 = vrot.slane %v3984_v13, 1 }
 0x3b1   :  { %v3832_v9 = vrot.slane %v3825_v31, %v3831_v46 }
 0x3b2   :  { %v3986_v11 = vadd.f32 %v3985_v61, %v3984_v13 }
 0x3b3   :  { %v3839_v16 = vrot.slane %v3832_v9, %v3831_v46 }
 0x3b4   :  { %v3989_v6 = vcombine.low %v3917_v26, %v3986_v11 }
 0x3b5   :  { %v3841_v24 = vadd.f32 %v3839_v16, %v3684_v12 }
 0x3b6   :  { %v3996_v21 = vrot.slane %v3989_v6, %v3831_v46 }
 0x3b7   :  { %3846 = vst.msk [vmem:[#allocation2] ss:$2 sm:$0x3] %vm3844_vm1, %v3841_v24 }
 0x3b8   :  { %v4003_v25 = vrot.slane %v3996_v21, %v3831_v46 }
 0x3ba   :  { %v4005_v27 = vadd.f32 %v4003_v25, %v3848_v20 }
 0x3bc   :  { %4006 = vst.msk [vmem:[#allocation2 + $0x1] ss:$2 sm:$0x3] %vm3844_vm1, %v4005_v27 }
 0x3c3   :  { %v4010_v39 = vld [vmem:[#allocation2] sm:$0xf] }
 0x3c4   :  { %v4011_v1 = vmul.f32 0.001953125, %v4010_v39 }
 0x3c6   :  { %4012 = vst [vmem:[#allocation3] sm:$0xf] %v4011_v1 }
 0x3c7   :  { %4683 = shalt.err (!%p4680_p4)
}
 0x3c8   :  { %s4684_s23 = scalar_lea.hbm %s8263_s3, 64 }
 0x3c9   :  { %p4685_p5 = scmp.ne.s32.totalorder %s8263_s3, %s4684_s23  ;;  %p4688_p6 = scmp.lt.u32.totalorder %s4684_s23, %s8263_s3 }
 0x3cb   :  { %p4690_p7 = pnand %p4688_p6, %p4685_p5 }
 0x3cd   :  { %4693 = shalt.err (!%p4690_p7)
}
 0x3ce   :  { %4022 = dma.vmem_to_hbm [thread:$0]  %s4020_s1, 64, %s8263_s3, [#allocation4]  }
 0x3cf   :  { %4694 = dma.done.wait [#allocation4], 64  }
 0x3d0   :  { %4695 = vsyncadd [#allocation4], 4294967232 }
 0x3d1   :  { %4026 = vsyncpa [#allocation4], 1 }

</bundles_post_ra>
